<compile_context>
chip_gen: v7x
topology: tpu7x:2x2x1
jax: 0.10.0
libtpu: 0.0.40
codegen_flags: <defaults>
</compile_context>

<pallas_src>
import functools
import math

import jax
import jax.numpy as jnp
from jax import lax
from jax.experimental import pallas as pl
from jax.experimental.pallas import tpu as pltpu

N_MEL = 88          # n_mel_channels
HIDDEN_PAD = 128    # LSTM hidden / mel channel axis padded to a full 128-lane vreg
ATTN_FILTERS = 32   # location_conv: Conv 2 -> 32, kernel_size=1, no bias
PRENET_DIM = 256    # prenet_dim
POST_K = 5          # postnet kernel size
POST_CH = 512       # postnet hidden channels
DROP_P = 0.5        # F.dropout default


# ----------------------------------------------------------------------------
# Kernel 1: all decoder steps at once
#   location_conv (pointwise) -> prenet -> LSTM, batched over (batch, step).
# ----------------------------------------------------------------------------
def decoder_stage_kernel(x_ref, wa_ref, wp_ref, mask_ref, wih_ref, whh_ref,
                         bias_ref, o_ref, *, n_steps, batch, seq_len):
    H = HIDDEN_PAD
    N = n_steps * batch
    T = seq_len

    # Attention.location_conv (1x1 conv 2->32, no bias) + Prenet linear + ReLU
    # for ALL (t, b, step) rows at once: two batched MXU matmuls.
    # TODO(synk): reference LinearNorm(256,256) cannot consume the 32-channel
    # attention output; the prenet linear is adapted to 32 -> 256.
    att = jnp.dot(x_ref[...], wa_ref[...],
                  preferred_element_type=jnp.float32)              # (T*N, 32)
    pre = jnp.maximum(
        jnp.dot(att, wp_ref[...], preferred_element_type=jnp.float32), 0.0)
    pre = pre * mask_ref[...]       # prenet dropout(p=0.5, training=True), pre-scaled mask

    # Hoisted LSTM input projection for every timestep: one large matmul
    # outside the recurrence (bf16 operands, f32 accumulation).
    wih = wih_ref[...]
    xg = jnp.dot(pre.astype(wih.dtype), wih,
                 preferred_element_type=jnp.float32) + bias_ref[...]   # (T*N, 4H)

    # LSTM recurrence over time, batch = n_steps*batch, independent
    # zero-initialized state per decoder step (matches the per-step reference).
    # TODO(synk): reference `nn.LSTM()` is unconstructible; we use
    # input=prenet_dim, hidden=n_mel_channels (padded to 128) and take the
    # final hidden state as the per-step mel frame.
    whh = whh_ref[...]
    h = jnp.zeros((N, H), jnp.float32)
    c = jnp.zeros((N, H), jnp.float32)
    for t in range(T):              # static trip count -> fully unrolled
        g = xg[t * N:(t + 1) * N, :] + jnp.dot(
            h.astype(whh.dtype), whh, preferred_element_type=jnp.float32)
        i_g = jax.nn.sigmoid(g[:, 0:H])          # lane-aligned 128-wide gate slices
        f_g = jax.nn.sigmoid(g[:, H:2 * H])
        g_g = jnp.tanh(g[:, 2 * H:3 * H])
        o_g = jax.nn.sigmoid(g[:, 3 * H:4 * H])
        c = f_g * c + i_g * g_g
        h = o_g * jnp.tanh(c)

    # Rows are ordered (b, step): the final hidden states ARE the stacked mel
    # frames, written lane-dense (128) in the layout the postnet consumes.
    o_ref[...] = h.reshape(batch, n_steps, H)


# ----------------------------------------------------------------------------
# Kernel 2: the whole postnet, fused.
#   5 x [Conv1d(k=5, same pad) -> BatchNorm1d(train stats) -> tanh(0..3)
#        -> dropout(0.5)] + residual add of the stacked mel frames.
# ----------------------------------------------------------------------------
def _postnet_conv_bn_layer(y, w, gamma, beta, mask, *, apply_tanh):
    B, Tm, Cin = y.shape
    pad = POST_K // 2
    zpad = jnp.zeros((B, pad, Cin), jnp.float32)
    ypad = jnp.concatenate([zpad, y, zpad], axis=1)          # "same" pad in time
    # im2col: one (B*Tm, K*Cin) @ (K*Cin, Cout) matmul replaces K*B tiny dots.
    cols = jnp.concatenate([ypad[:, k:k + Tm, :] for k in range(POST_K)], axis=-1)
    rows = cols.reshape(B * Tm, POST_K * Cin)
    z = jnp.dot(rows.astype(w.dtype), w, preferred_element_type=jnp.float32)
    # TODO(synk): conv bias omitted -- it is cancelled exactly by the
    # training-mode BatchNorm mean subtraction that follows it.
    # BatchNorm1d, training-mode batch statistics over (batch, time) per channel.
    mean = jnp.mean(z, axis=0, keepdims=True)
    var = jnp.mean(jnp.square(z - mean), axis=0, keepdims=True)
    z = (z - mean) * lax.rsqrt(var + 1e-5)
    z = z * gamma + beta
    if apply_tanh:
        z = jnp.tanh(z)
    z = z * mask                    # dropout(p=0.5), pre-scaled keep mask
    return z.reshape(B, Tm, z.shape[-1])


def postnet_fused_kernel(mel_ref,
                         w0, g0, bt0, m0,
                         w1, g1, bt1, m1,
                         w2, g2, bt2, m2,
                         w3, g3, bt3, m3,
                         w4, g4, bt4, m4,
                         o_ref):
    mel = mel_ref[...]                          # (B, n_steps, 128) lane-padded mel
    y = mel
    layers = ((w0, g0, bt0, m0, True), (w1, g1, bt1, m1, True),
              (w2, g2, bt2, m2, True), (w3, g3, bt3, m3, True),
              (w4, g4, bt4, m4, False))
    for w_ref, g_ref, bt_ref, m_ref, do_tanh in layers:
        y = _postnet_conv_bn_layer(y, w_ref[...], g_ref[...], bt_ref[...],
                                   m_ref[...], apply_tanh=do_tanh)
    # TODO(synk): reference does `list + tensor`; implemented as the intended
    # residual add of the stacked mel frames.
    o_ref[...] = mel + y


# ----------------------------------------------------------------------------
# Wrappers
# ----------------------------------------------------------------------------
def run_decoder_stage(x_flat, pre_mask, params, *, n_steps, batch, seq_len):
    kern = functools.partial(decoder_stage_kernel, n_steps=n_steps, batch=batch,
                             seq_len=seq_len)
    return pl.pallas_call(
        kern,
        out_shape=jax.ShapeDtypeStruct((batch, n_steps, HIDDEN_PAD), jnp.float32),
    )(x_flat, params["wa"], params["wp"], pre_mask, params["wih"],
      params["whh"], params["bias"])


def run_postnet_fused(mel_pad, post_params, masks):
    batch, n_steps, _ = mel_pad.shape
    inputs = [mel_pad]
    for lp, m in zip(post_params, masks):
        inputs.extend([lp["w"], lp["gamma"], lp["beta"], m])
    return pl.pallas_call(
        postnet_fused_kernel,
        out_shape=jax.ShapeDtypeStruct((batch, n_steps, HIDDEN_PAD), jnp.float32),
        compiler_params=pltpu.CompilerParams(vmem_limit_bytes=48 * 1024 * 1024),
    )(*inputs)


def decoder_forward(decoder_inputs, params, dropout_key):
    """decoder_inputs: (S, B, 2, T) in the PyTorch NCW-per-step convention."""
    S, B, _, T = decoder_inputs.shape
    n_steps = S - 1                         # `while len(mel_outputs) < S - 1`
    N = B * n_steps

    # glue: channels-last, flattened to (T*B*n_steps, 2) rows ordered (t, b, step)
    # so all per-step matmuls are batched and the input DMA tile is dense.
    x_flat = jnp.transpose(decoder_inputs[:n_steps], (3, 1, 0, 2)).reshape(T * N, 2)

    # Dropout keep-masks drawn host-side (deterministic), pre-scaled by 1/(1-p).
    k_pre, k_post = jax.random.split(dropout_key)
    scale = 1.0 / (1.0 - DROP_P)
    pre_mask = (jax.random.bernoulli(k_pre, 1.0 - DROP_P, (T * N, PRENET_DIM))
                .astype(jnp.float32) * scale)

    mel_pad = run_decoder_stage(x_flat, pre_mask, params, n_steps=n_steps,
                                batch=B, seq_len=T)          # (B, n_steps, 128)

    post_keys = jax.random.split(k_post, len(params["postnet"]))
    masks = [
        (jax.random.bernoulli(post_keys[i], 1.0 - DROP_P,
                              (N, lp["gamma"].shape[1])).astype(jnp.float32) * scale)
        for i, lp in enumerate(params["postnet"])
    ]

    out_pad = run_postnet_fused(mel_pad, params["postnet"], masks)  # (B, n_steps, 128)
    out = out_pad[:, :, :N_MEL]             # strip the lane padding (88 real channels)
    return jnp.transpose(out, (0, 2, 1))    # (B, 88, n_steps)  NCW


# ----------------------------------------------------------------------------
# Deterministic parameter init (synthetic — no checkpoint loading)
# ----------------------------------------------------------------------------
def init_params(key):
    ks = jax.random.split(key, 16)
    H, Hp, P = N_MEL, HIDDEN_PAD, PRENET_DIM

    def nrm(k, shape, fan_in):
        return jax.random.normal(k, shape, jnp.float32) * (1.0 / math.sqrt(fan_in))

    # LSTM weights: hidden padded 88 -> 128; padded gate columns / recurrent
    # rows are zero so the padded hidden units stay exactly 0.
    wih = jnp.zeros((P, 4, Hp), jnp.float32).at[:, :, :H].set(
        nrm(ks[2], (P, 4, H), P)).reshape(P, 4 * Hp)
    whh = jnp.zeros((Hp, 4, Hp), jnp.float32).at[:H, :, :H].set(
        nrm(ks[3], (H, 4, H), H)).reshape(Hp, 4 * Hp)

    params = {
        "wa": nrm(ks[0], (2, ATTN_FILTERS), 2),             # location_conv (no bias)
        "wp": nrm(ks[1], (ATTN_FILTERS, P), ATTN_FILTERS),  # prenet linear (no bias)
        "wih": wih.astype(jnp.bfloat16),                    # bf16 weights, f32 accumulate
        "whh": whh.astype(jnp.bfloat16),
        "bias": jnp.zeros((1, 4 * Hp), jnp.float32),        # b_ih + b_hh precombined
    }

    dims = [(N_MEL, POST_CH), (POST_CH, POST_CH), (POST_CH, POST_CH),
            (POST_CH, POST_CH), (POST_CH, N_MEL)]
    post = []
    for i, (cin, cout) in enumerate(dims):
        cin_p = Hp if cin == N_MEL else cin
        cout_p = Hp if cout == N_MEL else cout
        w = jnp.zeros((POST_K, cin_p, cout_p), jnp.float32).at[:, :cin, :cout].set(
            nrm(ks[4 + i], (POST_K, cin, cout), POST_K * cin))
        post.append({
            "w": w.reshape(POST_K * cin_p, cout_p).astype(jnp.bfloat16),  # im2col layout
            "gamma": jnp.ones((1, cout_p), jnp.float32),
            "beta": jnp.zeros((1, cout_p), jnp.float32),
        })
    params["postnet"] = post
    return params


if __name__ == "__main__":
    key = jax.random.PRNGKey(0)
    k_in, k_par, k_drop = jax.random.split(key, 3)

    S, B, T = 5, 2, 16                      # 5 decoder steps -> 4 output frames
    decoder_inputs = jax.random.normal(k_in, (S, B, 2, T), jnp.float32)
    params = init_params(k_par)

    out = decoder_forward(decoder_inputs, params, k_drop)
    out = jax.block_until_ready(out)
    assert out.shape == (B, N_MEL, S - 1), out.shape
    assert bool(jnp.all(jnp.isfinite(out)))
    print("KERNEL_OK")
</pallas_src>

<mosaic_0001>
module attributes {stable_mosaic.version = 11 : i64} {
  func.func @decoder_stage_kernel(%arg0: memref<128x2xf32, #tpu.memory_space<vmem>>, %arg1: memref<2x32xf32, #tpu.memory_space<vmem>>, %arg2: memref<32x256xf32, #tpu.memory_space<vmem>>, %arg3: memref<128x256xf32, #tpu.memory_space<vmem>>, %arg4: memref<256x512xbf16, #tpu.memory_space<vmem>>, %arg5: memref<128x512xbf16, #tpu.memory_space<vmem>>, %arg6: memref<1x512xf32, #tpu.memory_space<vmem>>, %arg7: memref<2x4x128xf32, #tpu.memory_space<vmem>>) attributes {dimension_semantics = [], scalar_prefetch = 0 : i64, scratch_operands = 0 : i64, tpu.core_type = #tpu.core_type<tc>} {
    %c0 = arith.constant 0 : index
    %c0_0 = arith.constant 0 : index
    %0 = vector.load %arg0[%c0, %c0_0] : memref<128x2xf32, #tpu.memory_space<vmem>>, vector<128x2xf32>
    %c0_1 = arith.constant 0 : index
    %c0_2 = arith.constant 0 : index
    %1 = vector.load %arg1[%c0_1, %c0_2] : memref<2x32xf32, #tpu.memory_space<vmem>>, vector<2x32xf32>
    %cst = arith.constant dense<0.000000e+00> : vector<128x32xf32>
    %2 = tpu.matmul %0, %1, %cst {dimension_numbers = #tpu.dot_dimension_numbers<[1], [0], [0], [1], [0, 0, 1, 1], [], []>} : vector<128x2xf32>, vector<2x32xf32>, vector<128x32xf32> -> vector<128x32xf32>
    %c0_3 = arith.constant 0 : index
    %c0_4 = arith.constant 0 : index
    %3 = vector.load %arg2[%c0_3, %c0_4] : memref<32x256xf32, #tpu.memory_space<vmem>>, vector<32x256xf32>
    %cst_5 = arith.constant dense<0.000000e+00> : vector<128x256xf32>
    %4 = tpu.matmul %2, %3, %cst_5 {dimension_numbers = #tpu.dot_dimension_numbers<[1], [0], [0], [1], [0, 0, 1, 1], [], []>} : vector<128x32xf32>, vector<32x256xf32>, vector<128x256xf32> -> vector<128x256xf32>
    %cst_6 = arith.constant 0.000000e+00 : f32
    %5 = vector.broadcast %cst_6 : f32 to vector<128x256xf32>
    %6 = arith.maximumf %4, %5 : vector<128x256xf32>
    %c0_7 = arith.constant 0 : index
    %c0_8 = arith.constant 0 : index
    %7 = vector.load %arg3[%c0_7, %c0_8] : memref<128x256xf32, #tpu.memory_space<vmem>>, vector<128x256xf32>
    %8 = arith.mulf %6, %7 : vector<128x256xf32>
    %c0_9 = arith.constant 0 : index
    %c0_10 = arith.constant 0 : index
    %9 = vector.load %arg4[%c0_9, %c0_10] : memref<256x512xbf16, #tpu.memory_space<vmem>>, vector<256x512xbf16>
    %10 = arith.truncf %8 : vector<128x256xf32> to vector<128x256xbf16>
    %cst_11 = arith.constant dense<0.000000e+00> : vector<128x512xf32>
    %11 = tpu.matmul %10, %9, %cst_11 {dimension_numbers = #tpu.dot_dimension_numbers<[1], [0], [0], [1], [0, 0, 1, 1], [], []>} : vector<128x256xbf16>, vector<256x512xbf16>, vector<128x512xf32> -> vector<128x512xf32>
    %c0_12 = arith.constant 0 : index
    %c0_13 = arith.constant 0 : index
    %12 = vector.load %arg6[%c0_12, %c0_13] : memref<1x512xf32, #tpu.memory_space<vmem>>, vector<1x512xf32>
    %13 = vector.broadcast %12 : vector<1x512xf32> to vector<128x512xf32>
    %14 = arith.addf %11, %13 : vector<128x512xf32>
    %c0_14 = arith.constant 0 : index
    %c0_15 = arith.constant 0 : index
    %15 = vector.load %arg5[%c0_14, %c0_15] : memref<128x512xbf16, #tpu.memory_space<vmem>>, vector<128x512xbf16>
    %cst_16 = arith.constant 0.000000e+00 : f32
    %16 = vector.broadcast %cst_16 : f32 to vector<8x128xf32>
    %cst_17 = arith.constant 0.000000e+00 : f32
    %17 = vector.broadcast %cst_17 : f32 to vector<8x128xf32>
    %18 = vector.extract_strided_slice %14 {offsets = [0, 0], sizes = [8, 512], strides = [1, 1]} : vector<128x512xf32> to vector<8x512xf32>
    %19 = arith.truncf %16 : vector<8x128xf32> to vector<8x128xbf16>
    %cst_18 = arith.constant dense<0.000000e+00> : vector<8x512xf32>
    %20 = tpu.matmul %19, %15, %cst_18 {dimension_numbers = #tpu.dot_dimension_numbers<[1], [0], [0], [1], [0, 0, 1, 1], [], []>} : vector<8x128xbf16>, vector<128x512xbf16>, vector<8x512xf32> -> vector<8x512xf32>
    %21 = arith.addf %18, %20 : vector<8x512xf32>
    %22 = vector.extract_strided_slice %21 {offsets = [0, 0], sizes = [8, 128], strides = [1, 1]} : vector<8x512xf32> to vector<8x128xf32>
    %23 = arith.negf %22 : vector<8x128xf32>
    %24 = math.exp %23 : vector<8x128xf32>
    %cst_19 = arith.constant 1.000000e+00 : f32
    %25 = vector.broadcast %cst_19 : f32 to vector<8x128xf32>
    %26 = arith.addf %25, %24 : vector<8x128xf32>
    %27 = arith.divf %25, %26 : vector<8x128xf32>
    %28 = vector.extract_strided_slice %21 {offsets = [0, 128], sizes = [8, 128], strides = [1, 1]} : vector<8x512xf32> to vector<8x128xf32>
    %29 = arith.negf %28 : vector<8x128xf32>
    %30 = math.exp %29 : vector<8x128xf32>
    %cst_20 = arith.constant 1.000000e+00 : f32
    %31 = vector.broadcast %cst_20 : f32 to vector<8x128xf32>
    %32 = arith.addf %31, %30 : vector<8x128xf32>
    %33 = arith.divf %31, %32 : vector<8x128xf32>
    %34 = vector.extract_strided_slice %21 {offsets = [0, 256], sizes = [8, 128], strides = [1, 1]} : vector<8x512xf32> to vector<8x128xf32>
    %35 = math.tanh %34 : vector<8x128xf32>
    %36 = vector.extract_strided_slice %21 {offsets = [0, 384], sizes = [8, 128], strides = [1, 1]} : vector<8x512xf32> to vector<8x128xf32>
    %37 = arith.negf %36 : vector<8x128xf32>
    %38 = math.exp %37 : vector<8x128xf32>
    %cst_21 = arith.constant 1.000000e+00 : f32
    %39 = vector.broadcast %cst_21 : f32 to vector<8x128xf32>
    %40 = arith.addf %39, %38 : vector<8x128xf32>
    %41 = arith.divf %39, %40 : vector<8x128xf32>
    %42 = arith.mulf %33, %17 : vector<8x128xf32>
    %43 = arith.mulf %27, %35 : vector<8x128xf32>
    %44 = arith.addf %42, %43 : vector<8x128xf32>
    %45 = math.tanh %44 : vector<8x128xf32>
    %46 = arith.mulf %41, %45 : vector<8x128xf32>
    %47 = vector.extract_strided_slice %14 {offsets = [8, 0], sizes = [8, 512], strides = [1, 1]} : vector<128x512xf32> to vector<8x512xf32>
    %48 = arith.truncf %46 : vector<8x128xf32> to vector<8x128xbf16>
    %cst_22 = arith.constant dense<0.000000e+00> : vector<8x512xf32>
    %49 = tpu.matmul %48, %15, %cst_22 {dimension_numbers = #tpu.dot_dimension_numbers<[1], [0], [0], [1], [0, 0, 1, 1], [], []>} : vector<8x128xbf16>, vector<128x512xbf16>, vector<8x512xf32> -> vector<8x512xf32>
    %50 = arith.addf %47, %49 : vector<8x512xf32>
    %51 = vector.extract_strided_slice %50 {offsets = [0, 0], sizes = [8, 128], strides = [1, 1]} : vector<8x512xf32> to vector<8x128xf32>
    %52 = arith.negf %51 : vector<8x128xf32>
    %53 = math.exp %52 : vector<8x128xf32>
    %cst_23 = arith.constant 1.000000e+00 : f32
    %54 = vector.broadcast %cst_23 : f32 to vector<8x128xf32>
    %55 = arith.addf %54, %53 : vector<8x128xf32>
    %56 = arith.divf %54, %55 : vector<8x128xf32>
    %57 = vector.extract_strided_slice %50 {offsets = [0, 128], sizes = [8, 128], strides = [1, 1]} : vector<8x512xf32> to vector<8x128xf32>
    %58 = arith.negf %57 : vector<8x128xf32>
    %59 = math.exp %58 : vector<8x128xf32>
    %cst_24 = arith.constant 1.000000e+00 : f32
    %60 = vector.broadcast %cst_24 : f32 to vector<8x128xf32>
    %61 = arith.addf %60, %59 : vector<8x128xf32>
    %62 = arith.divf %60, %61 : vector<8x128xf32>
    %63 = vector.extract_strided_slice %50 {offsets = [0, 256], sizes = [8, 128], strides = [1, 1]} : vector<8x512xf32> to vector<8x128xf32>
    %64 = math.tanh %63 : vector<8x128xf32>
    %65 = vector.extract_strided_slice %50 {offsets = [0, 384], sizes = [8, 128], strides = [1, 1]} : vector<8x512xf32> to vector<8x128xf32>
    %66 = arith.negf %65 : vector<8x128xf32>
    %67 = math.exp %66 : vector<8x128xf32>
    %cst_25 = arith.constant 1.000000e+00 : f32
    %68 = vector.broadcast %cst_25 : f32 to vector<8x128xf32>
    %69 = arith.addf %68, %67 : vector<8x128xf32>
    %70 = arith.divf %68, %69 : vector<8x128xf32>
    %71 = arith.mulf %62, %44 : vector<8x128xf32>
    %72 = arith.mulf %56, %64 : vector<8x128xf32>
    %73 = arith.addf %71, %72 : vector<8x128xf32>
    %74 = math.tanh %73 : vector<8x128xf32>
    %75 = arith.mulf %70, %74 : vector<8x128xf32>
    %76 = vector.extract_strided_slice %14 {offsets = [16, 0], sizes = [8, 512], strides = [1, 1]} : vector<128x512xf32> to vector<8x512xf32>
    %77 = arith.truncf %75 : vector<8x128xf32> to vector<8x128xbf16>
    %cst_26 = arith.constant dense<0.000000e+00> : vector<8x512xf32>
    %78 = tpu.matmul %77, %15, %cst_26 {dimension_numbers = #tpu.dot_dimension_numbers<[1], [0], [0], [1], [0, 0, 1, 1], [], []>} : vector<8x128xbf16>, vector<128x512xbf16>, vector<8x512xf32> -> vector<8x512xf32>
    %79 = arith.addf %76, %78 : vector<8x512xf32>
    %80 = vector.extract_strided_slice %79 {offsets = [0, 0], sizes = [8, 128], strides = [1, 1]} : vector<8x512xf32> to vector<8x128xf32>
    %81 = arith.negf %80 : vector<8x128xf32>
    %82 = math.exp %81 : vector<8x128xf32>
    %cst_27 = arith.constant 1.000000e+00 : f32
    %83 = vector.broadcast %cst_27 : f32 to vector<8x128xf32>
    %84 = arith.addf %83, %82 : vector<8x128xf32>
    %85 = arith.divf %83, %84 : vector<8x128xf32>
    %86 = vector.extract_strided_slice %79 {offsets = [0, 128], sizes = [8, 128], strides = [1, 1]} : vector<8x512xf32> to vector<8x128xf32>
    %87 = arith.negf %86 : vector<8x128xf32>
    %88 = math.exp %87 : vector<8x128xf32>
    %cst_28 = arith.constant 1.000000e+00 : f32
    %89 = vector.broadcast %cst_28 : f32 to vector<8x128xf32>
    %90 = arith.addf %89, %88 : vector<8x128xf32>
    %91 = arith.divf %89, %90 : vector<8x128xf32>
    %92 = vector.extract_strided_slice %79 {offsets = [0, 256], sizes = [8, 128], strides = [1, 1]} : vector<8x512xf32> to vector<8x128xf32>
    %93 = math.tanh %92 : vector<8x128xf32>
    %94 = vector.extract_strided_slice %79 {offsets = [0, 384], sizes = [8, 128], strides = [1, 1]} : vector<8x512xf32> to vector<8x128xf32>
    %95 = arith.negf %94 : vector<8x128xf32>
    %96 = math.exp %95 : vector<8x128xf32>
    %cst_29 = arith.constant 1.000000e+00 : f32
    %97 = vector.broadcast %cst_29 : f32 to vector<8x128xf32>
    %98 = arith.addf %97, %96 : vector<8x128xf32>
    %99 = arith.divf %97, %98 : vector<8x128xf32>
    %100 = arith.mulf %91, %73 : vector<8x128xf32>
    %101 = arith.mulf %85, %93 : vector<8x128xf32>
    %102 = arith.addf %100, %101 : vector<8x128xf32>
    %103 = math.tanh %102 : vector<8x128xf32>
    %104 = arith.mulf %99, %103 : vector<8x128xf32>
    %105 = vector.extract_strided_slice %14 {offsets = [24, 0], sizes = [8, 512], strides = [1, 1]} : vector<128x512xf32> to vector<8x512xf32>
    %106 = arith.truncf %104 : vector<8x128xf32> to vector<8x128xbf16>
    %cst_30 = arith.constant dense<0.000000e+00> : vector<8x512xf32>
    %107 = tpu.matmul %106, %15, %cst_30 {dimension_numbers = #tpu.dot_dimension_numbers<[1], [0], [0], [1], [0, 0, 1, 1], [], []>} : vector<8x128xbf16>, vector<128x512xbf16>, vector<8x512xf32> -> vector<8x512xf32>
    %108 = arith.addf %105, %107 : vector<8x512xf32>
    %109 = vector.extract_strided_slice %108 {offsets = [0, 0], sizes = [8, 128], strides = [1, 1]} : vector<8x512xf32> to vector<8x128xf32>
    %110 = arith.negf %109 : vector<8x128xf32>
    %111 = math.exp %110 : vector<8x128xf32>
    %cst_31 = arith.constant 1.000000e+00 : f32
    %112 = vector.broadcast %cst_31 : f32 to vector<8x128xf32>
    %113 = arith.addf %112, %111 : vector<8x128xf32>
    %114 = arith.divf %112, %113 : vector<8x128xf32>
    %115 = vector.extract_strided_slice %108 {offsets = [0, 128], sizes = [8, 128], strides = [1, 1]} : vector<8x512xf32> to vector<8x128xf32>
    %116 = arith.negf %115 : vector<8x128xf32>
    %117 = math.exp %116 : vector<8x128xf32>
    %cst_32 = arith.constant 1.000000e+00 : f32
    %118 = vector.broadcast %cst_32 : f32 to vector<8x128xf32>
    %119 = arith.addf %118, %117 : vector<8x128xf32>
    %120 = arith.divf %118, %119 : vector<8x128xf32>
    %121 = vector.extract_strided_slice %108 {offsets = [0, 256], sizes = [8, 128], strides = [1, 1]} : vector<8x512xf32> to vector<8x128xf32>
    %122 = math.tanh %121 : vector<8x128xf32>
    %123 = vector.extract_strided_slice %108 {offsets = [0, 384], sizes = [8, 128], strides = [1, 1]} : vector<8x512xf32> to vector<8x128xf32>
    %124 = arith.negf %123 : vector<8x128xf32>
    %125 = math.exp %124 : vector<8x128xf32>
    %cst_33 = arith.constant 1.000000e+00 : f32
    %126 = vector.broadcast %cst_33 : f32 to vector<8x128xf32>
    %127 = arith.addf %126, %125 : vector<8x128xf32>
    %128 = arith.divf %126, %127 : vector<8x128xf32>
    %129 = arith.mulf %120, %102 : vector<8x128xf32>
    %130 = arith.mulf %114, %122 : vector<8x128xf32>
    %131 = arith.addf %129, %130 : vector<8x128xf32>
    %132 = math.tanh %131 : vector<8x128xf32>
    %133 = arith.mulf %128, %132 : vector<8x128xf32>
    %134 = vector.extract_strided_slice %14 {offsets = [32, 0], sizes = [8, 512], strides = [1, 1]} : vector<128x512xf32> to vector<8x512xf32>
    %135 = arith.truncf %133 : vector<8x128xf32> to vector<8x128xbf16>
    %cst_34 = arith.constant dense<0.000000e+00> : vector<8x512xf32>
    %136 = tpu.matmul %135, %15, %cst_34 {dimension_numbers = #tpu.dot_dimension_numbers<[1], [0], [0], [1], [0, 0, 1, 1], [], []>} : vector<8x128xbf16>, vector<128x512xbf16>, vector<8x512xf32> -> vector<8x512xf32>
    %137 = arith.addf %134, %136 : vector<8x512xf32>
    %138 = vector.extract_strided_slice %137 {offsets = [0, 0], sizes = [8, 128], strides = [1, 1]} : vector<8x512xf32> to vector<8x128xf32>
    %139 = arith.negf %138 : vector<8x128xf32>
    %140 = math.exp %139 : vector<8x128xf32>
    %cst_35 = arith.constant 1.000000e+00 : f32
    %141 = vector.broadcast %cst_35 : f32 to vector<8x128xf32>
    %142 = arith.addf %141, %140 : vector<8x128xf32>
    %143 = arith.divf %141, %142 : vector<8x128xf32>
    %144 = vector.extract_strided_slice %137 {offsets = [0, 128], sizes = [8, 128], strides = [1, 1]} : vector<8x512xf32> to vector<8x128xf32>
    %145 = arith.negf %144 : vector<8x128xf32>
    %146 = math.exp %145 : vector<8x128xf32>
    %cst_36 = arith.constant 1.000000e+00 : f32
    %147 = vector.broadcast %cst_36 : f32 to vector<8x128xf32>
    %148 = arith.addf %147, %146 : vector<8x128xf32>
    %149 = arith.divf %147, %148 : vector<8x128xf32>
    %150 = vector.extract_strided_slice %137 {offsets = [0, 256], sizes = [8, 128], strides = [1, 1]} : vector<8x512xf32> to vector<8x128xf32>
    %151 = math.tanh %150 : vector<8x128xf32>
    %152 = vector.extract_strided_slice %137 {offsets = [0, 384], sizes = [8, 128], strides = [1, 1]} : vector<8x512xf32> to vector<8x128xf32>
    %153 = arith.negf %152 : vector<8x128xf32>
    %154 = math.exp %153 : vector<8x128xf32>
    %cst_37 = arith.constant 1.000000e+00 : f32
    %155 = vector.broadcast %cst_37 : f32 to vector<8x128xf32>
    %156 = arith.addf %155, %154 : vector<8x128xf32>
    %157 = arith.divf %155, %156 : vector<8x128xf32>
    %158 = arith.mulf %149, %131 : vector<8x128xf32>
    %159 = arith.mulf %143, %151 : vector<8x128xf32>
    %160 = arith.addf %158, %159 : vector<8x128xf32>
    %161 = math.tanh %160 : vector<8x128xf32>
    %162 = arith.mulf %157, %161 : vector<8x128xf32>
    %163 = vector.extract_strided_slice %14 {offsets = [40, 0], sizes = [8, 512], strides = [1, 1]} : vector<128x512xf32> to vector<8x512xf32>
    %164 = arith.truncf %162 : vector<8x128xf32> to vector<8x128xbf16>
    %cst_38 = arith.constant dense<0.000000e+00> : vector<8x512xf32>
    %165 = tpu.matmul %164, %15, %cst_38 {dimension_numbers = #tpu.dot_dimension_numbers<[1], [0], [0], [1], [0, 0, 1, 1], [], []>} : vector<8x128xbf16>, vector<128x512xbf16>, vector<8x512xf32> -> vector<8x512xf32>
    %166 = arith.addf %163, %165 : vector<8x512xf32>
    %167 = vector.extract_strided_slice %166 {offsets = [0, 0], sizes = [8, 128], strides = [1, 1]} : vector<8x512xf32> to vector<8x128xf32>
    %168 = arith.negf %167 : vector<8x128xf32>
    %169 = math.exp %168 : vector<8x128xf32>
    %cst_39 = arith.constant 1.000000e+00 : f32
    %170 = vector.broadcast %cst_39 : f32 to vector<8x128xf32>
    %171 = arith.addf %170, %169 : vector<8x128xf32>
    %172 = arith.divf %170, %171 : vector<8x128xf32>
    %173 = vector.extract_strided_slice %166 {offsets = [0, 128], sizes = [8, 128], strides = [1, 1]} : vector<8x512xf32> to vector<8x128xf32>
    %174 = arith.negf %173 : vector<8x128xf32>
    %175 = math.exp %174 : vector<8x128xf32>
    %cst_40 = arith.constant 1.000000e+00 : f32
    %176 = vector.broadcast %cst_40 : f32 to vector<8x128xf32>
    %177 = arith.addf %176, %175 : vector<8x128xf32>
    %178 = arith.divf %176, %177 : vector<8x128xf32>
    %179 = vector.extract_strided_slice %166 {offsets = [0, 256], sizes = [8, 128], strides = [1, 1]} : vector<8x512xf32> to vector<8x128xf32>
    %180 = math.tanh %179 : vector<8x128xf32>
    %181 = vector.extract_strided_slice %166 {offsets = [0, 384], sizes = [8, 128], strides = [1, 1]} : vector<8x512xf32> to vector<8x128xf32>
    %182 = arith.negf %181 : vector<8x128xf32>
    %183 = math.exp %182 : vector<8x128xf32>
    %cst_41 = arith.constant 1.000000e+00 : f32
    %184 = vector.broadcast %cst_41 : f32 to vector<8x128xf32>
    %185 = arith.addf %184, %183 : vector<8x128xf32>
    %186 = arith.divf %184, %185 : vector<8x128xf32>
    %187 = arith.mulf %178, %160 : vector<8x128xf32>
    %188 = arith.mulf %172, %180 : vector<8x128xf32>
    %189 = arith.addf %187, %188 : vector<8x128xf32>
    %190 = math.tanh %189 : vector<8x128xf32>
    %191 = arith.mulf %186, %190 : vector<8x128xf32>
    %192 = vector.extract_strided_slice %14 {offsets = [48, 0], sizes = [8, 512], strides = [1, 1]} : vector<128x512xf32> to vector<8x512xf32>
    %193 = arith.truncf %191 : vector<8x128xf32> to vector<8x128xbf16>
    %cst_42 = arith.constant dense<0.000000e+00> : vector<8x512xf32>
    %194 = tpu.matmul %193, %15, %cst_42 {dimension_numbers = #tpu.dot_dimension_numbers<[1], [0], [0], [1], [0, 0, 1, 1], [], []>} : vector<8x128xbf16>, vector<128x512xbf16>, vector<8x512xf32> -> vector<8x512xf32>
    %195 = arith.addf %192, %194 : vector<8x512xf32>
    %196 = vector.extract_strided_slice %195 {offsets = [0, 0], sizes = [8, 128], strides = [1, 1]} : vector<8x512xf32> to vector<8x128xf32>
    %197 = arith.negf %196 : vector<8x128xf32>
    %198 = math.exp %197 : vector<8x128xf32>
    %cst_43 = arith.constant 1.000000e+00 : f32
    %199 = vector.broadcast %cst_43 : f32 to vector<8x128xf32>
    %200 = arith.addf %199, %198 : vector<8x128xf32>
    %201 = arith.divf %199, %200 : vector<8x128xf32>
    %202 = vector.extract_strided_slice %195 {offsets = [0, 128], sizes = [8, 128], strides = [1, 1]} : vector<8x512xf32> to vector<8x128xf32>
    %203 = arith.negf %202 : vector<8x128xf32>
    %204 = math.exp %203 : vector<8x128xf32>
    %cst_44 = arith.constant 1.000000e+00 : f32
    %205 = vector.broadcast %cst_44 : f32 to vector<8x128xf32>
    %206 = arith.addf %205, %204 : vector<8x128xf32>
    %207 = arith.divf %205, %206 : vector<8x128xf32>
    %208 = vector.extract_strided_slice %195 {offsets = [0, 256], sizes = [8, 128], strides = [1, 1]} : vector<8x512xf32> to vector<8x128xf32>
    %209 = math.tanh %208 : vector<8x128xf32>
    %210 = vector.extract_strided_slice %195 {offsets = [0, 384], sizes = [8, 128], strides = [1, 1]} : vector<8x512xf32> to vector<8x128xf32>
    %211 = arith.negf %210 : vector<8x128xf32>
    %212 = math.exp %211 : vector<8x128xf32>
    %cst_45 = arith.constant 1.000000e+00 : f32
    %213 = vector.broadcast %cst_45 : f32 to vector<8x128xf32>
    %214 = arith.addf %213, %212 : vector<8x128xf32>
    %215 = arith.divf %213, %214 : vector<8x128xf32>
    %216 = arith.mulf %207, %189 : vector<8x128xf32>
    %217 = arith.mulf %201, %209 : vector<8x128xf32>
    %218 = arith.addf %216, %217 : vector<8x128xf32>
    %219 = math.tanh %218 : vector<8x128xf32>
    %220 = arith.mulf %215, %219 : vector<8x128xf32>
    %221 = vector.extract_strided_slice %14 {offsets = [56, 0], sizes = [8, 512], strides = [1, 1]} : vector<128x512xf32> to vector<8x512xf32>
    %222 = arith.truncf %220 : vector<8x128xf32> to vector<8x128xbf16>
    %cst_46 = arith.constant dense<0.000000e+00> : vector<8x512xf32>
    %223 = tpu.matmul %222, %15, %cst_46 {dimension_numbers = #tpu.dot_dimension_numbers<[1], [0], [0], [1], [0, 0, 1, 1], [], []>} : vector<8x128xbf16>, vector<128x512xbf16>, vector<8x512xf32> -> vector<8x512xf32>
    %224 = arith.addf %221, %223 : vector<8x512xf32>
    %225 = vector.extract_strided_slice %224 {offsets = [0, 0], sizes = [8, 128], strides = [1, 1]} : vector<8x512xf32> to vector<8x128xf32>
    %226 = arith.negf %225 : vector<8x128xf32>
    %227 = math.exp %226 : vector<8x128xf32>
    %cst_47 = arith.constant 1.000000e+00 : f32
    %228 = vector.broadcast %cst_47 : f32 to vector<8x128xf32>
    %229 = arith.addf %228, %227 : vector<8x128xf32>
    %230 = arith.divf %228, %229 : vector<8x128xf32>
    %231 = vector.extract_strided_slice %224 {offsets = [0, 128], sizes = [8, 128], strides = [1, 1]} : vector<8x512xf32> to vector<8x128xf32>
    %232 = arith.negf %231 : vector<8x128xf32>
    %233 = math.exp %232 : vector<8x128xf32>
    %cst_48 = arith.constant 1.000000e+00 : f32
    %234 = vector.broadcast %cst_48 : f32 to vector<8x128xf32>
    %235 = arith.addf %234, %233 : vector<8x128xf32>
    %236 = arith.divf %234, %235 : vector<8x128xf32>
    %237 = vector.extract_strided_slice %224 {offsets = [0, 256], sizes = [8, 128], strides = [1, 1]} : vector<8x512xf32> to vector<8x128xf32>
    %238 = math.tanh %237 : vector<8x128xf32>
    %239 = vector.extract_strided_slice %224 {offsets = [0, 384], sizes = [8, 128], strides = [1, 1]} : vector<8x512xf32> to vector<8x128xf32>
    %240 = arith.negf %239 : vector<8x128xf32>
    %241 = math.exp %240 : vector<8x128xf32>
    %cst_49 = arith.constant 1.000000e+00 : f32
    %242 = vector.broadcast %cst_49 : f32 to vector<8x128xf32>
    %243 = arith.addf %242, %241 : vector<8x128xf32>
    %244 = arith.divf %242, %243 : vector<8x128xf32>
    %245 = arith.mulf %236, %218 : vector<8x128xf32>
    %246 = arith.mulf %230, %238 : vector<8x128xf32>
    %247 = arith.addf %245, %246 : vector<8x128xf32>
    %248 = math.tanh %247 : vector<8x128xf32>
    %249 = arith.mulf %244, %248 : vector<8x128xf32>
    %250 = vector.extract_strided_slice %14 {offsets = [64, 0], sizes = [8, 512], strides = [1, 1]} : vector<128x512xf32> to vector<8x512xf32>
    %251 = arith.truncf %249 : vector<8x128xf32> to vector<8x128xbf16>
    %cst_50 = arith.constant dense<0.000000e+00> : vector<8x512xf32>
    %252 = tpu.matmul %251, %15, %cst_50 {dimension_numbers = #tpu.dot_dimension_numbers<[1], [0], [0], [1], [0, 0, 1, 1], [], []>} : vector<8x128xbf16>, vector<128x512xbf16>, vector<8x512xf32> -> vector<8x512xf32>
    %253 = arith.addf %250, %252 : vector<8x512xf32>
    %254 = vector.extract_strided_slice %253 {offsets = [0, 0], sizes = [8, 128], strides = [1, 1]} : vector<8x512xf32> to vector<8x128xf32>
    %255 = arith.negf %254 : vector<8x128xf32>
    %256 = math.exp %255 : vector<8x128xf32>
    %cst_51 = arith.constant 1.000000e+00 : f32
    %257 = vector.broadcast %cst_51 : f32 to vector<8x128xf32>
    %258 = arith.addf %257, %256 : vector<8x128xf32>
    %259 = arith.divf %257, %258 : vector<8x128xf32>
    %260 = vector.extract_strided_slice %253 {offsets = [0, 128], sizes = [8, 128], strides = [1, 1]} : vector<8x512xf32> to vector<8x128xf32>
    %261 = arith.negf %260 : vector<8x128xf32>
    %262 = math.exp %261 : vector<8x128xf32>
    %cst_52 = arith.constant 1.000000e+00 : f32
    %263 = vector.broadcast %cst_52 : f32 to vector<8x128xf32>
    %264 = arith.addf %263, %262 : vector<8x128xf32>
    %265 = arith.divf %263, %264 : vector<8x128xf32>
    %266 = vector.extract_strided_slice %253 {offsets = [0, 256], sizes = [8, 128], strides = [1, 1]} : vector<8x512xf32> to vector<8x128xf32>
    %267 = math.tanh %266 : vector<8x128xf32>
    %268 = vector.extract_strided_slice %253 {offsets = [0, 384], sizes = [8, 128], strides = [1, 1]} : vector<8x512xf32> to vector<8x128xf32>
    %269 = arith.negf %268 : vector<8x128xf32>
    %270 = math.exp %269 : vector<8x128xf32>
    %cst_53 = arith.constant 1.000000e+00 : f32
    %271 = vector.broadcast %cst_53 : f32 to vector<8x128xf32>
    %272 = arith.addf %271, %270 : vector<8x128xf32>
    %273 = arith.divf %271, %272 : vector<8x128xf32>
    %274 = arith.mulf %265, %247 : vector<8x128xf32>
    %275 = arith.mulf %259, %267 : vector<8x128xf32>
    %276 = arith.addf %274, %275 : vector<8x128xf32>
    %277 = math.tanh %276 : vector<8x128xf32>
    %278 = arith.mulf %273, %277 : vector<8x128xf32>
    %279 = vector.extract_strided_slice %14 {offsets = [72, 0], sizes = [8, 512], strides = [1, 1]} : vector<128x512xf32> to vector<8x512xf32>
    %280 = arith.truncf %278 : vector<8x128xf32> to vector<8x128xbf16>
    %cst_54 = arith.constant dense<0.000000e+00> : vector<8x512xf32>
    %281 = tpu.matmul %280, %15, %cst_54 {dimension_numbers = #tpu.dot_dimension_numbers<[1], [0], [0], [1], [0, 0, 1, 1], [], []>} : vector<8x128xbf16>, vector<128x512xbf16>, vector<8x512xf32> -> vector<8x512xf32>
    %282 = arith.addf %279, %281 : vector<8x512xf32>
    %283 = vector.extract_strided_slice %282 {offsets = [0, 0], sizes = [8, 128], strides = [1, 1]} : vector<8x512xf32> to vector<8x128xf32>
    %284 = arith.negf %283 : vector<8x128xf32>
    %285 = math.exp %284 : vector<8x128xf32>
    %cst_55 = arith.constant 1.000000e+00 : f32
    %286 = vector.broadcast %cst_55 : f32 to vector<8x128xf32>
    %287 = arith.addf %286, %285 : vector<8x128xf32>
    %288 = arith.divf %286, %287 : vector<8x128xf32>
    %289 = vector.extract_strided_slice %282 {offsets = [0, 128], sizes = [8, 128], strides = [1, 1]} : vector<8x512xf32> to vector<8x128xf32>
    %290 = arith.negf %289 : vector<8x128xf32>
    %291 = math.exp %290 : vector<8x128xf32>
    %cst_56 = arith.constant 1.000000e+00 : f32
    %292 = vector.broadcast %cst_56 : f32 to vector<8x128xf32>
    %293 = arith.addf %292, %291 : vector<8x128xf32>
    %294 = arith.divf %292, %293 : vector<8x128xf32>
    %295 = vector.extract_strided_slice %282 {offsets = [0, 256], sizes = [8, 128], strides = [1, 1]} : vector<8x512xf32> to vector<8x128xf32>
    %296 = math.tanh %295 : vector<8x128xf32>
    %297 = vector.extract_strided_slice %282 {offsets = [0, 384], sizes = [8, 128], strides = [1, 1]} : vector<8x512xf32> to vector<8x128xf32>
    %298 = arith.negf %297 : vector<8x128xf32>
    %299 = math.exp %298 : vector<8x128xf32>
    %cst_57 = arith.constant 1.000000e+00 : f32
    %300 = vector.broadcast %cst_57 : f32 to vector<8x128xf32>
    %301 = arith.addf %300, %299 : vector<8x128xf32>
    %302 = arith.divf %300, %301 : vector<8x128xf32>
    %303 = arith.mulf %294, %276 : vector<8x128xf32>
    %304 = arith.mulf %288, %296 : vector<8x128xf32>
    %305 = arith.addf %303, %304 : vector<8x128xf32>
    %306 = math.tanh %305 : vector<8x128xf32>
    %307 = arith.mulf %302, %306 : vector<8x128xf32>
    %308 = vector.extract_strided_slice %14 {offsets = [80, 0], sizes = [8, 512], strides = [1, 1]} : vector<128x512xf32> to vector<8x512xf32>
    %309 = arith.truncf %307 : vector<8x128xf32> to vector<8x128xbf16>
    %cst_58 = arith.constant dense<0.000000e+00> : vector<8x512xf32>
    %310 = tpu.matmul %309, %15, %cst_58 {dimension_numbers = #tpu.dot_dimension_numbers<[1], [0], [0], [1], [0, 0, 1, 1], [], []>} : vector<8x128xbf16>, vector<128x512xbf16>, vector<8x512xf32> -> vector<8x512xf32>
    %311 = arith.addf %308, %310 : vector<8x512xf32>
    %312 = vector.extract_strided_slice %311 {offsets = [0, 0], sizes = [8, 128], strides = [1, 1]} : vector<8x512xf32> to vector<8x128xf32>
    %313 = arith.negf %312 : vector<8x128xf32>
    %314 = math.exp %313 : vector<8x128xf32>
    %cst_59 = arith.constant 1.000000e+00 : f32
    %315 = vector.broadcast %cst_59 : f32 to vector<8x128xf32>
    %316 = arith.addf %315, %314 : vector<8x128xf32>
    %317 = arith.divf %315, %316 : vector<8x128xf32>
    %318 = vector.extract_strided_slice %311 {offsets = [0, 128], sizes = [8, 128], strides = [1, 1]} : vector<8x512xf32> to vector<8x128xf32>
    %319 = arith.negf %318 : vector<8x128xf32>
    %320 = math.exp %319 : vector<8x128xf32>
    %cst_60 = arith.constant 1.000000e+00 : f32
    %321 = vector.broadcast %cst_60 : f32 to vector<8x128xf32>
    %322 = arith.addf %321, %320 : vector<8x128xf32>
    %323 = arith.divf %321, %322 : vector<8x128xf32>
    %324 = vector.extract_strided_slice %311 {offsets = [0, 256], sizes = [8, 128], strides = [1, 1]} : vector<8x512xf32> to vector<8x128xf32>
    %325 = math.tanh %324 : vector<8x128xf32>
    %326 = vector.extract_strided_slice %311 {offsets = [0, 384], sizes = [8, 128], strides = [1, 1]} : vector<8x512xf32> to vector<8x128xf32>
    %327 = arith.negf %326 : vector<8x128xf32>
    %328 = math.exp %327 : vector<8x128xf32>
    %cst_61 = arith.constant 1.000000e+00 : f32
    %329 = vector.broadcast %cst_61 : f32 to vector<8x128xf32>
    %330 = arith.addf %329, %328 : vector<8x128xf32>
    %331 = arith.divf %329, %330 : vector<8x128xf32>
    %332 = arith.mulf %323, %305 : vector<8x128xf32>
    %333 = arith.mulf %317, %325 : vector<8x128xf32>
    %334 = arith.addf %332, %333 : vector<8x128xf32>
    %335 = math.tanh %334 : vector<8x128xf32>
    %336 = arith.mulf %331, %335 : vector<8x128xf32>
    %337 = vector.extract_strided_slice %14 {offsets = [88, 0], sizes = [8, 512], strides = [1, 1]} : vector<128x512xf32> to vector<8x512xf32>
    %338 = arith.truncf %336 : vector<8x128xf32> to vector<8x128xbf16>
    %cst_62 = arith.constant dense<0.000000e+00> : vector<8x512xf32>
    %339 = tpu.matmul %338, %15, %cst_62 {dimension_numbers = #tpu.dot_dimension_numbers<[1], [0], [0], [1], [0, 0, 1, 1], [], []>} : vector<8x128xbf16>, vector<128x512xbf16>, vector<8x512xf32> -> vector<8x512xf32>
    %340 = arith.addf %337, %339 : vector<8x512xf32>
    %341 = vector.extract_strided_slice %340 {offsets = [0, 0], sizes = [8, 128], strides = [1, 1]} : vector<8x512xf32> to vector<8x128xf32>
    %342 = arith.negf %341 : vector<8x128xf32>
    %343 = math.exp %342 : vector<8x128xf32>
    %cst_63 = arith.constant 1.000000e+00 : f32
    %344 = vector.broadcast %cst_63 : f32 to vector<8x128xf32>
    %345 = arith.addf %344, %343 : vector<8x128xf32>
    %346 = arith.divf %344, %345 : vector<8x128xf32>
    %347 = vector.extract_strided_slice %340 {offsets = [0, 128], sizes = [8, 128], strides = [1, 1]} : vector<8x512xf32> to vector<8x128xf32>
    %348 = arith.negf %347 : vector<8x128xf32>
    %349 = math.exp %348 : vector<8x128xf32>
    %cst_64 = arith.constant 1.000000e+00 : f32
    %350 = vector.broadcast %cst_64 : f32 to vector<8x128xf32>
    %351 = arith.addf %350, %349 : vector<8x128xf32>
    %352 = arith.divf %350, %351 : vector<8x128xf32>
    %353 = vector.extract_strided_slice %340 {offsets = [0, 256], sizes = [8, 128], strides = [1, 1]} : vector<8x512xf32> to vector<8x128xf32>
    %354 = math.tanh %353 : vector<8x128xf32>
    %355 = vector.extract_strided_slice %340 {offsets = [0, 384], sizes = [8, 128], strides = [1, 1]} : vector<8x512xf32> to vector<8x128xf32>
    %356 = arith.negf %355 : vector<8x128xf32>
    %357 = math.exp %356 : vector<8x128xf32>
    %cst_65 = arith.constant 1.000000e+00 : f32
    %358 = vector.broadcast %cst_65 : f32 to vector<8x128xf32>
    %359 = arith.addf %358, %357 : vector<8x128xf32>
    %360 = arith.divf %358, %359 : vector<8x128xf32>
    %361 = arith.mulf %352, %334 : vector<8x128xf32>
    %362 = arith.mulf %346, %354 : vector<8x128xf32>
    %363 = arith.addf %361, %362 : vector<8x128xf32>
    %364 = math.tanh %363 : vector<8x128xf32>
    %365 = arith.mulf %360, %364 : vector<8x128xf32>
    %366 = vector.extract_strided_slice %14 {offsets = [96, 0], sizes = [8, 512], strides = [1, 1]} : vector<128x512xf32> to vector<8x512xf32>
    %367 = arith.truncf %365 : vector<8x128xf32> to vector<8x128xbf16>
    %cst_66 = arith.constant dense<0.000000e+00> : vector<8x512xf32>
    %368 = tpu.matmul %367, %15, %cst_66 {dimension_numbers = #tpu.dot_dimension_numbers<[1], [0], [0], [1], [0, 0, 1, 1], [], []>} : vector<8x128xbf16>, vector<128x512xbf16>, vector<8x512xf32> -> vector<8x512xf32>
    %369 = arith.addf %366, %368 : vector<8x512xf32>
    %370 = vector.extract_strided_slice %369 {offsets = [0, 0], sizes = [8, 128], strides = [1, 1]} : vector<8x512xf32> to vector<8x128xf32>
    %371 = arith.negf %370 : vector<8x128xf32>
    %372 = math.exp %371 : vector<8x128xf32>
    %cst_67 = arith.constant 1.000000e+00 : f32
    %373 = vector.broadcast %cst_67 : f32 to vector<8x128xf32>
    %374 = arith.addf %373, %372 : vector<8x128xf32>
    %375 = arith.divf %373, %374 : vector<8x128xf32>
    %376 = vector.extract_strided_slice %369 {offsets = [0, 128], sizes = [8, 128], strides = [1, 1]} : vector<8x512xf32> to vector<8x128xf32>
    %377 = arith.negf %376 : vector<8x128xf32>
    %378 = math.exp %377 : vector<8x128xf32>
    %cst_68 = arith.constant 1.000000e+00 : f32
    %379 = vector.broadcast %cst_68 : f32 to vector<8x128xf32>
    %380 = arith.addf %379, %378 : vector<8x128xf32>
    %381 = arith.divf %379, %380 : vector<8x128xf32>
    %382 = vector.extract_strided_slice %369 {offsets = [0, 256], sizes = [8, 128], strides = [1, 1]} : vector<8x512xf32> to vector<8x128xf32>
    %383 = math.tanh %382 : vector<8x128xf32>
    %384 = vector.extract_strided_slice %369 {offsets = [0, 384], sizes = [8, 128], strides = [1, 1]} : vector<8x512xf32> to vector<8x128xf32>
    %385 = arith.negf %384 : vector<8x128xf32>
    %386 = math.exp %385 : vector<8x128xf32>
    %cst_69 = arith.constant 1.000000e+00 : f32
    %387 = vector.broadcast %cst_69 : f32 to vector<8x128xf32>
    %388 = arith.addf %387, %386 : vector<8x128xf32>
    %389 = arith.divf %387, %388 : vector<8x128xf32>
    %390 = arith.mulf %381, %363 : vector<8x128xf32>
    %391 = arith.mulf %375, %383 : vector<8x128xf32>
    %392 = arith.addf %390, %391 : vector<8x128xf32>
    %393 = math.tanh %392 : vector<8x128xf32>
    %394 = arith.mulf %389, %393 : vector<8x128xf32>
    %395 = vector.extract_strided_slice %14 {offsets = [104, 0], sizes = [8, 512], strides = [1, 1]} : vector<128x512xf32> to vector<8x512xf32>
    %396 = arith.truncf %394 : vector<8x128xf32> to vector<8x128xbf16>
    %cst_70 = arith.constant dense<0.000000e+00> : vector<8x512xf32>
    %397 = tpu.matmul %396, %15, %cst_70 {dimension_numbers = #tpu.dot_dimension_numbers<[1], [0], [0], [1], [0, 0, 1, 1], [], []>} : vector<8x128xbf16>, vector<128x512xbf16>, vector<8x512xf32> -> vector<8x512xf32>
    %398 = arith.addf %395, %397 : vector<8x512xf32>
    %399 = vector.extract_strided_slice %398 {offsets = [0, 0], sizes = [8, 128], strides = [1, 1]} : vector<8x512xf32> to vector<8x128xf32>
    %400 = arith.negf %399 : vector<8x128xf32>
    %401 = math.exp %400 : vector<8x128xf32>
    %cst_71 = arith.constant 1.000000e+00 : f32
    %402 = vector.broadcast %cst_71 : f32 to vector<8x128xf32>
    %403 = arith.addf %402, %401 : vector<8x128xf32>
    %404 = arith.divf %402, %403 : vector<8x128xf32>
    %405 = vector.extract_strided_slice %398 {offsets = [0, 128], sizes = [8, 128], strides = [1, 1]} : vector<8x512xf32> to vector<8x128xf32>
    %406 = arith.negf %405 : vector<8x128xf32>
    %407 = math.exp %406 : vector<8x128xf32>
    %cst_72 = arith.constant 1.000000e+00 : f32
    %408 = vector.broadcast %cst_72 : f32 to vector<8x128xf32>
    %409 = arith.addf %408, %407 : vector<8x128xf32>
    %410 = arith.divf %408, %409 : vector<8x128xf32>
    %411 = vector.extract_strided_slice %398 {offsets = [0, 256], sizes = [8, 128], strides = [1, 1]} : vector<8x512xf32> to vector<8x128xf32>
    %412 = math.tanh %411 : vector<8x128xf32>
    %413 = vector.extract_strided_slice %398 {offsets = [0, 384], sizes = [8, 128], strides = [1, 1]} : vector<8x512xf32> to vector<8x128xf32>
    %414 = arith.negf %413 : vector<8x128xf32>
    %415 = math.exp %414 : vector<8x128xf32>
    %cst_73 = arith.constant 1.000000e+00 : f32
    %416 = vector.broadcast %cst_73 : f32 to vector<8x128xf32>
    %417 = arith.addf %416, %415 : vector<8x128xf32>
    %418 = arith.divf %416, %417 : vector<8x128xf32>
    %419 = arith.mulf %410, %392 : vector<8x128xf32>
    %420 = arith.mulf %404, %412 : vector<8x128xf32>
    %421 = arith.addf %419, %420 : vector<8x128xf32>
    %422 = math.tanh %421 : vector<8x128xf32>
    %423 = arith.mulf %418, %422 : vector<8x128xf32>
    %424 = vector.extract_strided_slice %14 {offsets = [112, 0], sizes = [8, 512], strides = [1, 1]} : vector<128x512xf32> to vector<8x512xf32>
    %425 = arith.truncf %423 : vector<8x128xf32> to vector<8x128xbf16>
    %cst_74 = arith.constant dense<0.000000e+00> : vector<8x512xf32>
    %426 = tpu.matmul %425, %15, %cst_74 {dimension_numbers = #tpu.dot_dimension_numbers<[1], [0], [0], [1], [0, 0, 1, 1], [], []>} : vector<8x128xbf16>, vector<128x512xbf16>, vector<8x512xf32> -> vector<8x512xf32>
    %427 = arith.addf %424, %426 : vector<8x512xf32>
    %428 = vector.extract_strided_slice %427 {offsets = [0, 0], sizes = [8, 128], strides = [1, 1]} : vector<8x512xf32> to vector<8x128xf32>
    %429 = arith.negf %428 : vector<8x128xf32>
    %430 = math.exp %429 : vector<8x128xf32>
    %cst_75 = arith.constant 1.000000e+00 : f32
    %431 = vector.broadcast %cst_75 : f32 to vector<8x128xf32>
    %432 = arith.addf %431, %430 : vector<8x128xf32>
    %433 = arith.divf %431, %432 : vector<8x128xf32>
    %434 = vector.extract_strided_slice %427 {offsets = [0, 128], sizes = [8, 128], strides = [1, 1]} : vector<8x512xf32> to vector<8x128xf32>
    %435 = arith.negf %434 : vector<8x128xf32>
    %436 = math.exp %435 : vector<8x128xf32>
    %cst_76 = arith.constant 1.000000e+00 : f32
    %437 = vector.broadcast %cst_76 : f32 to vector<8x128xf32>
    %438 = arith.addf %437, %436 : vector<8x128xf32>
    %439 = arith.divf %437, %438 : vector<8x128xf32>
    %440 = vector.extract_strided_slice %427 {offsets = [0, 256], sizes = [8, 128], strides = [1, 1]} : vector<8x512xf32> to vector<8x128xf32>
    %441 = math.tanh %440 : vector<8x128xf32>
    %442 = vector.extract_strided_slice %427 {offsets = [0, 384], sizes = [8, 128], strides = [1, 1]} : vector<8x512xf32> to vector<8x128xf32>
    %443 = arith.negf %442 : vector<8x128xf32>
    %444 = math.exp %443 : vector<8x128xf32>
    %cst_77 = arith.constant 1.000000e+00 : f32
    %445 = vector.broadcast %cst_77 : f32 to vector<8x128xf32>
    %446 = arith.addf %445, %444 : vector<8x128xf32>
    %447 = arith.divf %445, %446 : vector<8x128xf32>
    %448 = arith.mulf %439, %421 : vector<8x128xf32>
    %449 = arith.mulf %433, %441 : vector<8x128xf32>
    %450 = arith.addf %448, %449 : vector<8x128xf32>
    %451 = math.tanh %450 : vector<8x128xf32>
    %452 = arith.mulf %447, %451 : vector<8x128xf32>
    %453 = vector.extract_strided_slice %14 {offsets = [120, 0], sizes = [8, 512], strides = [1, 1]} : vector<128x512xf32> to vector<8x512xf32>
    %454 = arith.truncf %452 : vector<8x128xf32> to vector<8x128xbf16>
    %cst_78 = arith.constant dense<0.000000e+00> : vector<8x512xf32>
    %455 = tpu.matmul %454, %15, %cst_78 {dimension_numbers = #tpu.dot_dimension_numbers<[1], [0], [0], [1], [0, 0, 1, 1], [], []>} : vector<8x128xbf16>, vector<128x512xbf16>, vector<8x512xf32> -> vector<8x512xf32>
    %456 = arith.addf %453, %455 : vector<8x512xf32>
    %457 = vector.extract_strided_slice %456 {offsets = [0, 0], sizes = [8, 128], strides = [1, 1]} : vector<8x512xf32> to vector<8x128xf32>
    %458 = arith.negf %457 : vector<8x128xf32>
    %459 = math.exp %458 : vector<8x128xf32>
    %cst_79 = arith.constant 1.000000e+00 : f32
    %460 = vector.broadcast %cst_79 : f32 to vector<8x128xf32>
    %461 = arith.addf %460, %459 : vector<8x128xf32>
    %462 = arith.divf %460, %461 : vector<8x128xf32>
    %463 = vector.extract_strided_slice %456 {offsets = [0, 128], sizes = [8, 128], strides = [1, 1]} : vector<8x512xf32> to vector<8x128xf32>
    %464 = arith.negf %463 : vector<8x128xf32>
    %465 = math.exp %464 : vector<8x128xf32>
    %cst_80 = arith.constant 1.000000e+00 : f32
    %466 = vector.broadcast %cst_80 : f32 to vector<8x128xf32>
    %467 = arith.addf %466, %465 : vector<8x128xf32>
    %468 = arith.divf %466, %467 : vector<8x128xf32>
    %469 = vector.extract_strided_slice %456 {offsets = [0, 256], sizes = [8, 128], strides = [1, 1]} : vector<8x512xf32> to vector<8x128xf32>
    %470 = math.tanh %469 : vector<8x128xf32>
    %471 = vector.extract_strided_slice %456 {offsets = [0, 384], sizes = [8, 128], strides = [1, 1]} : vector<8x512xf32> to vector<8x128xf32>
    %472 = arith.negf %471 : vector<8x128xf32>
    %473 = math.exp %472 : vector<8x128xf32>
    %cst_81 = arith.constant 1.000000e+00 : f32
    %474 = vector.broadcast %cst_81 : f32 to vector<8x128xf32>
    %475 = arith.addf %474, %473 : vector<8x128xf32>
    %476 = arith.divf %474, %475 : vector<8x128xf32>
    %477 = arith.mulf %468, %450 : vector<8x128xf32>
    %478 = arith.mulf %462, %470 : vector<8x128xf32>
    %479 = arith.addf %477, %478 : vector<8x128xf32>
    %480 = math.tanh %479 : vector<8x128xf32>
    %481 = arith.mulf %476, %480 : vector<8x128xf32>
    %482 = vector.shape_cast %481 : vector<8x128xf32> to vector<2x4x128xf32>
    %c0_82 = arith.constant 0 : index
    %c0_83 = arith.constant 0 : index
    %c0_84 = arith.constant 0 : index
    %483 = vector.load %arg7[%c0_82, %c0_83, %c0_84] : memref<2x4x128xf32, #tpu.memory_space<vmem>>, vector<2x4x128xf32>
    tpu.vector_store %arg7[%c0_82, %c0_83, %c0_84], %482 {strides = array<i32>} : memref<2x4x128xf32, #tpu.memory_space<vmem>>, vector<2x4x128xf32>,
    return
  }
}

</mosaic_0001>

<bundles_post_ra>
// kernel: tpu_custom_call.1
= control target key start
LH: loop header
LB: loop body
LE: loop exit
PB: predicated region body
PF: predicated region fallthrough
CT: control target
= control target key end

     0   :  { %12 = vsyncpa [#allocation3], 0  ;;  %s5330_s0 = inlined_call_operand.vmem [shape: f32[128,2], index: 0, kind: input, shape index: {}]   ;;  %s5331_s1 = inlined_call_operand.vmem [shape: f32[2,32], index: 1, kind: input, shape index: {}]   ;;  %s5332_s2 = inlined_call_operand.vmem [shape: f32[32,256], index: 2, kind: input, shape index: {}]   ;;  %s5333_s3 = inlined_call_operand.hbm [shape: f32[128,256], index: 3, kind: input, shape index: {}]   ;;  %s5334_s4 = inlined_call_operand.hbm [shape: bf16[256,512], index: 4, kind: input, shape index: {}]   ;;  %s5335_s5 = inlined_call_operand.hbm [shape: bf16[128,512], index: 5, kind: input, shape index: {}]   ;;  %s5336_s6 = inlined_call_operand.vmem [shape: f32[1,512], index: 6, kind: input, shape index: {}]   ;;  %s5337_s7 = inlined_call_operand.hbm [shape: f32[2,4,128], index: 7, kind: output, shape index: {}]  }
   0x1   :  { %13 = vsyncpa [#allocation6], 0 }
   0x2   :  { %14 = vsyncpa [#allocation4], 0  ;;  %s4032_s24 = smov [#allocation5]   ;;  %s4033_s26 = smov [#allocation2]  }
   0x3   :  { %s38_s25 = sshll.u32 %s4032_s24, 4  ;;  %s26_s27 = sshll.u32 %s4033_s26, 4  ;;  %s39_s25 = int_to_ptr.vmem [resolvable:$true] %s38_s25  ;;  %s4082_s27 = int_to_ptr.vmem [resolvable:$true] %s26_s27 }
   0x4   :  { %s3938_s30 = scalar_lea.hbm %s5334_s4, 8192 }
   0x5   :  { %p3939_p0 = scmp.ne.s32.totalorder %s5334_s4, %s3938_s30  ;;  %p3942_p1 = scmp.lt.u32.totalorder %s3938_s30, %s5334_s4 }
   0x7   :  { %p3944_p2 = pnand %p3942_p1, %p3939_p0 }
   0x9   :  { %3947 = shalt.err (!%p3944_p2)
}
   0xa   :  { %s3948_s12 = scalar_lea.vmem %s39_s25, 8192  ;;  %p3953_p4 = scmp.lt.s32.totalorder %s39_s25, %s39_s25 }
   0xb   :  { %p3949_p3 = scmp.ne.s32.totalorder %s39_s25, %s3948_s12  ;;  %p3954_p5 = scmp.lt.s32.totalorder %s3948_s12, %s3948_s12 }
   0xd   :  { %p3955_p6 = por %p3954_p5, %p3953_p4 }
   0xf   :  { %p3956_p7 = pnand %p3955_p6, %p3949_p3 }
  0x11   :  { %3959 = shalt.err (!%p3956_p7)
}
  0x12   :  { %s4034_s13 = smov 256   ;;  %s4035_s14 = smov 16  }
  0x13   :  { %44 = dma.hbm_to_vmem [thread:$0]  %s5334_s4, 8192, %s39_s25, [#allocation6], %s4034_s13, %s4034_s13, %s4035_s14  }
  0x14   :  { %s3960_s19 = scalar_lea.hbm %s5333_s3, 4096 }
  0x15   :  { %p3961_p8 = scmp.ne.s32.totalorder %s5333_s3, %s3960_s19  ;;  %p3964_p9 = scmp.lt.u32.totalorder %s3960_s19, %s5333_s3 }
  0x17   :  { %p3966_p10 = pnand %p3964_p9, %p3961_p8 }
  0x19   :  { %3969 = shalt.err (!%p3966_p10)
}
  0x1a   :  { %s3970_s24 = scalar_lea.vmem %s4082_s27, 4096  ;;  %p3975_p12 = scmp.lt.s32.totalorder %s4082_s27, %s4082_s27 }
  0x1b   :  { %p3971_p11 = scmp.ne.s32.totalorder %s4082_s27, %s3970_s24  ;;  %p3976_p13 = scmp.lt.s32.totalorder %s3970_s24, %s3970_s24 }
  0x1d   :  { %p3977_p0 = por %p3976_p13, %p3975_p12 }
  0x1f   :  { %p3978_p1 = pnand %p3977_p0, %p3971_p11 }
  0x21   :  { %3981 = shalt.err (!%p3978_p1)
}
  0x22   :  { %32 = dma.hbm_to_vmem [thread:$0]  %s5333_s3, 4096, %s4082_s27, [#allocation3], %s4034_s13, %s4034_s13, %s4035_s14  }
  0x23   :  { %s4036_s26 = smov [#allocation7]   ;;  %s3982_s8 = scalar_lea.hbm %s5335_s5, 4096 }
  0x24   :  { %s50_s28 = sshll.u32 %s4036_s26, 4  ;;  %p3983_p2 = scmp.ne.s32.totalorder %s5335_s5, %s3982_s8  ;;  %s51_s28 = int_to_ptr.vmem [resolvable:$true] %s50_s28 }
  0x25   :  { %p3986_p3 = scmp.lt.u32.totalorder %s3982_s8, %s5335_s5 }
  0x27   :  { %p3988_p4 = pnand %p3986_p3, %p3983_p2 }
  0x29   :  { %3991 = shalt.err (!%p3988_p4)
}
  0x2a   :  { %s3992_s15 = scalar_lea.vmem %s51_s28, 4096  ;;  %p3997_p6 = scmp.lt.s32.totalorder %s51_s28, %s51_s28 }
  0x2b   :  { %p3993_p5 = scmp.ne.s32.totalorder %s51_s28, %s3992_s15  ;;  %p3998_p7 = scmp.lt.s32.totalorder %s3992_s15, %s3992_s15 }
  0x2d   :  { %p3999_p8 = por %p3998_p7, %p3997_p6 }
  0x2f   :  { %p4000_p9 = pnand %p3999_p8, %p3993_p5 }
  0x31   :  { %4003 = shalt.err (!%p4000_p9)
}
  0x32   :  { %56 = dma.hbm_to_vmem [thread:$0]  %s5335_s5, 4096, %s51_s28, [#allocation6], %s4034_s13, %s4034_s13, %s4035_s14  }
  0x33   :  { %4026 = dma.done.wait [#allocation3], 4096  }
  0x34   :  { %4027 = vsyncadd [#allocation3], 4294963200 }
  0x35   :  { %4028 = dma.done.wait [#allocation6], 12288  }
  0x36   :  { %4029 = vsyncadd [#allocation6], 4294955008  ;;  %vm135_vm0 = vcmask 1041408   ;;  %vm86_vm1 = vcmask 15360   ;;  %v85_v0 = vld [vmem:[%s5331_s1] sm:$0x3] }
  0x37   :  { %v69_v1 = vld [vmem:[%s5330_s0] sm:$0xff]  ;;  %v70_v2 = vld [vmem:[%s5330_s0 + $0x8] sm:$0xff]  ;;  %3430 = vmatprep.subr.msk.mxu0 %vm135_vm0, %v85_v0  ;;  %v71_v3 = vld [vmem:[%s5330_s0 + $0x10] sm:$0xff]  ;;  %v4037_v29 = vmov 0.0   ;;  %vm292_vm2 = vcmask 261120  }
  0x38   :  { %3432 = vmatprep.mubr.msk.f32.mxu0 %vm86_vm1, %v69_v1  ;;  %3431 = vmatpush3.msk.msra.mxu0 %vm135_vm0, %v85_v0  ;;  %v72_v4 = vld [vmem:[%s5330_s0 + $0x18] sm:$0xff]  ;;  %v73_v5 = vld [vmem:[%s5330_s0 + $0x20] sm:$0xff]  ;;  %v285_v6 = vld [vmem:[%s5332_s2 + $0x8] sm:$0xff] }
  0x39   :  { %3433 = vmatmul.mubr.msk.f32.vlgmr.msra.gmra.mrb[0].mxu0 %vm86_vm1, %v70_v2  ;;  %v74_v7 = vld [vmem:[%s5330_s0 + $0x28] sm:$0xff]  ;;  %v287_v8 = vld [vmem:[%s5332_s2 + $0x18] sm:$0xff]  ;;  %v284_v9 = vld [vmem:[%s5332_s2] sm:$0xff]  ;;  %405 = vmatprep.mubr.f32.mxu1 %v4037_v29 }
  0x3a   :  { %3435 = vmatprep.mubr.msk.f32.mxu0 %vm86_vm1, %v71_v3  ;;  %v286_v10 = vld [vmem:[%s5332_s2 + $0x10] sm:$0xff]  ;;  %v3456_v12 = vpack.c.bf16 %v287_v8, %v285_v6  ;;  %v289_v14 = vld [vmem:[%s5332_s2 + $0x28] sm:$0xff]  ;;  %v291_v15 = vld [vmem:[%s5332_s2 + $0x38] sm:$0xff] }
  0x3b   :  { %v75_v11 = vld [vmem:[%s5330_s0 + $0x30] sm:$0xff]  ;;  %v3458_v13 = vpack.c.bf16 %v286_v10, %v284_v9  ;;  %v288_v16 = vld [vmem:[%s5332_s2 + $0x20] sm:$0xff]  ;;  %v3460_v17 = vpack.c.bf16 %v291_v15, %v289_v14  ;;  %v76_v19 = vld [vmem:[%s5330_s0 + $0x38] sm:$0xff] }
  0x3c   :  { %v290_v18 = vld [vmem:[%s5332_s2 + $0x30] sm:$0xff]  ;;  %3457 = vmatprep.subr.bf16.mxu1 %v3456_v12  ;;  %v77_v21 = vld [vmem:[%s5330_s0 + $0x40] sm:$0xff]  ;;  %v78_v22 = vld [vmem:[%s5330_s0 + $0x48] sm:$0xff] }
  0x3d   :  { %3436 = vmatmul.mubr.msk.f32.gmra.mrb[2].mxu0 %vm86_vm1, %v72_v4  ;;  %3459 = vmatpush1.bf16.msra.mxu1 %v3458_v13  ;;  %v3462_v20 = vpack.c.bf16 %v290_v18, %v288_v16  ;;  %v79_v23 = vld [vmem:[%s5330_s0 + $0x50] sm:$0xff]  ;;  %v80_v24 = vld [vmem:[%s5330_s0 + $0x58] sm:$0xff]  ;;  %v81_v25 = vld [vmem:[%s5330_s0 + $0x60] sm:$0xff] }
  0x3e   :  { %3438 = vmatprep.mubr.msk.f32.mxu0 %vm86_vm1, %v73_v5  ;;  %3461 = vmatprep.subr.bf16.mxu1 %v3460_v17  ;;  %v82_v26 = vld [vmem:[%s5330_s0 + $0x68] sm:$0xff]  ;;  %v83_v27 = vld [vmem:[%s5330_s0 + $0x70] sm:$0xff]  ;;  %v84_v28 = vld [vmem:[%s5330_s0 + $0x78] sm:$0xff] }
  0x3f   :  { %v3474_v30 = vld [vmem:[#allocation5] ss:$16 sps:$4 sm:$0xff]   ;;  %v3476_v31 = vld [vmem:[#allocation5 + $0x4] ss:$16 sps:$4 sm:$0xff]   ;;  %v3479_v32 = vld [vmem:[#allocation5 + $0xc] ss:$16 sps:$4 sm:$0xff]  }
  0x40   :  { %v3482_v33 = vld [vmem:[#allocation5 + $0x24] ss:$16 sps:$4 sm:$0xff]   ;;  %1020 = vmatprep.subr.bf16.mxu0 %v3476_v31  ;;  %v3480_v34 = vld [vmem:[#allocation5 + $0x20] ss:$16 sps:$4 sm:$0xff]   ;;  %v3477_v57 = vld [vmem:[#allocation5 + $0x8] ss:$16 sps:$4 sm:$0xff]  }
  0x41   :  { %3439 = vmatmul.mubr.msk.f32.gmra.mrb[4].mxu0 %vm86_vm1, %v74_v7  ;;  %3463 = vmatpush1.bf16.msra.mxu1 %v3462_v20  ;;  %v3488_v35 = vld [vmem:[#allocation5 + $0x44] ss:$16 sps:$4 sm:$0xff]   ;;  %v3486_v36 = vld [vmem:[#allocation5 + $0x40] ss:$16 sps:$4 sm:$0xff]   ;;  %v3485_v59 = vld [vmem:[#allocation5 + $0x2c] ss:$16 sps:$4 sm:$0xff]  }
  0x42   :  { %3441 = vmatprep.mubr.msk.f32.mxu0 %vm86_vm1, %v75_v11  ;;  %1021 = vmatpush1.bf16.msra.mxu0 %v3474_v30  ;;  %v3494_v37 = vld [vmem:[#allocation5 + $0x64] ss:$16 sps:$4 sm:$0xff]   ;;  %v3492_v38 = vld [vmem:[#allocation5 + $0x60] ss:$16 sps:$4 sm:$0xff]   ;;  %v3483_v61 = vld [vmem:[#allocation5 + $0x28] ss:$16 sps:$4 sm:$0xff]  }
  0x43   :  { %1133 = vmatprep.subr.bf16.mxu1 %v3479_v32  ;;  %1022 = vmatprep.subr.bf16.mxu0 %v3482_v33  ;;  %v3500_v39 = vld [vmem:[#allocation5 + $0x84] ss:$16 sps:$4 sm:$0xff]   ;;  %v3498_v40 = vld [vmem:[#allocation5 + $0x80] ss:$16 sps:$4 sm:$0xff]   ;;  %v3491_v63 = vld [vmem:[#allocation5 + $0x4c] ss:$16 sps:$4 sm:$0xff]  }
  0x44   :  { %v3506_v41 = vld [vmem:[#allocation5 + $0xa4] ss:$16 sps:$4 sm:$0xff]   ;;  %v3504_v42 = vld [vmem:[#allocation5 + $0xa0] ss:$16 sps:$4 sm:$0xff]   ;;  %v3489_v1 = vld [vmem:[#allocation5 + $0x48] ss:$16 sps:$4 sm:$0xff]  }
  0x45   :  { %3442 = vmatmul.mubr.msk.f32.gmra.mrb[6].mxu0 %vm86_vm1, %v76_v19  ;;  %v3512_v43 = vld [vmem:[#allocation5 + $0xc4] ss:$16 sps:$4 sm:$0xff]   ;;  %v3510_v44 = vld [vmem:[#allocation5 + $0xc0] ss:$16 sps:$4 sm:$0xff]   ;;  %v3497_v3 = vld [vmem:[#allocation5 + $0x6c] ss:$16 sps:$4 sm:$0xff]  }
  0x46   :  { %3444 = vmatprep.mubr.msk.f32.mxu0 %vm86_vm1, %v77_v21  ;;  %1023 = vmatpush1.bf16.msra.mxu0 %v3480_v34  ;;  %v3518_v45 = vld [vmem:[#allocation5 + $0xe4] ss:$16 sps:$4 sm:$0xff]   ;;  %v3516_v46 = vld [vmem:[#allocation5 + $0xe0] ss:$16 sps:$4 sm:$0xff]   ;;  %v3495_v5 = vld [vmem:[#allocation5 + $0x68] ss:$16 sps:$4 sm:$0xff]  }
  0x47   :  { %1024 = vmatprep.subr.bf16.mxu0 %v3488_v35  ;;  %v3524_v47 = vld [vmem:[#allocation5 + $0x104] ss:$16 sps:$4 sm:$0xff]   ;;  %v3522_v48 = vld [vmem:[#allocation5 + $0x100] ss:$16 sps:$4 sm:$0xff]   ;;  %v3503_v7 = vld [vmem:[#allocation5 + $0x8c] ss:$16 sps:$4 sm:$0xff]  }
  0x48   :  { %v3530_v49 = vld [vmem:[#allocation5 + $0x124] ss:$16 sps:$4 sm:$0xff]   ;;  %v3528_v50 = vld [vmem:[#allocation5 + $0x120] ss:$16 sps:$4 sm:$0xff]   ;;  %v3501_v9 = vld [vmem:[#allocation5 + $0x88] ss:$16 sps:$4 sm:$0xff]  }
  0x49   :  { %3445 = vmatmul.mubr.msk.f32.gmra.mrb[8].mxu0 %vm86_vm1, %v78_v22  ;;  %v3536_v51 = vld [vmem:[#allocation5 + $0x144] ss:$16 sps:$4 sm:$0xff]   ;;  %v3534_v52 = vld [vmem:[#allocation5 + $0x140] ss:$16 sps:$4 sm:$0xff]   ;;  %v3509_v11 = vld [vmem:[#allocation5 + $0xac] ss:$16 sps:$4 sm:$0xff]  }
  0x4a   :  { %3447 = vmatprep.mubr.msk.f32.mxu0 %vm86_vm1, %v79_v23  ;;  %1025 = vmatpush1.bf16.msra.mxu0 %v3486_v36  ;;  %v3542_v53 = vld [vmem:[#allocation5 + $0x164] ss:$16 sps:$4 sm:$0xff]   ;;  %v3540_v54 = vld [vmem:[#allocation5 + $0x160] ss:$16 sps:$4 sm:$0xff]   ;;  %v3507_v13 = vld [vmem:[#allocation5 + $0xa8] ss:$16 sps:$4 sm:$0xff]  }
  0x4b   :  { %1026 = vmatprep.subr.bf16.mxu0 %v3494_v37  ;;  %v3548_v55 = vld [vmem:[#allocation5 + $0x184] ss:$16 sps:$4 sm:$0xff]   ;;  %v3546_v56 = vld [vmem:[#allocation5 + $0x180] ss:$16 sps:$4 sm:$0xff]   ;;  %v3515_v15 = vld [vmem:[#allocation5 + $0xcc] ss:$16 sps:$4 sm:$0xff]  }
  0x4c   :  { %v3513_v17 = vld [vmem:[#allocation5 + $0xc8] ss:$16 sps:$4 sm:$0xff]   ;;  %v3521_v19 = vld [vmem:[#allocation5 + $0xec] ss:$16 sps:$4 sm:$0xff]   ;;  %v3554_v35 = vld [vmem:[#allocation5 + $0x1a4] ss:$16 sps:$4 sm:$0xff]  }
  0x4d   :  { %3448 = vmatmul.mubr.msk.f32.gmra.mrb[10].mxu0 %vm86_vm1, %v80_v24  ;;  %v3519_v21 = vld [vmem:[#allocation5 + $0xe8] ss:$16 sps:$4 sm:$0xff]   ;;  %v3527_v23 = vld [vmem:[#allocation5 + $0x10c] ss:$16 sps:$4 sm:$0xff]   ;;  %v3552_v37 = vld [vmem:[#allocation5 + $0x1a0] ss:$16 sps:$4 sm:$0xff]  }
  0x4e   :  { %3450 = vmatprep.mubr.msk.f32.mxu0 %vm86_vm1, %v81_v25  ;;  %1027 = vmatpush1.bf16.msra.mxu0 %v3492_v38  ;;  %v3525_v25 = vld [vmem:[#allocation5 + $0x108] ss:$16 sps:$4 sm:$0xff]   ;;  %v3545_v31 = vld [vmem:[#allocation5 + $0x16c] ss:$16 sps:$4 sm:$0xff]  }
  0x4f   :  { %1028 = vmatprep.subr.bf16.mxu0 %v3500_v39  ;;  %v3537_v30 = vld [vmem:[#allocation5 + $0x148] ss:$16 sps:$4 sm:$0xff]   ;;  %v3551_v33 = vld [vmem:[#allocation5 + $0x18c] ss:$16 sps:$4 sm:$0xff]   ;;  %v3560_v39 = vld [vmem:[#allocation5 + $0x1c4] ss:$16 sps:$4 sm:$0xff]  }
  0x50   :  { %v3543_v32 = vld [vmem:[#allocation5 + $0x168] ss:$16 sps:$4 sm:$0xff]   ;;  %v3557_v36 = vld [vmem:[#allocation5 + $0x1ac] ss:$16 sps:$4 sm:$0xff]  }
  0x51   :  { %3451 = vmatmul.mubr.msk.f32.gmra.mrb[12].mxu0 %vm86_vm1, %v82_v26  ;;  %v3533_v26 = vld [vmem:[#allocation5 + $0x12c] ss:$16 sps:$4 sm:$0xff]   ;;  %v3549_v34 = vld [vmem:[#allocation5 + $0x188] ss:$16 sps:$4 sm:$0xff]  }
  0x52   :  { %3453 = vmatprep.mubr.msk.f32.mxu0 %vm86_vm1, %v83_v27  ;;  %1029 = vmatpush1.bf16.msra.mxu0 %v3498_v40  ;;  %v3531_v27 = vld [vmem:[#allocation5 + $0x128] ss:$16 sps:$4 sm:$0xff]   ;;  %v3563_v40 = vld [vmem:[#allocation5 + $0x1cc] ss:$16 sps:$4 sm:$0xff]  }
  0x53   :  { %1030 = vmatprep.subr.bf16.mxu0 %v3506_v41  ;;  %v3555_v38 = vld [vmem:[#allocation5 + $0x1a8] ss:$16 sps:$4 sm:$0xff]   ;;  %v3558_v41 = vld [vmem:[#allocation5 + $0x1c0] ss:$16 sps:$4 sm:$0xff]  }
  0x55   :  { %3454 = vmatmul.mubr.msk.f32.gmra.mrb[14].mxu0 %vm86_vm1, %v84_v28  ;;  %v3539_v28 = vld [vmem:[#allocation5 + $0x14c] ss:$16 sps:$4 sm:$0xff]  }
  0x56   :  { %1031 = vmatpush1.bf16.msra.mxu0 %v3504_v42  ;;  %v3561_v42 = vld [vmem:[#allocation5 + $0x1c8] ss:$16 sps:$4 sm:$0xff]  }
  0x57   :  { %1032 = vmatprep.subr.bf16.mxu0 %v3512_v43  ;;  %v3566_v43 = vld [vmem:[#allocation5 + $0x1e4] ss:$16 sps:$4 sm:$0xff]  }
  0x5a   :  { %1033 = vmatpush1.bf16.msra.mxu0 %v3510_v44  ;;  %v3564_v44 = vld [vmem:[#allocation5 + $0x1e0] ss:$16 sps:$4 sm:$0xff]  }
  0x5b   :  { %1034 = vmatprep.subr.bf16.mxu0 %v3518_v45  ;;  %v3567_v45 = vld [vmem:[#allocation5 + $0x1e8] ss:$16 sps:$4 sm:$0xff]  }
  0x5e   :  { %1035 = vmatpush1.bf16.msra.mxu0 %v3516_v46  ;;  %v4257_v46 = vld [vmem:[#allocation7 + $0x4] ss:$16 sps:$4 sm:$0xff]  }
  0x5f   :  { %1036 = vmatprep.subr.bf16.mxu0 %v3524_v47  ;;  %v4260_v47 = vld [vmem:[#allocation7 + $0xc] ss:$16 sps:$4 sm:$0xff]  }
  0x62   :  { %1037 = vmatpush1.bf16.msra.mxu0 %v3522_v48 }
  0x63   :  { %1038 = vmatprep.subr.bf16.mxu0 %v3530_v49 }
  0x66   :  { %1039 = vmatpush1.bf16.msra.mxu0 %v3528_v50 }
  0x67   :  { %1040 = vmatprep.subr.bf16.mxu0 %v3536_v51  ;;  %v534_v51 = vld [vmem:[#allocation2] sm:$0xff] }
  0x6a   :  { %1041 = vmatpush1.bf16.msra.mxu0 %v3534_v52 }
  0x6b   :  { %1042 = vmatprep.subr.bf16.mxu0 %v3542_v53 }
  0x6e   :  { %1043 = vmatpush1.bf16.msra.mxu0 %v3540_v54  ;;  %v536_v54 = vld [vmem:[#allocation2 + $0x10] sm:$0xff] }
  0x6f   :  { %1044 = vmatprep.subr.bf16.mxu0 %v3548_v55  ;;  %v535_v55 = vld [vmem:[#allocation2 + $0x8] sm:$0xff] }
  0x72   :  { %1045 = vmatpush1.bf16.msra.mxu0 %v3546_v56 }
  0x73   :  { %1046 = vmatprep.subr.bf16.mxu0 %v3554_v35  ;;  %v4293_v35 = vld [vmem:[#allocation7 + $0x6c] ss:$16 sps:$4 sm:$0xff]  }
  0x76   :  { %1047 = vmatpush1.bf16.msra.mxu0 %v3552_v37 }
  0x77   :  { %1048 = vmatprep.subr.bf16.mxu0 %v3560_v39  ;;  %v544_v39 = vld [vmem:[#allocation2 + $0x50] sm:$0xff] }
  0x7a   :  { %1049 = vmatpush1.bf16.msra.mxu0 %v3558_v41 }
  0x7b   :  { %1050 = vmatprep.subr.bf16.mxu0 %v3566_v43  ;;  %v545_v43 = vld [vmem:[#allocation2 + $0x58] sm:$0xff] }
  0x7e   :  { %1051 = vmatpush1.bf16.msra.mxu0 %v3564_v44  ;;  %v4296_v44 = vld [vmem:[#allocation7 + $0x60] ss:$16 sps:$4 sm:$0xff]  }
  0x7f   :  { %1438 = vmatprep.subr.bf16.mxu0 %v4257_v46 }
 0x10c   :  { %v3434_v58 = vpop.f32.mrb[0].mxu0 }
 0x10d   :  { %v205_v60 = vpop.f32.mrb[1].mxu0 }
 0x10e   :  { %3253 = vmatmul.mubr.msk.f32.vlgmr.msra.gmra.mrb[0].mxu1 %vm292_vm2, %v205_v60 }
 0x10f   :  { %411 = vmatprep.mubr.f32.mxu1 %v4037_v29  ;;  %1134 = vmatpush1.bf16.msra.mxu1 %v3477_v57 }
 0x110   :  { %v3437_v62 = vpop.f32.mrb[2].mxu0  ;;  %1135 = vmatprep.subr.bf16.mxu1 %v3485_v59 }
 0x111   :  { %v215_v0 = vpop.f32.mrb[3].mxu0 }
 0x112   :  { %3254 = vmatmul.mubr.msk.f32.gmra.mrb[2].mxu1 %vm292_vm2, %v3434_v58  ;;  %v537_v58 = vld [vmem:[#allocation2 + $0x18] sm:$0xff] }
 0x113   :  { %417 = vmatprep.mubr.f32.mxu1 %v4037_v29  ;;  %1136 = vmatpush1.bf16.msra.mxu1 %v3483_v61 }
 0x114   :  { %v3440_v2 = vpop.f32.mrb[4].mxu0  ;;  %1137 = vmatprep.subr.bf16.mxu1 %v3491_v63 }
 0x115   :  { %v225_v4 = vpop.f32.mrb[5].mxu0 }
 0x116   :  { %3255 = vmatmul.mubr.msk.f32.gmra.mrb[4].mxu1 %vm292_vm2, %v215_v0 }
 0x117   :  { %423 = vmatprep.mubr.f32.mxu1 %v4037_v29  ;;  %1138 = vmatpush1.bf16.msra.mxu1 %v3489_v1 }
 0x118   :  { %v3443_v6 = vpop.f32.mrb[6].mxu0  ;;  %1139 = vmatprep.subr.bf16.mxu1 %v3497_v3 }
 0x119   :  { %v235_v8 = vpop.f32.mrb[7].mxu0 }
 0x11a   :  { %3256 = vmatmul.mubr.msk.f32.gmra.mrb[6].mxu1 %vm292_vm2, %v3437_v62 }
 0x11b   :  { %429 = vmatprep.mubr.f32.mxu1 %v4037_v29  ;;  %1140 = vmatpush1.bf16.msra.mxu1 %v3495_v5  ;;  %v4265_v5 = vld [vmem:[#allocation7 + $0x8] ss:$16 sps:$4 sm:$0xff]  }
 0x11c   :  { %v3446_v10 = vpop.f32.mrb[8].mxu0  ;;  %1141 = vmatprep.subr.bf16.mxu1 %v3503_v7  ;;  %v4267_v7 = vld [vmem:[#allocation7 + $0x24] ss:$16 sps:$4 sm:$0xff]  }
 0x11d   :  { %v245_v12 = vpop.f32.mrb[9].mxu0 }
 0x11e   :  { %3257 = vmatmul.mubr.msk.f32.gmra.mrb[8].mxu1 %vm292_vm2, %v225_v4  ;;  %v4263_v4 = vld [vmem:[#allocation7] ss:$16 sps:$4 sm:$0xff]  }
 0x11f   :  { %435 = vmatprep.mubr.f32.mxu1 %v4037_v29  ;;  %1142 = vmatpush1.bf16.msra.mxu1 %v3501_v9  ;;  %v538_v9 = vld [vmem:[#allocation2 + $0x20] sm:$0xff] }
 0x120   :  { %v3449_v14 = vpop.f32.mrb[10].mxu0  ;;  %1143 = vmatprep.subr.bf16.mxu1 %v3509_v11 }
 0x121   :  { %v255_v16 = vpop.f32.mrb[11].mxu0 }
 0x122   :  { %3258 = vmatmul.mubr.msk.f32.gmra.mrb[10].mxu1 %vm292_vm2, %v3440_v2 }
 0x123   :  { %441 = vmatprep.mubr.f32.mxu1 %v4037_v29  ;;  %1144 = vmatpush1.bf16.msra.mxu1 %v3507_v13  ;;  %v539_v13 = vld [vmem:[#allocation2 + $0x28] sm:$0xff] }
 0x124   :  { %v3452_v18 = vpop.f32.mrb[12].mxu0  ;;  %1145 = vmatprep.subr.bf16.mxu1 %v3515_v15 }
 0x125   :  { %v265_v20 = vpop.f32.mrb[13].mxu0 }
 0x126   :  { %3259 = vmatmul.mubr.msk.f32.gmra.mrb[12].mxu1 %vm292_vm2, %v235_v8  ;;  %v4269_v8 = vld [vmem:[#allocation7 + $0x2c] ss:$16 sps:$4 sm:$0xff]  }
 0x127   :  { %447 = vmatprep.mubr.f32.mxu1 %v4037_v29  ;;  %1146 = vmatpush1.bf16.msra.mxu1 %v3513_v17 }
 0x128   :  { %v3455_v22 = vpop.f32.mrb[14].mxu0  ;;  %1147 = vmatprep.subr.bf16.mxu1 %v3521_v19  ;;  %v4275_v19 = vld [vmem:[#allocation7 + $0x28] ss:$16 sps:$4 sm:$0xff]  }
 0x129   :  { %v275_v24 = vpop.f32.mrb[15].mxu0 }
 0x12a   :  { %3260 = vmatmul.mubr.msk.f32.gmra.mrb[14].mxu1 %vm292_vm2, %v3443_v6 }
 0x12b   :  { %453 = vmatprep.mubr.f32.mxu1 %v4037_v29  ;;  %1148 = vmatpush1.bf16.msra.mxu1 %v3519_v21 }
 0x12c   :  { %1149 = vmatprep.subr.bf16.mxu1 %v3527_v23  ;;  %v4281_v23 = vld [vmem:[#allocation7 + $0x4c] ss:$16 sps:$4 sm:$0xff]  }
 0x12e   :  { %3261 = vmatmul.mubr.msk.f32.gmra.mrb[16].mxu1 %vm292_vm2, %v245_v12  ;;  %v540_v12 = vld [vmem:[#allocation2 + $0x30] sm:$0xff] }
 0x12f   :  { %459 = vmatprep.mubr.f32.mxu1 %v4037_v29  ;;  %1150 = vmatpush1.bf16.msra.mxu1 %v3525_v25 }
 0x130   :  { %1151 = vmatprep.subr.bf16.mxu1 %v3533_v26 }
 0x132   :  { %3262 = vmatmul.mubr.msk.f32.gmra.mrb[18].mxu1 %vm292_vm2, %v3446_v10 }
 0x133   :  { %465 = vmatprep.mubr.f32.mxu1 %v4037_v29  ;;  %1152 = vmatpush1.bf16.msra.mxu1 %v3531_v27 }
 0x134   :  { %1153 = vmatprep.subr.bf16.mxu1 %v3539_v28 }
 0x136   :  { %3263 = vmatmul.mubr.msk.f32.gmra.mrb[20].mxu1 %vm292_vm2, %v255_v16  ;;  %v541_v16 = vld [vmem:[#allocation2 + $0x38] sm:$0xff] }
 0x137   :  { %471 = vmatprep.mubr.f32.mxu1 %v4037_v29  ;;  %1154 = vmatpush1.bf16.msra.mxu1 %v3537_v30 }
 0x138   :  { %1155 = vmatprep.subr.bf16.mxu1 %v3545_v31  ;;  %v4284_v31 = vld [vmem:[#allocation7 + $0x40] ss:$16 sps:$4 sm:$0xff]  }
 0x13a   :  { %3264 = vmatmul.mubr.msk.f32.gmra.mrb[22].mxu1 %vm292_vm2, %v3449_v14 }
 0x13b   :  { %477 = vmatprep.mubr.f32.mxu1 %v4037_v29  ;;  %1156 = vmatpush1.bf16.msra.mxu1 %v3543_v32  ;;  %v4287_v32 = vld [vmem:[#allocation7 + $0x48] ss:$16 sps:$4 sm:$0xff]  }
 0x13c   :  { %1157 = vmatprep.subr.bf16.mxu1 %v3551_v33 }
 0x13e   :  { %3265 = vmatmul.mubr.msk.f32.gmra.mrb[24].mxu1 %vm292_vm2, %v265_v20 }
 0x13f   :  { %483 = vmatprep.mubr.f32.mxu1 %v4037_v29  ;;  %1158 = vmatpush1.bf16.msra.mxu1 %v3549_v34  ;;  %v4290_v34 = vld [vmem:[#allocation7 + $0x64] ss:$16 sps:$4 sm:$0xff]  }
 0x140   :  { %1159 = vmatprep.subr.bf16.mxu1 %v3557_v36  ;;  %v542_v36 = vld [vmem:[#allocation2 + $0x40] sm:$0xff] }
 0x142   :  { %3266 = vmatmul.mubr.msk.f32.gmra.mrb[26].mxu1 %vm292_vm2, %v3452_v18  ;;  %v4272_v18 = vld [vmem:[#allocation7 + $0x20] ss:$16 sps:$4 sm:$0xff]  }
 0x143   :  { %489 = vmatprep.mubr.f32.mxu1 %v4037_v29  ;;  %1160 = vmatpush1.bf16.msra.mxu1 %v3555_v38 }
 0x144   :  { %1161 = vmatprep.subr.bf16.mxu1 %v3563_v40  ;;  %v543_v40 = vld [vmem:[#allocation2 + $0x48] sm:$0xff] }
 0x146   :  { %3267 = vmatmul.mubr.msk.f32.gmra.mrb[28].mxu1 %vm292_vm2, %v275_v24 }
 0x147   :  { %495 = vmatprep.mubr.f32.mxu1 %v4037_v29  ;;  %1162 = vmatpush1.bf16.msra.mxu1 %v3561_v42  ;;  %v3569_v29 = vld [vmem:[#allocation5 + $0x1ec] ss:$16 sps:$4 sm:$0xff]  }
 0x148   :  { %1163 = vmatprep.subr.bf16.mxu1 %v3569_v29 }
 0x14a   :  { %3268 = vmatmul.mubr.msk.f32.gmra.mrb[30].mxu1 %vm292_vm2, %v3455_v22  ;;  %v4278_v22 = vld [vmem:[#allocation7 + $0x44] ss:$16 sps:$4 sm:$0xff]  }
 0x14b   :  { %1164 = vmatpush1.bf16.msra.mxu1 %v3567_v45  ;;  %v4299_v45 = vld [vmem:[#allocation7 + $0x68] ss:$16 sps:$4 sm:$0xff]  }
 0x14c   :  { %1479 = vmatprep.subr.bf16.mxu1 %v4260_v47 }
 0x1e1   :  { %v407_v48 = vpop.f32.mrb[0].mxu1 }
 0x1e2   :  { %v409_v49 = vpop.f32.mrb[1].mxu1  ;;  %v502_v50 = vmax.f32 %v407_v48, 0.0 }
 0x1e3   :  { %v503_v52 = vmax.f32 %v409_v49, 0.0 }
 0x1e4   :  { %v566_v60 = vmul.f32 %v534_v51, %v502_v50  ;;  %v4302_v50 = vld [vmem:[#allocation7 + $0x84] ss:$16 sps:$4 sm:$0xff]   ;;  %v4305_v51 = vld [vmem:[#allocation7 + $0x8c] ss:$16 sps:$4 sm:$0xff]  }
 0x1e5   :  { %v413_v53 = vpop.f32.mrb[2].mxu1  ;;  %v567_v62 = vmul.f32 %v535_v55, %v503_v52 }
 0x1e6   :  { %v504_v56 = vmax.f32 %v413_v53, 0.0  ;;  %v415_v57 = vpop.f32.mrb[3].mxu1 }
 0x1e7   :  { %v505_v59 = vmax.f32 %v415_v57, 0.0 }
 0x1e8   :  { %v568_v61 = vmul.f32 %v536_v54, %v504_v56 }
 0x1e9   :  { %v569_v63 = vmul.f32 %v537_v58, %v505_v59  ;;  %v419_v0 = vpop.f32.mrb[4].mxu1  ;;  %v4308_v58 = vld [vmem:[#allocation7 + $0x80] ss:$16 sps:$4 sm:$0xff]   ;;  %v4311_v59 = vld [vmem:[#allocation7 + $0x88] ss:$16 sps:$4 sm:$0xff]  }
 0x1ea   :  { %v662_v1 = vpack.c.bf16 %v568_v61, %v566_v60  ;;  %v421_v2 = vpop.f32.mrb[5].mxu1  ;;  %v506_v6 = vmax.f32 %v419_v0, 0.0  ;;  %v4314_v61 = vld [vmem:[#allocation7 + $0xa4] ss:$16 sps:$4 sm:$0xff]  }
 0x1eb   :  { %v663_v3 = vpack.c.bf16 %v569_v63, %v567_v62  ;;  %v507_v10 = vmax.f32 %v421_v2, 0.0  ;;  %v4317_v62 = vld [vmem:[#allocation7 + $0xac] ss:$16 sps:$4 sm:$0xff]   ;;  %v546_v63 = vld [vmem:[#allocation2 + $0x60] sm:$0xff]  ;;  %v548_v2 = vld [vmem:[#allocation2 + $0x70] sm:$0xff] }
 0x1ec   :  { %v570_v20 = vmul.f32 %v538_v9, %v506_v6 }
 0x1ed   :  { %v425_v11 = vpop.f32.mrb[6].mxu1  ;;  %1052 = vmatprep.mubr.bf16.mxu0 %v663_v3  ;;  %1165 = vmatprep.mubr.bf16.mxu1 %v663_v3  ;;  %v571_v24 = vmul.f32 %v539_v13, %v507_v10  ;;  %v547_v3 = vld [vmem:[#allocation2 + $0x68] sm:$0xff]  ;;  %v549_v10 = vld [vmem:[#allocation2 + $0x78] sm:$0xff] }
 0x1ee   :  { %v508_v14 = vmax.f32 %v425_v11, 0.0  ;;  %v427_v15 = vpop.f32.mrb[7].mxu1  ;;  %1053 = vmatmul.mubr.bf16.vlgmr.msra.gmra.mrb[16].mxu0 %v662_v1  ;;  %1166 = vmatmul.mubr.bf16.vlgmr.msra.gmra.mrb[32].mxu1 %v662_v1  ;;  %v4323_v13 = vld [vmem:[#allocation7 + $0xa8] ss:$16 sps:$4 sm:$0xff]  }
 0x1ef   :  { %v509_v17 = vmax.f32 %v427_v15, 0.0  ;;  %1439 = vmatpush1.bf16.msra.mxu0 %v4263_v4  ;;  %1480 = vmatpush1.bf16.msra.mxu1 %v4265_v5 }
 0x1f0   :  { %v572_v21 = vmul.f32 %v540_v12, %v508_v14  ;;  %1440 = vmatprep.subr.bf16.mxu0 %v4267_v7  ;;  %1481 = vmatprep.subr.bf16.mxu1 %v4269_v8  ;;  %v4320_v12 = vld [vmem:[#allocation7 + $0xa0] ss:$16 sps:$4 sm:$0xff]  }
 0x1f1   :  { %v573_v25 = vmul.f32 %v541_v16, %v509_v17  ;;  %v431_v26 = vpop.f32.mrb[8].mxu1  ;;  %v4326_v16 = vld [vmem:[#allocation7 + $0xc4] ss:$16 sps:$4 sm:$0xff]   ;;  %v4329_v17 = vld [vmem:[#allocation7 + $0xcc] ss:$16 sps:$4 sm:$0xff]  }
 0x1f2   :  { %v433_v27 = vpop.f32.mrb[9].mxu1  ;;  %v664_v28 = vpack.c.bf16 %v572_v21, %v570_v20  ;;  %v510_v33 = vmax.f32 %v431_v26, 0.0 }
 0x1f3   :  { %v665_v30 = vpack.c.bf16 %v573_v25, %v571_v24  ;;  %1441 = vmatpush1.bf16.msra.mxu0 %v4272_v18  ;;  %1482 = vmatpush1.bf16.msra.mxu1 %v4275_v19  ;;  %v511_v37 = vmax.f32 %v433_v27, 0.0 }
 0x1f4   :  { %1442 = vmatprep.subr.bf16.mxu0 %v4278_v22  ;;  %1483 = vmatprep.subr.bf16.mxu1 %v4281_v23  ;;  %v574_v48 = vmul.f32 %v542_v36, %v510_v33  ;;  %v4338_v36 = vld [vmem:[#allocation7 + $0xe4] ss:$16 sps:$4 sm:$0xff]  }
 0x1f5   :  { %v437_v38 = vpop.f32.mrb[10].mxu1  ;;  %1062 = vmatprep.mubr.bf16.mxu0 %v665_v30  ;;  %1175 = vmatprep.mubr.bf16.mxu1 %v665_v30  ;;  %v575_v52 = vmul.f32 %v543_v40, %v511_v37  ;;  %v4335_v30 = vld [vmem:[#allocation7 + $0xc8] ss:$16 sps:$4 sm:$0xff]   ;;  %v4341_v37 = vld [vmem:[#allocation7 + $0xec] ss:$16 sps:$4 sm:$0xff]  }
 0x1f6   :  { %v512_v41 = vmax.f32 %v437_v38, 0.0  ;;  %v439_v42 = vpop.f32.mrb[11].mxu1  ;;  %1063 = vmatmul.mubr.bf16.gmra.mrb[20].mxu0 %v664_v28  ;;  %1176 = vmatmul.mubr.bf16.gmra.mrb[36].mxu1 %v664_v28  ;;  %v4332_v28 = vld [vmem:[#allocation7 + $0xc0] ss:$16 sps:$4 sm:$0xff]  }
 0x1f7   :  { %v513_v29 = vmax.f32 %v439_v42, 0.0  ;;  %1443 = vmatpush1.bf16.msra.mxu0 %v4284_v31  ;;  %1484 = vmatpush1.bf16.msra.mxu1 %v4287_v32  ;;  %v550_v38 = vld [vmem:[#allocation2 + $0x80] sm:$0xff]  ;;  %v551_v42 = vld [vmem:[#allocation2 + $0x88] sm:$0xff] }
 0x1f8   :  { %v576_v49 = vmul.f32 %v544_v39, %v512_v41  ;;  %1444 = vmatprep.subr.bf16.mxu0 %v4290_v34  ;;  %1485 = vmatprep.subr.bf16.mxu1 %v4293_v35  ;;  %v552_v41 = vld [vmem:[#allocation2 + $0x90] sm:$0xff] }
 0x1f9   :  { %v577_v53 = vmul.f32 %v545_v43, %v513_v29  ;;  %v443_v54 = vpop.f32.mrb[12].mxu1 }
 0x1fa   :  { %v445_v55 = vpop.f32.mrb[13].mxu1  ;;  %v666_v56 = vpack.c.bf16 %v576_v49, %v574_v48  ;;  %v514_v60 = vmax.f32 %v443_v54, 0.0  ;;  %v553_v48 = vld [vmem:[#allocation2 + $0x98] sm:$0xff] }
 0x1fb   :  { %v667_v57 = vpack.c.bf16 %v577_v53, %v575_v52  ;;  %1445 = vmatpush1.bf16.msra.mxu0 %v4296_v44  ;;  %1486 = vmatpush1.bf16.msra.mxu1 %v4299_v45  ;;  %v515_v0 = vmax.f32 %v445_v55, 0.0  ;;  %v4344_v52 = vld [vmem:[#allocation7 + $0xe0] ss:$16 sps:$4 sm:$0xff]   ;;  %v4347_v53 = vld [vmem:[#allocation7 + $0xe8] ss:$16 sps:$4 sm:$0xff]  }
 0x1fc   :  { %1446 = vmatprep.subr.bf16.mxu0 %v4302_v50  ;;  %1487 = vmatprep.subr.bf16.mxu1 %v4305_v51  ;;  %v578_v14 = vmul.f32 %v546_v63, %v514_v60 }
 0x1fd   :  { %v449_v1 = vpop.f32.mrb[14].mxu1  ;;  %1072 = vmatprep.mubr.bf16.mxu0 %v667_v57  ;;  %1185 = vmatprep.mubr.bf16.mxu1 %v667_v57  ;;  %v579_v20 = vmul.f32 %v547_v3, %v515_v0  ;;  %v554_v3 = vld [vmem:[#allocation2 + $0xa0] sm:$0xff] }
 0x1fe   :  { %v516_v6 = vmax.f32 %v449_v1, 0.0  ;;  %v451_v9 = vpop.f32.mrb[15].mxu1  ;;  %1073 = vmatmul.mubr.bf16.gmra.mrb[24].mxu0 %v666_v56  ;;  %1186 = vmatmul.mubr.bf16.gmra.mrb[40].mxu1 %v666_v56 }
 0x1ff   :  { %v517_v11 = vmax.f32 %v451_v9, 0.0  ;;  %1447 = vmatpush1.bf16.msra.mxu0 %v4308_v58  ;;  %1488 = vmatpush1.bf16.msra.mxu1 %v4311_v59 }
 0x200   :  { %v580_v15 = vmul.f32 %v548_v2, %v516_v6  ;;  %1448 = vmatprep.subr.bf16.mxu0 %v4314_v61  ;;  %1489 = vmatprep.subr.bf16.mxu1 %v4317_v62 }
 0x201   :  { %v581_v21 = vmul.f32 %v549_v10, %v517_v11  ;;  %v455_v24 = vpop.f32.mrb[16].mxu1  ;;  %v556_v10 = vld [vmem:[#allocation2 + $0xb0] sm:$0xff]  ;;  %v555_v11 = vld [vmem:[#allocation2 + $0xa8] sm:$0xff] }
 0x202   :  { %v457_v25 = vpop.f32.mrb[17].mxu1  ;;  %v668_v26 = vpack.c.bf16 %v580_v15, %v578_v14  ;;  %v518_v33 = vmax.f32 %v455_v24, 0.0 }
 0x203   :  { %v669_v27 = vpack.c.bf16 %v581_v21, %v579_v20  ;;  %1449 = vmatpush1.bf16.msra.mxu0 %v4320_v12  ;;  %1490 = vmatpush1.bf16.msra.mxu1 %v4323_v13  ;;  %v519_v39 = vmax.f32 %v457_v25, 0.0  ;;  %v557_v20 = vld [vmem:[#allocation2 + $0xb8] sm:$0xff] }
 0x204   :  { %1450 = vmatprep.subr.bf16.mxu0 %v4326_v16  ;;  %1491 = vmatprep.subr.bf16.mxu1 %v4329_v17  ;;  %v582_v54 = vmul.f32 %v550_v38, %v518_v33 }
 0x205   :  { %v461_v40 = vpop.f32.mrb[18].mxu1  ;;  %1082 = vmatprep.mubr.bf16.mxu0 %v669_v27  ;;  %1195 = vmatprep.mubr.bf16.mxu1 %v669_v27  ;;  %v583_v56 = vmul.f32 %v551_v42, %v519_v39  ;;  %v558_v42 = vld [vmem:[#allocation2 + $0xc0] sm:$0xff] }
 0x206   :  { %v520_v43 = vmax.f32 %v461_v40, 0.0  ;;  %v463_v29 = vpop.f32.mrb[19].mxu1  ;;  %1083 = vmatmul.mubr.bf16.gmra.mrb[28].mxu0 %v668_v26  ;;  %1196 = vmatmul.mubr.bf16.gmra.mrb[44].mxu1 %v668_v26 }
 0x207   :  { %v521_v49 = vmax.f32 %v463_v29, 0.0  ;;  %1451 = vmatpush1.bf16.msra.mxu0 %v4332_v28  ;;  %1492 = vmatpush1.bf16.msra.mxu1 %v4335_v30 }
 0x208   :  { %v584_v55 = vmul.f32 %v552_v41, %v520_v43  ;;  %1452 = vmatprep.subr.bf16.mxu0 %v4338_v36  ;;  %1493 = vmatprep.subr.bf16.mxu1 %v4341_v37 }
 0x209   :  { %v585_v57 = vmul.f32 %v553_v48, %v521_v49  ;;  %v467_v60 = vpop.f32.mrb[20].mxu1  ;;  %v560_v48 = vld [vmem:[#allocation2 + $0xd0] sm:$0xff]  ;;  %v559_v49 = vld [vmem:[#allocation2 + $0xc8] sm:$0xff] }
 0x20a   :  { %v469_v63 = vpop.f32.mrb[21].mxu1  ;;  %v670_v0 = vpack.c.bf16 %v584_v55, %v582_v54  ;;  %v522_v2 = vmax.f32 %v467_v60, 0.0 }
 0x20b   :  { %v671_v1 = vpack.c.bf16 %v585_v57, %v583_v56  ;;  %1453 = vmatpush1.bf16.msra.mxu0 %v4344_v52  ;;  %1494 = vmatpush1.bf16.msra.mxu1 %v4347_v53  ;;  %v523_v6 = vmax.f32 %v469_v63, 0.0  ;;  %v561_v56 = vld [vmem:[#allocation2 + $0xd8] sm:$0xff] }
 0x20c   :  { %1549 = vmatprep.subr.bf16.mxu0 %v4257_v46  ;;  %1590 = vmatprep.subr.bf16.mxu1 %v4260_v47  ;;  %v586_v24 = vmul.f32 %v554_v3, %v522_v2 }
 0x20d   :  { %v473_v9 = vpop.f32.mrb[22].mxu1  ;;  %1092 = vmatprep.mubr.bf16.mxu0 %v671_v1  ;;  %1205 = vmatprep.mubr.bf16.mxu1 %v671_v1  ;;  %v587_v26 = vmul.f32 %v555_v11, %v523_v6  ;;  %v562_v11 = vld [vmem:[#allocation2 + $0xe0] sm:$0xff] }
 0x20e   :  { %v524_v14 = vmax.f32 %v473_v9, 0.0  ;;  %v475_v15 = vpop.f32.mrb[23].mxu1  ;;  %1093 = vmatmul.mubr.bf16.gmra.mrb[32].mxu0 %v670_v0  ;;  %1206 = vmatmul.mubr.bf16.gmra.mrb[48].mxu1 %v670_v0 }
 0x20f   :  { %v525_v21 = vmax.f32 %v475_v15, 0.0 }
 0x210   :  { %v588_v25 = vmul.f32 %v556_v10, %v524_v14 }
 0x211   :  { %v589_v27 = vmul.f32 %v557_v20, %v525_v21  ;;  %v479_v33 = vpop.f32.mrb[24].mxu1  ;;  %v564_v20 = vld [vmem:[#allocation2 + $0xf0] sm:$0xff]  ;;  %v563_v21 = vld [vmem:[#allocation2 + $0xe8] sm:$0xff] }
 0x212   :  { %v481_v38 = vpop.f32.mrb[25].mxu1  ;;  %v672_v39 = vpack.c.bf16 %v588_v25, %v586_v24  ;;  %v526_v41 = vmax.f32 %v479_v33, 0.0 }
 0x213   :  { %v673_v40 = vpack.c.bf16 %v589_v27, %v587_v26  ;;  %v527_v43 = vmax.f32 %v481_v38, 0.0  ;;  %v565_v26 = vld [vmem:[#allocation2 + $0xf8] sm:$0xff] }
 0x214   :  { %v590_v60 = vmul.f32 %v558_v42, %v526_v41 }
 0x215   :  { %v485_v29 = vpop.f32.mrb[26].mxu1  ;;  %1102 = vmatprep.mubr.bf16.mxu0 %v673_v40  ;;  %1215 = vmatprep.mubr.bf16.mxu1 %v673_v40  ;;  %v591_v0 = vmul.f32 %v559_v49, %v527_v43  ;;  %v5338_v43 = vmov 0  }
 0x216   :  { %v528_v54 = vmax.f32 %v485_v29, 0.0  ;;  %v487_v55 = vpop.f32.mrb[27].mxu1  ;;  %1103 = vmatmul.mubr.bf16.gmra.mrb[36].mxu0 %v672_v39  ;;  %1216 = vmatmul.mubr.bf16.gmra.mrb[52].mxu1 %v672_v39  ;;  %v680_v29 = vlaneseq }
 0x217   :  { %v529_v57 = vmax.f32 %v487_v55, 0.0  ;;  %v678_v55 = vld [vmem:[%s5336_s6] sm:$0xf]  ;;  %s4039_s6 = smov [#allocation8]  }
 0x218   :  { %v592_v63 = vmul.f32 %v560_v48, %v528_v54  ;;  %v681_v48 = vshrl.u32 %v680_v29, 7  ;;  %s3223_s12 = sshll.u32 %s4039_s6, 4  ;;  %s3224_s12 = int_to_ptr.vmem [resolvable:$true] %s3223_s12 }
 0x219   :  { %v593_v1 = vmul.f32 %v561_v56, %v529_v57  ;;  %v491_v2 = vpop.f32.mrb[28].mxu1  ;;  %s4004_s15 = scalar_lea.vmem %s3224_s12, 128  ;;  %p4009_p11 = scmp.lt.s32.totalorder %s3224_s12, %s3224_s12 }
 0x21a   :  { %v493_v3 = vpop.f32.mrb[29].mxu1  ;;  %v674_v6 = vpack.c.bf16 %v592_v63, %v590_v60  ;;  %v530_v10 = vmax.f32 %v491_v2, 0.0  ;;  %v682_v49 = vsub.s32 0, %v681_v48  ;;  %v690_v54 = vsub.s32 2, %v681_v48  ;;  %p4005_p10 = scmp.ne.s32.totalorder %s3224_s12, %s4004_s15  ;;  %p4010_p12 = scmp.lt.s32.totalorder %s4004_s15, %s4004_s15 }
 0x21b   :  { %v675_v9 = vpack.c.bf16 %v593_v1, %v591_v0  ;;  %v531_v14 = vmax.f32 %v493_v3, 0.0  ;;  %v686_v56 = vsub.s32 1, %v681_v48  ;;  %v694_v57 = vsub.s32 3, %v681_v48 }
 0x21c   :  { %v594_v33 = vmul.f32 %v562_v11, %v530_v10  ;;  %v4400_v0 = vrot.slane %v678_v55, %v682_v49  ;;  %v4402_v1 = vrot.slane %v678_v55, %v690_v54  ;;  %p4011_p13 = por %p4010_p12, %p4009_p11 }
 0x21d   :  { %v497_v15 = vpop.f32.mrb[30].mxu1  ;;  %1112 = vmatprep.mubr.bf16.mxu0 %v675_v9  ;;  %1225 = vmatprep.mubr.bf16.mxu1 %v675_v9  ;;  %v595_v39 = vmul.f32 %v563_v21, %v531_v14  ;;  %v4410_v9 = vrot.slane %v678_v55, %v694_v57 }
 0x21e   :  { %v532_v24 = vmax.f32 %v497_v15, 0.0  ;;  %v499_v25 = vpop.f32.mrb[31].mxu1  ;;  %1113 = vmatmul.mubr.bf16.gmra.mrb[40].mxu0 %v674_v6  ;;  %1226 = vmatmul.mubr.bf16.gmra.mrb[56].mxu1 %v674_v6  ;;  %v4408_v6 = vrot.slane %v678_v55, %v686_v56  ;;  %p4012_p0 = pnand %p4011_p13, %p4005_p10 }
 0x21f   :  { %v533_v27 = vmax.f32 %v499_v25, 0.0 }
 0x220   :  { %v596_v38 = vmul.f32 %v564_v20, %v532_v24 }
 0x221   :  { %v597_v40 = vmul.f32 %v565_v26, %v533_v27 }
 0x222   :  { %v676_v41 = vpack.c.bf16 %v596_v38, %v594_v33 }
 0x223   :  { %v677_v42 = vpack.c.bf16 %v597_v40, %v595_v39 }
 0x225   :  { %1122 = vmatprep.mubr.bf16.mxu0 %v677_v42  ;;  %1235 = vmatprep.mubr.bf16.mxu1 %v677_v42 }
 0x226   :  { %1123 = vmatmul.mubr.bf16.gmra.mrb[44].mxu0 %v676_v41  ;;  %1236 = vmatmul.mubr.bf16.gmra.mrb[60].mxu1 %v676_v41 }
 0x227   :  { %1470 = vmatprep.mubr.bf16.mxu0 %v5338_v43  ;;  %1511 = vmatprep.mubr.bf16.mxu1 %v5338_v43 }
 0x22e   :  { %1471 = vmatmul.mubr.bf16.vlgmr.msra.gmra.mrb[48].mxu0 %v5338_v43  ;;  %1512 = vmatmul.mubr.bf16.vlgmr.msra.gmra.mrb[64].mxu1 %v5338_v43 }
 0x22f   :  { %1550 = vmatpush1.bf16.msra.mxu0 %v4263_v4  ;;  %1591 = vmatpush1.bf16.msra.mxu1 %v4265_v5 }
 0x230   :  { %1551 = vmatprep.subr.bf16.mxu0 %v4267_v7  ;;  %1592 = vmatprep.subr.bf16.mxu1 %v4269_v8 }
 0x231   :  { %1581 = vmatprep.mubr.bf16.mxu0 %v5338_v43  ;;  %1622 = vmatprep.mubr.bf16.mxu1 %v5338_v43 }
 0x233   :  { %1552 = vmatpush1.bf16.msra.mxu0 %v4272_v18  ;;  %1593 = vmatpush1.bf16.msra.mxu1 %v4275_v19 }
 0x234   :  { %1553 = vmatprep.subr.bf16.mxu0 %v4278_v22  ;;  %1594 = vmatprep.subr.bf16.mxu1 %v4281_v23 }
 0x237   :  { %1554 = vmatpush1.bf16.msra.mxu0 %v4284_v31  ;;  %1595 = vmatpush1.bf16.msra.mxu1 %v4287_v32 }
 0x238   :  { %1555 = vmatprep.subr.bf16.mxu0 %v4290_v34  ;;  %1596 = vmatprep.subr.bf16.mxu1 %v4293_v35 }
 0x23b   :  { %1556 = vmatpush1.bf16.msra.mxu0 %v4296_v44  ;;  %1597 = vmatpush1.bf16.msra.mxu1 %v4299_v45 }
 0x23c   :  { %1557 = vmatprep.subr.bf16.mxu0 %v4302_v50  ;;  %1598 = vmatprep.subr.bf16.mxu1 %v4305_v51 }
 0x23f   :  { %1558 = vmatpush1.bf16.msra.mxu0 %v4308_v58  ;;  %1599 = vmatpush1.bf16.msra.mxu1 %v4311_v59 }
 0x240   :  { %1559 = vmatprep.subr.bf16.mxu0 %v4314_v61  ;;  %1600 = vmatprep.subr.bf16.mxu1 %v4317_v62 }
 0x243   :  { %1560 = vmatpush1.bf16.msra.mxu0 %v4320_v12  ;;  %1601 = vmatpush1.bf16.msra.mxu1 %v4323_v13 }
 0x244   :  { %1561 = vmatprep.subr.bf16.mxu0 %v4326_v16  ;;  %1602 = vmatprep.subr.bf16.mxu1 %v4329_v17 }
 0x247   :  { %1562 = vmatpush1.bf16.msra.mxu0 %v4332_v28  ;;  %1603 = vmatpush1.bf16.msra.mxu1 %v4335_v30 }
 0x248   :  { %1563 = vmatprep.subr.bf16.mxu0 %v4338_v36  ;;  %1604 = vmatprep.subr.bf16.mxu1 %v4341_v37 }
 0x24b   :  { %1564 = vmatpush1.bf16.msra.mxu0 %v4344_v52  ;;  %1605 = vmatpush1.bf16.msra.mxu1 %v4347_v53 }
 0x24c   :  { %1660 = vmatprep.subr.bf16.mxu0 %v4257_v46  ;;  %1701 = vmatprep.subr.bf16.mxu1 %v4260_v47 }
 0x2c1   :  { %v4396_v60 = vpop.f32.mrb[16].mxu0  ;;  %v4398_v63 = vpop.f32.mrb[32].mxu1 }
 0x2c2   :  { %v4404_v2 = vpop.f32.mrb[17].mxu0  ;;  %v4406_v3 = vpop.f32.mrb[33].mxu1 }
 0x2c3   :  { %v1058_v10 = vpop.f32.mrb[18].mxu0  ;;  %v1171_v11 = vpop.f32.mrb[34].mxu1 }
 0x2c4   :  { %v4413_v14 = vadd.f32 %v1058_v10, %v4400_v0  ;;  %v4416_v15 = vadd.f32 %v1171_v11, %v4402_v1  ;;  %v1060_v20 = vpop.f32.mrb[19].mxu0  ;;  %v1173_v21 = vpop.f32.mrb[35].mxu1 }
 0x2c5   :  { %v4419_v24 = vadd.f32 %v1060_v20, %v4408_v6  ;;  %v4422_v25 = vadd.f32 %v1173_v21, %v4410_v9 }
 0x2c9   :  { %v1064_v26 = vpop.f32.mrb[20].mxu0  ;;  %v1177_v27 = vpop.f32.mrb[36].mxu1 }
 0x2ca   :  { %v4425_v33 = vadd.f32 %v1064_v26, %v4400_v0  ;;  %v4428_v38 = vadd.f32 %v1177_v27, %v4402_v1  ;;  %v1066_v39 = vpop.f32.mrb[21].mxu0  ;;  %v1179_v40 = vpop.f32.mrb[37].mxu1 }
 0x2cb   :  { %v4431_v41 = vadd.f32 %v1066_v39, %v4408_v6  ;;  %v4434_v42 = vadd.f32 %v1179_v40, %v4410_v9  ;;  %v1068_v29 = vpop.f32.mrb[22].mxu0  ;;  %v1181_v48 = vpop.f32.mrb[38].mxu1 }
 0x2cc   :  { %v4437_v49 = vadd.f32 %v1068_v29, %v4400_v0  ;;  %v4440_v54 = vadd.f32 %v1181_v48, %v4402_v1  ;;  %v1070_v55 = vpop.f32.mrb[23].mxu0  ;;  %v1183_v56 = vpop.f32.mrb[39].mxu1 }
 0x2cd   :  { %v4443_v57 = vadd.f32 %v1070_v55, %v4408_v6  ;;  %v4446_v10 = vadd.f32 %v1183_v56, %v4410_v9 }
 0x2ce   :  { %5340 = vst [vmem:[#allocation12_spill] sm:$0xff] %v4440_v54 }
 0x2cf   :  { %5341 = vst [vmem:[#allocation13_spill] sm:$0xff] %v4443_v57  ;;  %5342 = vst [vmem:[#allocation14_spill] sm:$0xff] %v4446_v10 }
 0x2d1   :  { %v1074_v11 = vpop.f32.mrb[24].mxu0  ;;  %v1187_v20 = vpop.f32.mrb[40].mxu1 }
 0x2d2   :  { %v4449_v21 = vadd.f32 %v1074_v11, %v4400_v0  ;;  %v4452_v26 = vadd.f32 %v1187_v20, %v4402_v1  ;;  %v1076_v27 = vpop.f32.mrb[25].mxu0  ;;  %v1189_v39 = vpop.f32.mrb[41].mxu1 }
 0x2d3   :  { %v4455_v40 = vadd.f32 %v1076_v27, %v4408_v6  ;;  %v4458_v29 = vadd.f32 %v1189_v39, %v4410_v9  ;;  %v1078_v48 = vpop.f32.mrb[26].mxu0  ;;  %v1191_v55 = vpop.f32.mrb[42].mxu1 }
 0x2d4   :  { %5343 = vst [vmem:[#allocation15_spill] sm:$0xff] %v4449_v21  ;;  %5344 = vst [vmem:[#allocation16_spill] sm:$0xff] %v4452_v26  ;;  %v4461_v56 = vadd.f32 %v1078_v48, %v4400_v0  ;;  %v4464_v43 = vadd.f32 %v1191_v55, %v4402_v1  ;;  %v1080_v11 = vpop.f32.mrb[27].mxu0  ;;  %v1193_v21 = vpop.f32.mrb[43].mxu1 }
 0x2d5   :  { %5345 = vst [vmem:[#allocation17_spill] sm:$0xff] %v4455_v40  ;;  %5346 = vst [vmem:[#allocation18_spill] sm:$0xff] %v4458_v29  ;;  %v4467_v20 = vadd.f32 %v1080_v11, %v4408_v6  ;;  %v4470_v26 = vadd.f32 %v1193_v21, %v4410_v9 }
 0x2d6   :  { %5347 = vst [vmem:[#allocation19_spill] sm:$0xff] %v4461_v56  ;;  %5348 = vst [vmem:[#allocation20_spill] sm:$0xff] %v4464_v43 }
 0x2d7   :  { %5349 = vst [vmem:[#allocation21_spill] sm:$0xff] %v4467_v20  ;;  %5350 = vst [vmem:[#allocation22_spill] sm:$0xff] %v4470_v26 }
 0x2d9   :  { %v1084_v27 = vpop.f32.mrb[28].mxu0  ;;  %v1197_v40 = vpop.f32.mrb[44].mxu1 }
 0x2da   :  { %v4473_v39 = vadd.f32 %v1084_v27, %v4400_v0  ;;  %v4476_v29 = vadd.f32 %v1197_v40, %v4402_v1  ;;  %v1086_v48 = vpop.f32.mrb[29].mxu0  ;;  %v1199_v56 = vpop.f32.mrb[45].mxu1 }
 0x2db   :  { %v4479_v55 = vadd.f32 %v1086_v48, %v4408_v6  ;;  %v4482_v43 = vadd.f32 %v1199_v56, %v4410_v9  ;;  %v1088_v11 = vpop.f32.mrb[30].mxu0  ;;  %v1201_v20 = vpop.f32.mrb[46].mxu1 }
 0x2dc   :  { %5351 = vst [vmem:[#allocation23_spill] sm:$0xff] %v4473_v39  ;;  %5352 = vst [vmem:[#allocation24_spill] sm:$0xff] %v4476_v29  ;;  %v4485_v21 = vadd.f32 %v1088_v11, %v4400_v0  ;;  %v4488_v26 = vadd.f32 %v1201_v20, %v4402_v1  ;;  %v1090_v27 = vpop.f32.mrb[31].mxu0  ;;  %v1203_v39 = vpop.f32.mrb[47].mxu1 }
 0x2dd   :  { %5353 = vst [vmem:[#allocation25_spill] sm:$0xff] %v4479_v55  ;;  %5354 = vst [vmem:[#allocation26_spill] sm:$0xff] %v4482_v43  ;;  %v4491_v40 = vadd.f32 %v1090_v27, %v4408_v6  ;;  %v4494_v29 = vadd.f32 %v1203_v39, %v4410_v9 }
 0x2de   :  { %5355 = vst [vmem:[#allocation27_spill] sm:$0xff] %v4485_v21  ;;  %5356 = vst [vmem:[#allocation28_spill] sm:$0xff] %v4488_v26 }
 0x2df   :  { %5357 = vst [vmem:[#allocation29_spill] sm:$0xff] %v4491_v40  ;;  %5358 = vst [vmem:[#allocation30_spill] sm:$0xff] %v4494_v29 }
 0x2e1   :  { %v1094_v48 = vpop.f32.mrb[32].mxu0  ;;  %v1207_v55 = vpop.f32.mrb[48].mxu1 }
 0x2e2   :  { %v4497_v56 = vadd.f32 %v1094_v48, %v4400_v0  ;;  %v4500_v43 = vadd.f32 %v1207_v55, %v4402_v1  ;;  %v1096_v11 = vpop.f32.mrb[33].mxu0  ;;  %v1209_v21 = vpop.f32.mrb[49].mxu1 }
 0x2e3   :  { %v4503_v20 = vadd.f32 %v1096_v11, %v4408_v6  ;;  %v4506_v26 = vadd.f32 %v1209_v21, %v4410_v9  ;;  %v1098_v27 = vpop.f32.mrb[34].mxu0  ;;  %v1211_v40 = vpop.f32.mrb[50].mxu1 }
 0x2e4   :  { %5359 = vst [vmem:[#allocation31_spill] sm:$0xff] %v4497_v56  ;;  %5360 = vst [vmem:[#allocation32_spill] sm:$0xff] %v4500_v43  ;;  %v4509_v39 = vadd.f32 %v1098_v27, %v4400_v0  ;;  %v4512_v29 = vadd.f32 %v1211_v40, %v4402_v1  ;;  %v1100_v48 = vpop.f32.mrb[35].mxu0  ;;  %v1213_v56 = vpop.f32.mrb[51].mxu1 }
 0x2e5   :  { %5361 = vst [vmem:[#allocation33_spill] sm:$0xff] %v4503_v20  ;;  %5362 = vst [vmem:[#allocation34_spill] sm:$0xff] %v4506_v26  ;;  %v4515_v55 = vadd.f32 %v1100_v48, %v4408_v6  ;;  %v4518_v43 = vadd.f32 %v1213_v56, %v4410_v9 }
 0x2e6   :  { %5363 = vst [vmem:[#allocation35_spill] sm:$0xff] %v4509_v39  ;;  %5364 = vst [vmem:[#allocation36_spill] sm:$0xff] %v4512_v29 }
 0x2e7   :  { %5365 = vst [vmem:[#allocation37_spill] sm:$0xff] %v4515_v55  ;;  %5366 = vst [vmem:[#allocation38_spill] sm:$0xff] %v4518_v43 }
 0x2e9   :  { %v1104_v11 = vpop.f32.mrb[36].mxu0  ;;  %v1217_v20 = vpop.f32.mrb[52].mxu1 }
 0x2ea   :  { %v4521_v21 = vadd.f32 %v1104_v11, %v4400_v0  ;;  %v4524_v26 = vadd.f32 %v1217_v20, %v4402_v1  ;;  %v1106_v27 = vpop.f32.mrb[37].mxu0  ;;  %v1219_v39 = vpop.f32.mrb[53].mxu1 }
 0x2eb   :  { %v4527_v40 = vadd.f32 %v1106_v27, %v4408_v6  ;;  %v4530_v29 = vadd.f32 %v1219_v39, %v4410_v9  ;;  %v1108_v48 = vpop.f32.mrb[38].mxu0  ;;  %v1221_v55 = vpop.f32.mrb[54].mxu1 }
 0x2ec   :  { %5367 = vst [vmem:[#allocation39_spill] sm:$0xff] %v4521_v21  ;;  %5368 = vst [vmem:[#allocation40_spill] sm:$0xff] %v4524_v26  ;;  %v4533_v56 = vadd.f32 %v1108_v48, %v4400_v0  ;;  %v4536_v43 = vadd.f32 %v1221_v55, %v4402_v1  ;;  %v1110_v11 = vpop.f32.mrb[39].mxu0  ;;  %v1223_v21 = vpop.f32.mrb[55].mxu1 }
 0x2ed   :  { %5369 = vst [vmem:[#allocation41_spill] sm:$0xff] %v4527_v40  ;;  %5370 = vst [vmem:[#allocation42_spill] sm:$0xff] %v4530_v29  ;;  %v4539_v20 = vadd.f32 %v1110_v11, %v4408_v6  ;;  %v4542_v26 = vadd.f32 %v1223_v21, %v4410_v9 }
 0x2ee   :  { %5371 = vst [vmem:[#allocation43_spill] sm:$0xff] %v4533_v56  ;;  %5372 = vst [vmem:[#allocation44_spill] sm:$0xff] %v4536_v43 }
 0x2ef   :  { %5373 = vst [vmem:[#allocation45_spill] sm:$0xff] %v4539_v20  ;;  %5374 = vst [vmem:[#allocation46_spill] sm:$0xff] %v4542_v26 }
 0x2f1   :  { %v1114_v27 = vpop.f32.mrb[40].mxu0  ;;  %v1227_v40 = vpop.f32.mrb[56].mxu1 }
 0x2f2   :  { %v4545_v39 = vadd.f32 %v1114_v27, %v4400_v0  ;;  %v4548_v29 = vadd.f32 %v1227_v40, %v4402_v1  ;;  %v1116_v48 = vpop.f32.mrb[41].mxu0  ;;  %v1229_v56 = vpop.f32.mrb[57].mxu1 }
 0x2f3   :  { %v4551_v55 = vadd.f32 %v1116_v48, %v4408_v6  ;;  %v4554_v43 = vadd.f32 %v1229_v56, %v4410_v9  ;;  %v1118_v11 = vpop.f32.mrb[42].mxu0  ;;  %v1231_v20 = vpop.f32.mrb[58].mxu1 }
 0x2f4   :  { %5375 = vst [vmem:[#allocation47_spill] sm:$0xff] %v4545_v39  ;;  %5376 = vst [vmem:[#allocation48_spill] sm:$0xff] %v4548_v29  ;;  %v4557_v21 = vadd.f32 %v1118_v11, %v4400_v0  ;;  %v4560_v26 = vadd.f32 %v1231_v20, %v4402_v1  ;;  %v1120_v27 = vpop.f32.mrb[43].mxu0  ;;  %v1233_v39 = vpop.f32.mrb[59].mxu1 }
 0x2f5   :  { %5377 = vst [vmem:[#allocation49_spill] sm:$0xff] %v4551_v55  ;;  %5378 = vst [vmem:[#allocation50_spill] sm:$0xff] %v4554_v43  ;;  %v4563_v40 = vadd.f32 %v1120_v27, %v4408_v6  ;;  %v4566_v29 = vadd.f32 %v1233_v39, %v4410_v9 }
 0x2f6   :  { %5379 = vst [vmem:[#allocation51_spill] sm:$0xff] %v4557_v21  ;;  %5380 = vst [vmem:[#allocation52_spill] sm:$0xff] %v4560_v26 }
 0x2f7   :  { %5381 = vst [vmem:[#allocation53_spill] sm:$0xff] %v4563_v40  ;;  %5382 = vst [vmem:[#allocation54_spill] sm:$0xff] %v4566_v29 }
 0x2f9   :  { %v1124_v48 = vpop.f32.mrb[44].mxu0  ;;  %v1237_v55 = vpop.f32.mrb[60].mxu1 }
 0x2fa   :  { %v4569_v56 = vadd.f32 %v1124_v48, %v4400_v0  ;;  %v4572_v43 = vadd.f32 %v1237_v55, %v4402_v1  ;;  %v1126_v11 = vpop.f32.mrb[45].mxu0  ;;  %v1239_v21 = vpop.f32.mrb[61].mxu1 }
 0x2fb   :  { %v4575_v20 = vadd.f32 %v1126_v11, %v4408_v6  ;;  %v4578_v26 = vadd.f32 %v1239_v21, %v4410_v9  ;;  %v1128_v27 = vpop.f32.mrb[46].mxu0  ;;  %v1241_v40 = vpop.f32.mrb[62].mxu1  ;;  %v1055_v21 = vadd.f32 %v4396_v60, %v4400_v0  ;;  %v1168_v11 = vadd.f32 %v4398_v63, %v4402_v1 }
 0x2fc   :  { %5383 = vst [vmem:[#allocation55_spill] sm:$0xff] %v4569_v56  ;;  %5384 = vst [vmem:[#allocation56_spill] sm:$0xff] %v4572_v43  ;;  %v4581_v39 = vadd.f32 %v1128_v27, %v4400_v0  ;;  %v4584_v29 = vadd.f32 %v1241_v40, %v4402_v1  ;;  %v1130_v48 = vpop.f32.mrb[47].mxu0  ;;  %v1243_v56 = vpop.f32.mrb[63].mxu1  ;;  %v1057_v27 = vadd.f32 %v4404_v2, %v4408_v6 }
 0x2fd   :  { %5385 = vst [vmem:[#allocation57_spill] sm:$0xff] %v4575_v20  ;;  %5386 = vst [vmem:[#allocation58_spill] sm:$0xff] %v4578_v26  ;;  %v4587_v55 = vadd.f32 %v1130_v48, %v4408_v6  ;;  %v4590_v43 = vadd.f32 %v1243_v56, %v4410_v9  ;;  %v1170_v40 = vadd.f32 %v4406_v3, %v4410_v9 }
 0x2fe   :  { %5387 = vst [vmem:[#allocation59_spill] sm:$0xff] %v4581_v39  ;;  %5388 = vst [vmem:[#allocation60_spill] sm:$0xff] %v4584_v29 }
 0x2ff   :  { %5389 = vst [vmem:[#allocation61_spill] sm:$0xff] %v4587_v55  ;;  %5390 = vst [vmem:[#allocation62_spill] sm:$0xff] %v4590_v43 }
 0x301   :  { %v1472_v29 = vpop.f32.mrb[48].mxu0  ;;  %v1513_v39 = vpop.f32.mrb[64].mxu1 }
 0x302   :  { %v1520_v26 = vadd.f32 %v1472_v29, %v1055_v21  ;;  %v1522_v48 = vadd.f32 %v1513_v39, %v1168_v11  ;;  %v1474_v55 = vpop.f32.mrb[49].mxu0  ;;  %v1515_v20 = vpop.f32.mrb[65].mxu1 }
 0x303   :  { %v1521_v56 = vadd.f32 %v1474_v55, %v1057_v27  ;;  %v1523_v43 = vadd.f32 %v1515_v20, %v1170_v40  ;;  %v1476_v10 = vpop.f32.mrb[50].mxu0  ;;  %v1517_v57 = vpop.f32.mrb[66].mxu1  ;;  %v5391_v40 = vmov 0  }
 0x304   :  { %v3365_v60 = vmul.f32 -1.442695, %v1520_v26  ;;  %v1477_v0 = vpop.f32.mrb[51].mxu0  ;;  %v1518_v54 = vpop.f32.mrb[67].mxu1 }
 0x305   :  { %v3366_v63 = vmul.f32 -1.442695, %v1521_v56  ;;  %v3367_v1 = vmul.f32 -1.442695, %v1523_v43 }
 0x306   :  { %3618 = vpow2.f32 %v3365_v60 }
 0x307   :  { %3620 = vpow2.f32 %v3366_v63 }
 0x308   :  { %3622 = vpow2.f32 %v3367_v1 }
 0x309   :  { %3624 = vtanh.f32 %v1522_v48 }
 0x310   :  { %v3619_v2 = vpop.eup %3618 }
 0x311   :  { %v3621_v6 = vpop.eup %3620  ;;  %v1527_v3 = vadd.f32 1.0, %v3619_v2 }
 0x312   :  { %v1533_v9 = vadd.f32 1.0, %v3621_v6  ;;  %v3623_v29 = vpop.eup %3622 }
 0x313   :  { %3626 = vrcp.f32 %v1527_v3  ;;  %v3625_v39 = vpop.eup %3624  ;;  %v1540_v26 = vadd.f32 1.0, %v3623_v29 }
 0x314   :  { %3628 = vrcp.f32 %v1533_v9 }
 0x315   :  { %3630 = vrcp.f32 %v1540_v26 }
 0x31d   :  { %v3627_v20 = vpop.eup %3626 }
 0x31e   :  { %v3629_v10 = vpop.eup %3628  ;;  %v1544_v57 = vmul.f32 %v3627_v20, %v3625_v39 }
 0x31f   :  { %v1543_v55 = vmul.f32 0.0, %v3629_v10  ;;  %v3631_v43 = vpop.eup %3630 }
 0x321   :  { %v4600_v54 = vadd.f32 %v1544_v57, %v1543_v55 }
 0x323   :  { %3632 = vtanh.f32 %v4600_v54 }
 0x32d   :  { %v3633_v21 = vpop.eup %3632 }
 0x32e   :  { %v1547_v11 = vmul.f32 %v3633_v21, %v3631_v43 }
 0x330   :  { %v1548_v27 = vpack.c.bf16 %v1547_v11, %v1547_v11 }
 0x332   :  { %1582 = vmatmul.mubr.bf16.vlgmr.msra.gmra.mrb[52].mxu0 %v1548_v27  ;;  %1623 = vmatmul.mubr.bf16.vlgmr.msra.gmra.mrb[68].mxu1 %v1548_v27 }
 0x333   :  { %1661 = vmatpush1.bf16.msra.mxu0 %v4263_v4  ;;  %1702 = vmatpush1.bf16.msra.mxu1 %v4265_v5 }
 0x334   :  { %1662 = vmatprep.subr.bf16.mxu0 %v4267_v7  ;;  %1703 = vmatprep.subr.bf16.mxu1 %v4269_v8 }
 0x335   :  { %1692 = vmatprep.mubr.bf16.mxu0 %v5391_v40  ;;  %1733 = vmatprep.mubr.bf16.mxu1 %v5391_v40 }
 0x337   :  { %1663 = vmatpush1.bf16.msra.mxu0 %v4272_v18  ;;  %1704 = vmatpush1.bf16.msra.mxu1 %v4275_v19 }
 0x338   :  { %1664 = vmatprep.subr.bf16.mxu0 %v4278_v22  ;;  %1705 = vmatprep.subr.bf16.mxu1 %v4281_v23 }
 0x33b   :  { %1665 = vmatpush1.bf16.msra.mxu0 %v4284_v31  ;;  %1706 = vmatpush1.bf16.msra.mxu1 %v4287_v32 }
 0x33c   :  { %1666 = vmatprep.subr.bf16.mxu0 %v4290_v34  ;;  %1707 = vmatprep.subr.bf16.mxu1 %v4293_v35 }
 0x33f   :  { %1667 = vmatpush1.bf16.msra.mxu0 %v4296_v44  ;;  %1708 = vmatpush1.bf16.msra.mxu1 %v4299_v45 }
 0x340   :  { %1668 = vmatprep.subr.bf16.mxu0 %v4302_v50  ;;  %1709 = vmatprep.subr.bf16.mxu1 %v4305_v51 }
 0x343   :  { %1669 = vmatpush1.bf16.msra.mxu0 %v4308_v58  ;;  %1710 = vmatpush1.bf16.msra.mxu1 %v4311_v59 }
 0x344   :  { %1670 = vmatprep.subr.bf16.mxu0 %v4314_v61  ;;  %1711 = vmatprep.subr.bf16.mxu1 %v4317_v62 }
 0x347   :  { %1671 = vmatpush1.bf16.msra.mxu0 %v4320_v12  ;;  %1712 = vmatpush1.bf16.msra.mxu1 %v4323_v13 }
 0x348   :  { %1672 = vmatprep.subr.bf16.mxu0 %v4326_v16  ;;  %1713 = vmatprep.subr.bf16.mxu1 %v4329_v17 }
 0x34b   :  { %1673 = vmatpush1.bf16.msra.mxu0 %v4332_v28  ;;  %1714 = vmatpush1.bf16.msra.mxu1 %v4335_v30 }
 0x34c   :  { %1674 = vmatprep.subr.bf16.mxu0 %v4338_v36  ;;  %1715 = vmatprep.subr.bf16.mxu1 %v4341_v37 }
 0x34f   :  { %1675 = vmatpush1.bf16.msra.mxu0 %v4344_v52  ;;  %1716 = vmatpush1.bf16.msra.mxu1 %v4347_v53 }
 0x350   :  { %1771 = vmatprep.subr.bf16.mxu0 %v4257_v46  ;;  %1812 = vmatprep.subr.bf16.mxu1 %v4260_v47 }
 0x405   :  { %v1583_v4 = vpop.f32.mrb[52].mxu0  ;;  %v1624_v5 = vpop.f32.mrb[68].mxu1 }
 0x406   :  { %v1631_v48 = vadd.f32 %v1583_v4, %v4413_v14  ;;  %v1633_v56 = vadd.f32 %v1624_v5, %v4416_v15  ;;  %v1585_v60 = vpop.f32.mrb[53].mxu0  ;;  %v1626_v0 = vpop.f32.mrb[69].mxu1 }
 0x407   :  { %v1632_v63 = vadd.f32 %v1585_v60, %v4419_v24  ;;  %v1634_v1 = vadd.f32 %v1626_v0, %v4422_v25  ;;  %v1587_v2 = vpop.f32.mrb[54].mxu0  ;;  %v1628_v6 = vpop.f32.mrb[70].mxu1 }
 0x408   :  { %v3368_v3 = vmul.f32 -1.442695, %v1631_v48  ;;  %v1588_v9 = vpop.f32.mrb[55].mxu0  ;;  %v1629_v29 = vpop.f32.mrb[71].mxu1  ;;  %v4645_v48 = vld [vmem:[#allocation7] ss:$16 sps:$4 sm:$0xff]  }
 0x409   :  { %v3369_v46 = vmul.f32 -1.442695, %v1632_v63  ;;  %v3370_v47 = vmul.f32 -1.442695, %v1634_v1  ;;  %v4697_v29 = vld [vmem:[#allocation7 + $0x24] ss:$16 sps:$4 sm:$0xff]  }
 0x40a   :  { %3634 = vpow2.f32 %v3368_v3 }
 0x40b   :  { %3636 = vpow2.f32 %v3369_v46  ;;  %v4700_v46 = vld [vmem:[#allocation7 + $0x2c] ss:$16 sps:$4 sm:$0xff]  }
 0x40c   :  { %3638 = vpow2.f32 %v3370_v47  ;;  %v4705_v47 = vld [vmem:[#allocation7 + $0x20] ss:$16 sps:$4 sm:$0xff]  }
 0x40d   :  { %3640 = vtanh.f32 %v1633_v56  ;;  %v4648_v56 = vld [vmem:[#allocation7 + $0x8] ss:$16 sps:$4 sm:$0xff]  }
 0x414   :  { %v3635_v39 = vpop.eup %3634 }
 0x415   :  { %v3637_v20 = vpop.eup %3636  ;;  %v1638_v14 = vadd.f32 1.0, %v3635_v39  ;;  %v4708_v39 = vld [vmem:[#allocation7 + $0x28] ss:$16 sps:$4 sm:$0xff]  }
 0x416   :  { %v1644_v15 = vadd.f32 1.0, %v3637_v20  ;;  %v3639_v24 = vpop.eup %3638  ;;  %v4711_v20 = vld [vmem:[#allocation7 + $0x44] ss:$16 sps:$4 sm:$0xff]  }
 0x417   :  { %3642 = vrcp.f32 %v1638_v14  ;;  %v3641_v10 = vpop.eup %3640  ;;  %v1651_v55 = vadd.f32 1.0, %v3639_v24  ;;  %v4714_v14 = vld [vmem:[#allocation7 + $0x4c] ss:$16 sps:$4 sm:$0xff]   ;;  %v4720_v24 = vld [vmem:[#allocation7 + $0x48] ss:$16 sps:$4 sm:$0xff]  }
 0x418   :  { %3644 = vrcp.f32 %v1644_v15  ;;  %v4717_v15 = vld [vmem:[#allocation7 + $0x40] ss:$16 sps:$4 sm:$0xff]  }
 0x419   :  { %3646 = vrcp.f32 %v1651_v55  ;;  %v4735_v55 = vld [vmem:[#allocation7 + $0x84] ss:$16 sps:$4 sm:$0xff]  }
 0x421   :  { %v3643_v25 = vpop.eup %3642 }
 0x422   :  { %v3645_v57 = vpop.eup %3644  ;;  %v1655_v26 = vmul.f32 %v3643_v25, %v3641_v10  ;;  %v4723_v10 = vld [vmem:[#allocation7 + $0x64] ss:$16 sps:$4 sm:$0xff]   ;;  %v4726_v25 = vld [vmem:[#allocation7 + $0x6c] ss:$16 sps:$4 sm:$0xff]  }
 0x423   :  { %v1654_v43 = vmul.f32 %v3645_v57, %v4600_v54  ;;  %v3647_v11 = vpop.eup %3646  ;;  %v4729_v57 = vld [vmem:[#allocation7 + $0x60] ss:$16 sps:$4 sm:$0xff]  }
 0x425   :  { %v4642_v21 = vadd.f32 %v1655_v26, %v1654_v43  ;;  %v4732_v26 = vld [vmem:[#allocation7 + $0x68] ss:$16 sps:$4 sm:$0xff]   ;;  %v4738_v43 = vld [vmem:[#allocation7 + $0x8c] ss:$16 sps:$4 sm:$0xff]  }
 0x427   :  { %3648 = vtanh.f32 %v4642_v21 }
 0x431   :  { %v3649_v27 = vpop.eup %3648 }
 0x432   :  { %v1658_v4 = vmul.f32 %v3649_v27, %v3647_v11  ;;  %v4744_v11 = vld [vmem:[#allocation7 + $0x88] ss:$16 sps:$4 sm:$0xff]   ;;  %v4747_v27 = vld [vmem:[#allocation7 + $0xa4] ss:$16 sps:$4 sm:$0xff]  }
 0x434   :  { %v1659_v5 = vpack.c.bf16 %v1658_v4, %v1658_v4  ;;  %v4750_v4 = vld [vmem:[#allocation7 + $0xac] ss:$16 sps:$4 sm:$0xff]  }
 0x436   :  { %1693 = vmatmul.mubr.bf16.vlgmr.msra.gmra.mrb[56].mxu0 %v1659_v5  ;;  %1734 = vmatmul.mubr.bf16.vlgmr.msra.gmra.mrb[72].mxu1 %v1659_v5  ;;  %v4753_v5 = vld [vmem:[#allocation7 + $0xa0] ss:$16 sps:$4 sm:$0xff]  }
 0x437   :  { %1772 = vmatpush1.bf16.msra.mxu0 %v4645_v48  ;;  %1813 = vmatpush1.bf16.msra.mxu1 %v4648_v56 }
 0x438   :  { %1773 = vmatprep.subr.bf16.mxu0 %v4267_v7  ;;  %1814 = vmatprep.subr.bf16.mxu1 %v4269_v8  ;;  %v4681_v7 = vld [vmem:[#allocation7 + $0x4] ss:$16 sps:$4 sm:$0xff]   ;;  %v4684_v8 = vld [vmem:[#allocation7 + $0xc] ss:$16 sps:$4 sm:$0xff]  }
 0x439   :  { %1803 = vmatprep.mubr.bf16.mxu0 %v5391_v40  ;;  %1844 = vmatprep.mubr.bf16.mxu1 %v5391_v40 }
 0x43b   :  { %1774 = vmatpush1.bf16.msra.mxu0 %v4272_v18  ;;  %1815 = vmatpush1.bf16.msra.mxu1 %v4275_v19 }
 0x43c   :  { %1775 = vmatprep.subr.bf16.mxu0 %v4278_v22  ;;  %1816 = vmatprep.subr.bf16.mxu1 %v4281_v23 }
 0x43f   :  { %1776 = vmatpush1.bf16.msra.mxu0 %v4284_v31  ;;  %1817 = vmatpush1.bf16.msra.mxu1 %v4287_v32 }
 0x440   :  { %1777 = vmatprep.subr.bf16.mxu0 %v4290_v34  ;;  %1818 = vmatprep.subr.bf16.mxu1 %v4293_v35 }
 0x443   :  { %1778 = vmatpush1.bf16.msra.mxu0 %v4296_v44  ;;  %1819 = vmatpush1.bf16.msra.mxu1 %v4299_v45 }
 0x444   :  { %1779 = vmatprep.subr.bf16.mxu0 %v4302_v50  ;;  %1820 = vmatprep.subr.bf16.mxu1 %v4305_v51 }
 0x447   :  { %1780 = vmatpush1.bf16.msra.mxu0 %v4308_v58  ;;  %1821 = vmatpush1.bf16.msra.mxu1 %v4311_v59 }
 0x448   :  { %1781 = vmatprep.subr.bf16.mxu0 %v4314_v61  ;;  %1822 = vmatprep.subr.bf16.mxu1 %v4317_v62 }
 0x44b   :  { %1782 = vmatpush1.bf16.msra.mxu0 %v4320_v12  ;;  %1823 = vmatpush1.bf16.msra.mxu1 %v4323_v13 }
 0x44c   :  { %1783 = vmatprep.subr.bf16.mxu0 %v4326_v16  ;;  %1824 = vmatprep.subr.bf16.mxu1 %v4329_v17 }
 0x44f   :  { %1784 = vmatpush1.bf16.msra.mxu0 %v4332_v28  ;;  %1825 = vmatpush1.bf16.msra.mxu1 %v4335_v30 }
 0x450   :  { %1785 = vmatprep.subr.bf16.mxu0 %v4338_v36  ;;  %1826 = vmatprep.subr.bf16.mxu1 %v4341_v37 }
 0x453   :  { %1786 = vmatpush1.bf16.msra.mxu0 %v4344_v52  ;;  %1827 = vmatpush1.bf16.msra.mxu1 %v4347_v53 }
 0x454   :  { %1882 = vmatprep.subr.bf16.mxu0 %v4681_v7  ;;  %1923 = vmatprep.subr.bf16.mxu1 %v4684_v8 }
 0x509   :  { %v1694_v18 = vpop.f32.mrb[56].mxu0  ;;  %v1735_v19 = vpop.f32.mrb[72].mxu1 }
 0x50a   :  { %v1742_v22 = vadd.f32 %v1694_v18, %v4425_v33  ;;  %v1744_v23 = vadd.f32 %v1735_v19, %v4428_v38  ;;  %v1696_v31 = vpop.f32.mrb[57].mxu0  ;;  %v1737_v32 = vpop.f32.mrb[73].mxu1  ;;  %v4756_v18 = vld [vmem:[#allocation7 + $0xa8] ss:$16 sps:$4 sm:$0xff]  }
 0x50b   :  { %v1743_v34 = vadd.f32 %v1696_v31, %v4431_v41  ;;  %v1745_v35 = vadd.f32 %v1737_v32, %v4434_v42  ;;  %v1698_v44 = vpop.f32.mrb[58].mxu0  ;;  %v1739_v45 = vpop.f32.mrb[74].mxu1  ;;  %v5393_v31 = vld [vmem:[#allocation13_spill] sm:$0xff]  ;;  %v5394_v32 = vld [vmem:[#allocation14_spill] sm:$0xff] }
 0x50c   :  { %v3371_v50 = vmul.f32 -1.442695, %v1742_v22  ;;  %v1699_v51 = vpop.f32.mrb[59].mxu0  ;;  %v1740_v58 = vpop.f32.mrb[75].mxu1  ;;  %v5392_v22 = vld [vmem:[#allocation12_spill] sm:$0xff] }
 0x50d   :  { %v3372_v59 = vmul.f32 -1.442695, %v1743_v34  ;;  %v3373_v61 = vmul.f32 -1.442695, %v1745_v35 }
 0x50e   :  { %3650 = vpow2.f32 %v3371_v50 }
 0x50f   :  { %3652 = vpow2.f32 %v3372_v59 }
 0x510   :  { %3654 = vpow2.f32 %v3373_v61 }
 0x511   :  { %3656 = vtanh.f32 %v1744_v23 }
 0x518   :  { %v3651_v62 = vpop.eup %3650 }
 0x519   :  { %v3653_v12 = vpop.eup %3652  ;;  %v1749_v13 = vadd.f32 1.0, %v3651_v62 }
 0x51a   :  { %v1755_v33 = vadd.f32 1.0, %v3653_v12  ;;  %v3655_v38 = vpop.eup %3654 }
 0x51b   :  { %3658 = vrcp.f32 %v1749_v13  ;;  %v3657_v41 = vpop.eup %3656  ;;  %v1762_v0 = vadd.f32 1.0, %v3655_v38 }
 0x51c   :  { %3660 = vrcp.f32 %v1755_v33 }
 0x51d   :  { %3662 = vrcp.f32 %v1762_v0 }
 0x525   :  { %v3659_v42 = vpop.eup %3658 }
 0x526   :  { %v3661_v54 = vpop.eup %3660  ;;  %v1766_v60 = vmul.f32 %v3659_v42, %v3657_v41 }
 0x527   :  { %v1765_v63 = vmul.f32 %v3661_v54, %v4642_v21  ;;  %v3663_v2 = vpop.eup %3662  ;;  %v4741_v21 = vld [vmem:[#allocation7 + $0x80] ss:$16 sps:$4 sm:$0xff]  }
 0x529   :  { %v4692_v1 = vadd.f32 %v1766_v60, %v1765_v63 }
 0x52b   :  { %3664 = vtanh.f32 %v4692_v1 }
 0x535   :  { %v3665_v6 = vpop.eup %3664 }
 0x536   :  { %v1769_v3 = vmul.f32 %v3665_v6, %v3663_v2  ;;  %v4804_v2 = vld [vmem:[#allocation7 + $0xcc] ss:$16 sps:$4 sm:$0xff]   ;;  %v4807_v6 = vld [vmem:[#allocation7 + $0xc0] ss:$16 sps:$4 sm:$0xff]  }
 0x538   :  { %v1770_v9 = vpack.c.bf16 %v1769_v3, %v1769_v3  ;;  %v4810_v3 = vld [vmem:[#allocation7 + $0xc8] ss:$16 sps:$4 sm:$0xff]  }
 0x53a   :  { %1804 = vmatmul.mubr.bf16.vlgmr.msra.gmra.mrb[60].mxu0 %v1770_v9  ;;  %1845 = vmatmul.mubr.bf16.vlgmr.msra.gmra.mrb[76].mxu1 %v1770_v9  ;;  %v4813_v9 = vld [vmem:[#allocation7 + $0xe4] ss:$16 sps:$4 sm:$0xff]  }
 0x53b   :  { %1883 = vmatpush1.bf16.msra.mxu0 %v4645_v48  ;;  %1924 = vmatpush1.bf16.msra.mxu1 %v4648_v56 }
 0x53c   :  { %1884 = vmatprep.subr.bf16.mxu0 %v4697_v29  ;;  %1925 = vmatprep.subr.bf16.mxu1 %v4700_v46 }
 0x53d   :  { %1914 = vmatprep.mubr.bf16.mxu0 %v5391_v40  ;;  %1955 = vmatprep.mubr.bf16.mxu1 %v5391_v40 }
 0x53f   :  { %1885 = vmatpush1.bf16.msra.mxu0 %v4705_v47  ;;  %1926 = vmatpush1.bf16.msra.mxu1 %v4708_v39 }
 0x540   :  { %1886 = vmatprep.subr.bf16.mxu0 %v4711_v20  ;;  %1927 = vmatprep.subr.bf16.mxu1 %v4714_v14 }
 0x543   :  { %1887 = vmatpush1.bf16.msra.mxu0 %v4717_v15  ;;  %1928 = vmatpush1.bf16.msra.mxu1 %v4720_v24 }
 0x544   :  { %1888 = vmatprep.subr.bf16.mxu0 %v4723_v10  ;;  %1929 = vmatprep.subr.bf16.mxu1 %v4726_v25 }
 0x547   :  { %1889 = vmatpush1.bf16.msra.mxu0 %v4729_v57  ;;  %1930 = vmatpush1.bf16.msra.mxu1 %v4732_v26 }
 0x548   :  { %1890 = vmatprep.subr.bf16.mxu0 %v4735_v55  ;;  %1931 = vmatprep.subr.bf16.mxu1 %v4738_v43 }
 0x54b   :  { %1891 = vmatpush1.bf16.msra.mxu0 %v4741_v21  ;;  %1932 = vmatpush1.bf16.msra.mxu1 %v4744_v11 }
 0x54c   :  { %1892 = vmatprep.subr.bf16.mxu0 %v4747_v27  ;;  %1933 = vmatprep.subr.bf16.mxu1 %v4750_v4 }
 0x54f   :  { %1893 = vmatpush1.bf16.msra.mxu0 %v4753_v5  ;;  %1934 = vmatpush1.bf16.msra.mxu1 %v4756_v18 }
 0x550   :  { %1894 = vmatprep.subr.bf16.mxu0 %v4326_v16  ;;  %1935 = vmatprep.subr.bf16.mxu1 %v4329_v17 }
 0x553   :  { %1895 = vmatpush1.bf16.msra.mxu0 %v4332_v28  ;;  %1936 = vmatpush1.bf16.msra.mxu1 %v4335_v30 }
 0x554   :  { %1896 = vmatprep.subr.bf16.mxu0 %v4338_v36  ;;  %1937 = vmatprep.subr.bf16.mxu1 %v4341_v37 }
 0x557   :  { %1897 = vmatpush1.bf16.msra.mxu0 %v4344_v52  ;;  %1938 = vmatpush1.bf16.msra.mxu1 %v4347_v53 }
 0x558   :  { %1993 = vmatprep.subr.bf16.mxu0 %v4681_v7  ;;  %2034 = vmatprep.subr.bf16.mxu1 %v4684_v8 }
 0x60d   :  { %v1805_v19 = vpop.f32.mrb[60].mxu0  ;;  %v1846_v16 = vpop.f32.mrb[76].mxu1 }
 0x60e   :  { %v1853_v17 = vadd.f32 %v1805_v19, %v4437_v49  ;;  %v1855_v28 = vadd.f32 %v1846_v16, %v5392_v22  ;;  %v1807_v23 = vpop.f32.mrb[61].mxu0  ;;  %v1848_v30 = vpop.f32.mrb[77].mxu1  ;;  %v4816_v19 = vld [vmem:[#allocation7 + $0xec] ss:$16 sps:$4 sm:$0xff]   ;;  %v4819_v16 = vld [vmem:[#allocation7 + $0xe0] ss:$16 sps:$4 sm:$0xff]  }
 0x60f   :  { %v1854_v36 = vadd.f32 %v1807_v23, %v5393_v31  ;;  %v1856_v37 = vadd.f32 %v1848_v30, %v5394_v32  ;;  %v1809_v34 = vpop.f32.mrb[62].mxu0  ;;  %v1850_v52 = vpop.f32.mrb[78].mxu1  ;;  %v5395_v23 = vld [vmem:[#allocation15_spill] sm:$0xff]  ;;  %v5396_v31 = vld [vmem:[#allocation16_spill] sm:$0xff] }
 0x610   :  { %v3374_v35 = vmul.f32 -1.442695, %v1853_v17  ;;  %v1810_v53 = vpop.f32.mrb[63].mxu0  ;;  %v1851_v44 = vpop.f32.mrb[79].mxu1  ;;  %v4822_v17 = vld [vmem:[#allocation7 + $0xe8] ss:$16 sps:$4 sm:$0xff]  }
 0x611   :  { %v3375_v45 = vmul.f32 -1.442695, %v1854_v36  ;;  %v3376_v50 = vmul.f32 -1.442695, %v1856_v37  ;;  %v5397_v34 = vld [vmem:[#allocation17_spill] sm:$0xff] }
 0x612   :  { %3666 = vpow2.f32 %v3374_v35  ;;  %v5398_v35 = vld [vmem:[#allocation18_spill] sm:$0xff] }
 0x613   :  { %3668 = vpow2.f32 %v3375_v45 }
 0x614   :  { %3670 = vpow2.f32 %v3376_v50 }
 0x615   :  { %3672 = vtanh.f32 %v1855_v28 }
 0x61c   :  { %v3667_v51 = vpop.eup %3666 }
 0x61d   :  { %v3669_v58 = vpop.eup %3668  ;;  %v1860_v49 = vadd.f32 1.0, %v3667_v51 }
 0x61e   :  { %v1866_v59 = vadd.f32 1.0, %v3669_v58  ;;  %v3671_v61 = vpop.eup %3670 }
 0x61f   :  { %3674 = vrcp.f32 %v1860_v49  ;;  %v3673_v62 = vpop.eup %3672  ;;  %v1873_v38 = vadd.f32 1.0, %v3671_v61 }
 0x620   :  { %3676 = vrcp.f32 %v1866_v59 }
 0x621   :  { %3678 = vrcp.f32 %v1873_v38 }
 0x629   :  { %v3675_v12 = vpop.eup %3674 }
 0x62a   :  { %v3677_v13 = vpop.eup %3676  ;;  %v1877_v33 = vmul.f32 %v3675_v12, %v3673_v62 }
 0x62b   :  { %v1876_v41 = vmul.f32 %v3677_v13, %v4692_v1  ;;  %v3679_v54 = vpop.eup %3678  ;;  %v4801_v1 = vld [vmem:[#allocation7 + $0xc4] ss:$16 sps:$4 sm:$0xff]  }
 0x62d   :  { %v4774_v42 = vadd.f32 %v1877_v33, %v1876_v41 }
 0x62f   :  { %3680 = vtanh.f32 %v4774_v42 }
 0x639   :  { %v3681_v60 = vpop.eup %3680 }
 0x63a   :  { %v1880_v0 = vmul.f32 %v3681_v60, %v3679_v54 }
 0x63c   :  { %v1881_v63 = vpack.c.bf16 %v1880_v0, %v1880_v0 }
 0x63e   :  { %1915 = vmatmul.mubr.bf16.vlgmr.msra.gmra.mrb[64].mxu0 %v1881_v63  ;;  %1956 = vmatmul.mubr.bf16.vlgmr.msra.gmra.mrb[80].mxu1 %v1881_v63 }
 0x63f   :  { %1994 = vmatpush1.bf16.msra.mxu0 %v4645_v48  ;;  %2035 = vmatpush1.bf16.msra.mxu1 %v4648_v56 }
 0x640   :  { %1995 = vmatprep.subr.bf16.mxu0 %v4697_v29  ;;  %2036 = vmatprep.subr.bf16.mxu1 %v4700_v46 }
 0x641   :  { %2025 = vmatprep.mubr.bf16.mxu0 %v5391_v40  ;;  %2066 = vmatprep.mubr.bf16.mxu1 %v5391_v40 }
 0x643   :  { %1996 = vmatpush1.bf16.msra.mxu0 %v4705_v47  ;;  %2037 = vmatpush1.bf16.msra.mxu1 %v4708_v39 }
 0x644   :  { %1997 = vmatprep.subr.bf16.mxu0 %v4711_v20  ;;  %2038 = vmatprep.subr.bf16.mxu1 %v4714_v14 }
 0x647   :  { %1998 = vmatpush1.bf16.msra.mxu0 %v4717_v15  ;;  %2039 = vmatpush1.bf16.msra.mxu1 %v4720_v24 }
 0x648   :  { %1999 = vmatprep.subr.bf16.mxu0 %v4723_v10  ;;  %2040 = vmatprep.subr.bf16.mxu1 %v4726_v25 }
 0x64b   :  { %2000 = vmatpush1.bf16.msra.mxu0 %v4729_v57  ;;  %2041 = vmatpush1.bf16.msra.mxu1 %v4732_v26 }
 0x64c   :  { %2001 = vmatprep.subr.bf16.mxu0 %v4735_v55  ;;  %2042 = vmatprep.subr.bf16.mxu1 %v4738_v43 }
 0x64f   :  { %2002 = vmatpush1.bf16.msra.mxu0 %v4741_v21  ;;  %2043 = vmatpush1.bf16.msra.mxu1 %v4744_v11 }
 0x650   :  { %2003 = vmatprep.subr.bf16.mxu0 %v4747_v27  ;;  %2044 = vmatprep.subr.bf16.mxu1 %v4750_v4 }
 0x653   :  { %2004 = vmatpush1.bf16.msra.mxu0 %v4753_v5  ;;  %2045 = vmatpush1.bf16.msra.mxu1 %v4756_v18 }
 0x654   :  { %2005 = vmatprep.subr.bf16.mxu0 %v4801_v1  ;;  %2046 = vmatprep.subr.bf16.mxu1 %v4804_v2 }
 0x657   :  { %2006 = vmatpush1.bf16.msra.mxu0 %v4807_v6  ;;  %2047 = vmatpush1.bf16.msra.mxu1 %v4810_v3 }
 0x658   :  { %2007 = vmatprep.subr.bf16.mxu0 %v4813_v9  ;;  %2048 = vmatprep.subr.bf16.mxu1 %v4816_v19 }
 0x65b   :  { %2008 = vmatpush1.bf16.msra.mxu0 %v4819_v16  ;;  %2049 = vmatpush1.bf16.msra.mxu1 %v4822_v17 }
 0x65c   :  { %2104 = vmatprep.subr.bf16.mxu0 %v4681_v7  ;;  %2145 = vmatprep.subr.bf16.mxu1 %v4684_v8 }
 0x711   :  { %v1916_v22 = vpop.f32.mrb[64].mxu0  ;;  %v1957_v28 = vpop.f32.mrb[80].mxu1 }
 0x712   :  { %v1964_v30 = vadd.f32 %v1916_v22, %v5395_v23  ;;  %v1966_v36 = vadd.f32 %v1957_v28, %v5396_v31  ;;  %v1918_v32 = vpop.f32.mrb[65].mxu0  ;;  %v1959_v37 = vpop.f32.mrb[81].mxu1 }
 0x713   :  { %v1965_v52 = vadd.f32 %v1918_v32, %v5397_v34  ;;  %v1967_v53 = vadd.f32 %v1959_v37, %v5398_v35  ;;  %v1920_v44 = vpop.f32.mrb[66].mxu0  ;;  %v1961_v45 = vpop.f32.mrb[82].mxu1  ;;  %v5399_v32 = vld [vmem:[#allocation19_spill] sm:$0xff]  ;;  %v5400_v34 = vld [vmem:[#allocation20_spill] sm:$0xff] }
 0x714   :  { %v3377_v50 = vmul.f32 -1.442695, %v1964_v30  ;;  %v1921_v51 = vpop.f32.mrb[67].mxu0  ;;  %v1962_v58 = vpop.f32.mrb[83].mxu1  ;;  %v5401_v44 = vld [vmem:[#allocation21_spill] sm:$0xff] }
 0x715   :  { %v3378_v49 = vmul.f32 -1.442695, %v1965_v52  ;;  %v3379_v59 = vmul.f32 -1.442695, %v1967_v53 }
 0x716   :  { %3682 = vpow2.f32 %v3377_v50  ;;  %v5402_v50 = vld [vmem:[#allocation22_spill] sm:$0xff] }
 0x717   :  { %3684 = vpow2.f32 %v3378_v49 }
 0x718   :  { %3686 = vpow2.f32 %v3379_v59 }
 0x719   :  { %3688 = vtanh.f32 %v1966_v36 }
 0x720   :  { %v3683_v61 = vpop.eup %3682 }
 0x721   :  { %v3685_v62 = vpop.eup %3684  ;;  %v1971_v12 = vadd.f32 1.0, %v3683_v61 }
 0x722   :  { %v1977_v13 = vadd.f32 1.0, %v3685_v62  ;;  %v3687_v33 = vpop.eup %3686 }
 0x723   :  { %3690 = vrcp.f32 %v1971_v12  ;;  %v3689_v38 = vpop.eup %3688  ;;  %v1984_v0 = vadd.f32 1.0, %v3687_v33 }
 0x724   :  { %3692 = vrcp.f32 %v1977_v13 }
 0x725   :  { %3694 = vrcp.f32 %v1984_v0 }
 0x72d   :  { %v3691_v41 = vpop.eup %3690 }
 0x72e   :  { %v3693_v54 = vpop.eup %3692  ;;  %v1988_v60 = vmul.f32 %v3691_v41, %v3689_v38 }
 0x72f   :  { %v1987_v63 = vmul.f32 %v3693_v54, %v4774_v42  ;;  %v3695_v28 = vpop.eup %3694 }
 0x731   :  { %v4832_v22 = vadd.f32 %v1988_v60, %v1987_v63 }
 0x733   :  { %3696 = vtanh.f32 %v4832_v22 }
 0x73d   :  { %v3697_v23 = vpop.eup %3696 }
 0x73e   :  { %v1991_v30 = vmul.f32 %v3697_v23, %v3695_v28 }
 0x740   :  { %v1992_v31 = vpack.c.bf16 %v1991_v30, %v1991_v30 }
 0x742   :  { %2026 = vmatmul.mubr.bf16.vlgmr.msra.gmra.mrb[68].mxu0 %v1992_v31  ;;  %2067 = vmatmul.mubr.bf16.vlgmr.msra.gmra.mrb[84].mxu1 %v1992_v31 }
 0x743   :  { %2105 = vmatpush1.bf16.msra.mxu0 %v4645_v48  ;;  %2146 = vmatpush1.bf16.msra.mxu1 %v4648_v56 }
 0x744   :  { %2106 = vmatprep.subr.bf16.mxu0 %v4697_v29  ;;  %2147 = vmatprep.subr.bf16.mxu1 %v4700_v46 }
 0x745   :  { %2136 = vmatprep.mubr.bf16.mxu0 %v5391_v40  ;;  %2177 = vmatprep.mubr.bf16.mxu1 %v5391_v40 }
 0x747   :  { %2107 = vmatpush1.bf16.msra.mxu0 %v4705_v47  ;;  %2148 = vmatpush1.bf16.msra.mxu1 %v4708_v39 }
 0x748   :  { %2108 = vmatprep.subr.bf16.mxu0 %v4711_v20  ;;  %2149 = vmatprep.subr.bf16.mxu1 %v4714_v14 }
 0x74b   :  { %2109 = vmatpush1.bf16.msra.mxu0 %v4717_v15  ;;  %2150 = vmatpush1.bf16.msra.mxu1 %v4720_v24 }
 0x74c   :  { %2110 = vmatprep.subr.bf16.mxu0 %v4723_v10  ;;  %2151 = vmatprep.subr.bf16.mxu1 %v4726_v25 }
 0x74f   :  { %2111 = vmatpush1.bf16.msra.mxu0 %v4729_v57  ;;  %2152 = vmatpush1.bf16.msra.mxu1 %v4732_v26 }
 0x750   :  { %2112 = vmatprep.subr.bf16.mxu0 %v4735_v55  ;;  %2153 = vmatprep.subr.bf16.mxu1 %v4738_v43 }
 0x753   :  { %2113 = vmatpush1.bf16.msra.mxu0 %v4741_v21  ;;  %2154 = vmatpush1.bf16.msra.mxu1 %v4744_v11 }
 0x754   :  { %2114 = vmatprep.subr.bf16.mxu0 %v4747_v27  ;;  %2155 = vmatprep.subr.bf16.mxu1 %v4750_v4 }
 0x757   :  { %2115 = vmatpush1.bf16.msra.mxu0 %v4753_v5  ;;  %2156 = vmatpush1.bf16.msra.mxu1 %v4756_v18 }
 0x758   :  { %2116 = vmatprep.subr.bf16.mxu0 %v4801_v1  ;;  %2157 = vmatprep.subr.bf16.mxu1 %v4804_v2 }
 0x75b   :  { %2117 = vmatpush1.bf16.msra.mxu0 %v4807_v6  ;;  %2158 = vmatpush1.bf16.msra.mxu1 %v4810_v3 }
 0x75c   :  { %2118 = vmatprep.subr.bf16.mxu0 %v4813_v9  ;;  %2159 = vmatprep.subr.bf16.mxu1 %v4816_v19 }
 0x75f   :  { %2119 = vmatpush1.bf16.msra.mxu0 %v4819_v16  ;;  %2160 = vmatpush1.bf16.msra.mxu1 %v4822_v17 }
 0x760   :  { %2215 = vmatprep.subr.bf16.mxu0 %v4681_v7  ;;  %2256 = vmatprep.subr.bf16.mxu1 %v4684_v8 }
 0x815   :  { %v2027_v42 = vpop.f32.mrb[68].mxu0  ;;  %v2068_v36 = vpop.f32.mrb[84].mxu1 }
 0x816   :  { %v2075_v37 = vadd.f32 %v2027_v42, %v5399_v32  ;;  %v2077_v52 = vadd.f32 %v2068_v36, %v5400_v34  ;;  %v2029_v35 = vpop.f32.mrb[69].mxu0  ;;  %v2070_v53 = vpop.f32.mrb[85].mxu1 }
 0x817   :  { %v2076_v45 = vadd.f32 %v2029_v35, %v5401_v44  ;;  %v2078_v51 = vadd.f32 %v2070_v53, %v5402_v50  ;;  %v2031_v58 = vpop.f32.mrb[70].mxu0  ;;  %v2072_v49 = vpop.f32.mrb[86].mxu1  ;;  %v5403_v35 = vld [vmem:[#allocation23_spill] sm:$0xff]  ;;  %v5404_v44 = vld [vmem:[#allocation24_spill] sm:$0xff] }
 0x818   :  { %v3380_v59 = vmul.f32 -1.442695, %v2075_v37  ;;  %v2032_v61 = vpop.f32.mrb[71].mxu0  ;;  %v2073_v62 = vpop.f32.mrb[87].mxu1  ;;  %v5405_v58 = vld [vmem:[#allocation25_spill] sm:$0xff] }
 0x819   :  { %v3381_v12 = vmul.f32 -1.442695, %v2076_v45  ;;  %v3382_v13 = vmul.f32 -1.442695, %v2078_v51 }
 0x81a   :  { %3698 = vpow2.f32 %v3380_v59  ;;  %v5406_v59 = vld [vmem:[#allocation26_spill] sm:$0xff] }
 0x81b   :  { %3700 = vpow2.f32 %v3381_v12 }
 0x81c   :  { %3702 = vpow2.f32 %v3382_v13 }
 0x81d   :  { %3704 = vtanh.f32 %v2077_v52 }
 0x824   :  { %v3699_v33 = vpop.eup %3698 }
 0x825   :  { %v3701_v38 = vpop.eup %3700  ;;  %v2082_v41 = vadd.f32 1.0, %v3699_v33 }
 0x826   :  { %v2088_v54 = vadd.f32 1.0, %v3701_v38  ;;  %v3703_v60 = vpop.eup %3702 }
 0x827   :  { %3706 = vrcp.f32 %v2082_v41  ;;  %v3705_v0 = vpop.eup %3704  ;;  %v2095_v30 = vadd.f32 1.0, %v3703_v60 }
 0x828   :  { %3708 = vrcp.f32 %v2088_v54 }
 0x829   :  { %3710 = vrcp.f32 %v2095_v30 }
 0x831   :  { %v3707_v63 = vpop.eup %3706 }
 0x832   :  { %v3709_v28 = vpop.eup %3708  ;;  %v2099_v23 = vmul.f32 %v3707_v63, %v3705_v0 }
 0x833   :  { %v2098_v31 = vmul.f32 %v3709_v28, %v4832_v22  ;;  %v3711_v36 = vpop.eup %3710 }
 0x835   :  { %v4874_v42 = vadd.f32 %v2099_v23, %v2098_v31 }
 0x837   :  { %3712 = vtanh.f32 %v4874_v42 }
 0x841   :  { %v3713_v32 = vpop.eup %3712 }
 0x842   :  { %v2102_v37 = vmul.f32 %v3713_v32, %v3711_v36 }
 0x844   :  { %v2103_v34 = vpack.c.bf16 %v2102_v37, %v2102_v37 }
 0x846   :  { %2137 = vmatmul.mubr.bf16.vlgmr.msra.gmra.mrb[72].mxu0 %v2103_v34  ;;  %2178 = vmatmul.mubr.bf16.vlgmr.msra.gmra.mrb[88].mxu1 %v2103_v34 }
 0x847   :  { %2216 = vmatpush1.bf16.msra.mxu0 %v4645_v48  ;;  %2257 = vmatpush1.bf16.msra.mxu1 %v4648_v56 }
 0x848   :  { %2217 = vmatprep.subr.bf16.mxu0 %v4697_v29  ;;  %2258 = vmatprep.subr.bf16.mxu1 %v4700_v46 }
 0x849   :  { %2247 = vmatprep.mubr.bf16.mxu0 %v5391_v40  ;;  %2288 = vmatprep.mubr.bf16.mxu1 %v5391_v40 }
 0x84b   :  { %2218 = vmatpush1.bf16.msra.mxu0 %v4705_v47  ;;  %2259 = vmatpush1.bf16.msra.mxu1 %v4708_v39 }
 0x84c   :  { %2219 = vmatprep.subr.bf16.mxu0 %v4711_v20  ;;  %2260 = vmatprep.subr.bf16.mxu1 %v4714_v14 }
 0x84f   :  { %2220 = vmatpush1.bf16.msra.mxu0 %v4717_v15  ;;  %2261 = vmatpush1.bf16.msra.mxu1 %v4720_v24 }
 0x850   :  { %2221 = vmatprep.subr.bf16.mxu0 %v4723_v10  ;;  %2262 = vmatprep.subr.bf16.mxu1 %v4726_v25 }
 0x853   :  { %2222 = vmatpush1.bf16.msra.mxu0 %v4729_v57  ;;  %2263 = vmatpush1.bf16.msra.mxu1 %v4732_v26 }
 0x854   :  { %2223 = vmatprep.subr.bf16.mxu0 %v4735_v55  ;;  %2264 = vmatprep.subr.bf16.mxu1 %v4738_v43 }
 0x857   :  { %2224 = vmatpush1.bf16.msra.mxu0 %v4741_v21  ;;  %2265 = vmatpush1.bf16.msra.mxu1 %v4744_v11 }
 0x858   :  { %2225 = vmatprep.subr.bf16.mxu0 %v4747_v27  ;;  %2266 = vmatprep.subr.bf16.mxu1 %v4750_v4 }
 0x85b   :  { %2226 = vmatpush1.bf16.msra.mxu0 %v4753_v5  ;;  %2267 = vmatpush1.bf16.msra.mxu1 %v4756_v18 }
 0x85c   :  { %2227 = vmatprep.subr.bf16.mxu0 %v4801_v1  ;;  %2268 = vmatprep.subr.bf16.mxu1 %v4804_v2 }
 0x85f   :  { %2228 = vmatpush1.bf16.msra.mxu0 %v4807_v6  ;;  %2269 = vmatpush1.bf16.msra.mxu1 %v4810_v3 }
 0x860   :  { %2229 = vmatprep.subr.bf16.mxu0 %v4813_v9  ;;  %2270 = vmatprep.subr.bf16.mxu1 %v4816_v19 }
 0x863   :  { %2230 = vmatpush1.bf16.msra.mxu0 %v4819_v16  ;;  %2271 = vmatpush1.bf16.msra.mxu1 %v4822_v17 }
 0x864   :  { %2326 = vmatprep.subr.bf16.mxu0 %v4681_v7  ;;  %2367 = vmatprep.subr.bf16.mxu1 %v4684_v8 }
 0x919   :  { %v2138_v22 = vpop.f32.mrb[72].mxu0  ;;  %v2179_v52 = vpop.f32.mrb[88].mxu1 }
 0x91a   :  { %v2186_v53 = vadd.f32 %v2138_v22, %v5403_v35  ;;  %v2188_v45 = vadd.f32 %v2179_v52, %v5404_v44  ;;  %v2140_v50 = vpop.f32.mrb[73].mxu0  ;;  %v2181_v51 = vpop.f32.mrb[89].mxu1 }
 0x91b   :  { %v2187_v49 = vadd.f32 %v2140_v50, %v5405_v58  ;;  %v2189_v61 = vadd.f32 %v2181_v51, %v5406_v59  ;;  %v2142_v62 = vpop.f32.mrb[74].mxu0  ;;  %v2183_v12 = vpop.f32.mrb[90].mxu1  ;;  %v5407_v50 = vld [vmem:[#allocation27_spill] sm:$0xff]  ;;  %v5408_v58 = vld [vmem:[#allocation28_spill] sm:$0xff] }
 0x91c   :  { %v3383_v13 = vmul.f32 -1.442695, %v2186_v53  ;;  %v2143_v33 = vpop.f32.mrb[75].mxu0  ;;  %v2184_v38 = vpop.f32.mrb[91].mxu1  ;;  %v5409_v62 = vld [vmem:[#allocation29_spill] sm:$0xff] }
 0x91d   :  { %v3384_v41 = vmul.f32 -1.442695, %v2187_v49  ;;  %v3385_v54 = vmul.f32 -1.442695, %v2189_v61 }
 0x91e   :  { %3714 = vpow2.f32 %v3383_v13  ;;  %v5410_v13 = vld [vmem:[#allocation30_spill] sm:$0xff] }
 0x91f   :  { %3716 = vpow2.f32 %v3384_v41 }
 0x920   :  { %3718 = vpow2.f32 %v3385_v54 }
 0x921   :  { %3720 = vtanh.f32 %v2188_v45 }
 0x928   :  { %v3715_v60 = vpop.eup %3714 }
 0x929   :  { %v3717_v0 = vpop.eup %3716  ;;  %v2193_v63 = vadd.f32 1.0, %v3715_v60 }
 0x92a   :  { %v2199_v28 = vadd.f32 1.0, %v3717_v0  ;;  %v3719_v23 = vpop.eup %3718 }
 0x92b   :  { %3722 = vrcp.f32 %v2193_v63  ;;  %v3721_v30 = vpop.eup %3720  ;;  %v2206_v37 = vadd.f32 1.0, %v3719_v23 }
 0x92c   :  { %3724 = vrcp.f32 %v2199_v28 }
 0x92d   :  { %3726 = vrcp.f32 %v2206_v37 }
 0x935   :  { %v3723_v31 = vpop.eup %3722 }
 0x936   :  { %v3725_v36 = vpop.eup %3724  ;;  %v2210_v32 = vmul.f32 %v3723_v31, %v3721_v30 }
 0x937   :  { %v2209_v34 = vmul.f32 %v3725_v36, %v4874_v42  ;;  %v3727_v52 = vpop.eup %3726 }
 0x939   :  { %v4916_v22 = vadd.f32 %v2210_v32, %v2209_v34 }
 0x93b   :  { %3728 = vtanh.f32 %v4916_v22 }
 0x945   :  { %v3729_v35 = vpop.eup %3728 }
 0x946   :  { %v2213_v53 = vmul.f32 %v3729_v35, %v3727_v52 }
 0x948   :  { %v2214_v44 = vpack.c.bf16 %v2213_v53, %v2213_v53 }
 0x94a   :  { %2248 = vmatmul.mubr.bf16.vlgmr.msra.gmra.mrb[76].mxu0 %v2214_v44  ;;  %2289 = vmatmul.mubr.bf16.vlgmr.msra.gmra.mrb[92].mxu1 %v2214_v44 }
 0x94b   :  { %2327 = vmatpush1.bf16.msra.mxu0 %v4645_v48  ;;  %2368 = vmatpush1.bf16.msra.mxu1 %v4648_v56 }
 0x94c   :  { %2328 = vmatprep.subr.bf16.mxu0 %v4697_v29  ;;  %2369 = vmatprep.subr.bf16.mxu1 %v4700_v46 }
 0x94d   :  { %2358 = vmatprep.mubr.bf16.mxu0 %v5391_v40  ;;  %2399 = vmatprep.mubr.bf16.mxu1 %v5391_v40 }
 0x94f   :  { %2329 = vmatpush1.bf16.msra.mxu0 %v4705_v47  ;;  %2370 = vmatpush1.bf16.msra.mxu1 %v4708_v39 }
 0x950   :  { %2330 = vmatprep.subr.bf16.mxu0 %v4711_v20  ;;  %2371 = vmatprep.subr.bf16.mxu1 %v4714_v14 }
 0x953   :  { %2331 = vmatpush1.bf16.msra.mxu0 %v4717_v15  ;;  %2372 = vmatpush1.bf16.msra.mxu1 %v4720_v24 }
 0x954   :  { %2332 = vmatprep.subr.bf16.mxu0 %v4723_v10  ;;  %2373 = vmatprep.subr.bf16.mxu1 %v4726_v25 }
 0x957   :  { %2333 = vmatpush1.bf16.msra.mxu0 %v4729_v57  ;;  %2374 = vmatpush1.bf16.msra.mxu1 %v4732_v26 }
 0x958   :  { %2334 = vmatprep.subr.bf16.mxu0 %v4735_v55  ;;  %2375 = vmatprep.subr.bf16.mxu1 %v4738_v43 }
 0x95b   :  { %2335 = vmatpush1.bf16.msra.mxu0 %v4741_v21  ;;  %2376 = vmatpush1.bf16.msra.mxu1 %v4744_v11 }
 0x95c   :  { %2336 = vmatprep.subr.bf16.mxu0 %v4747_v27  ;;  %2377 = vmatprep.subr.bf16.mxu1 %v4750_v4 }
 0x95f   :  { %2337 = vmatpush1.bf16.msra.mxu0 %v4753_v5  ;;  %2378 = vmatpush1.bf16.msra.mxu1 %v4756_v18 }
 0x960   :  { %2338 = vmatprep.subr.bf16.mxu0 %v4801_v1  ;;  %2379 = vmatprep.subr.bf16.mxu1 %v4804_v2 }
 0x963   :  { %2339 = vmatpush1.bf16.msra.mxu0 %v4807_v6  ;;  %2380 = vmatpush1.bf16.msra.mxu1 %v4810_v3 }
 0x964   :  { %2340 = vmatprep.subr.bf16.mxu0 %v4813_v9  ;;  %2381 = vmatprep.subr.bf16.mxu1 %v4816_v19 }
 0x967   :  { %2341 = vmatpush1.bf16.msra.mxu0 %v4819_v16  ;;  %2382 = vmatpush1.bf16.msra.mxu1 %v4822_v17 }
 0x968   :  { %2437 = vmatprep.subr.bf16.mxu0 %v4681_v7  ;;  %2478 = vmatprep.subr.bf16.mxu1 %v4684_v8 }
 0xa1d   :  { %v2249_v42 = vpop.f32.mrb[76].mxu0  ;;  %v2290_v45 = vpop.f32.mrb[92].mxu1 }
 0xa1e   :  { %v2297_v51 = vadd.f32 %v2249_v42, %v5407_v50  ;;  %v2299_v49 = vadd.f32 %v2290_v45, %v5408_v58  ;;  %v2251_v59 = vpop.f32.mrb[77].mxu0  ;;  %v2292_v61 = vpop.f32.mrb[93].mxu1 }
 0xa1f   :  { %v2298_v12 = vadd.f32 %v2251_v59, %v5409_v62  ;;  %v2300_v33 = vadd.f32 %v2292_v61, %v5410_v13  ;;  %v2253_v38 = vpop.f32.mrb[78].mxu0  ;;  %v2294_v41 = vpop.f32.mrb[94].mxu1  ;;  %v5412_v59 = vld [vmem:[#allocation32_spill] sm:$0xff]  ;;  %v5413_v13 = vld [vmem:[#allocation33_spill] sm:$0xff] }
 0xa20   :  { %v3386_v54 = vmul.f32 -1.442695, %v2297_v51  ;;  %v2254_v60 = vpop.f32.mrb[79].mxu0  ;;  %v2295_v0 = vpop.f32.mrb[95].mxu1  ;;  %v5414_v38 = vld [vmem:[#allocation34_spill] sm:$0xff] }
 0xa21   :  { %v3387_v63 = vmul.f32 -1.442695, %v2298_v12  ;;  %v3388_v28 = vmul.f32 -1.442695, %v2300_v33 }
 0xa22   :  { %3730 = vpow2.f32 %v3386_v54 }
 0xa23   :  { %3732 = vpow2.f32 %v3387_v63 }
 0xa24   :  { %3734 = vpow2.f32 %v3388_v28 }
 0xa25   :  { %3736 = vtanh.f32 %v2299_v49 }
 0xa2c   :  { %v3731_v23 = vpop.eup %3730 }
 0xa2d   :  { %v3733_v30 = vpop.eup %3732  ;;  %v2304_v31 = vadd.f32 1.0, %v3731_v23 }
 0xa2e   :  { %v2310_v36 = vadd.f32 1.0, %v3733_v30  ;;  %v3735_v32 = vpop.eup %3734 }
 0xa2f   :  { %3738 = vrcp.f32 %v2304_v31  ;;  %v3737_v37 = vpop.eup %3736  ;;  %v2317_v53 = vadd.f32 1.0, %v3735_v32 }
 0xa30   :  { %3740 = vrcp.f32 %v2310_v36 }
 0xa31   :  { %3742 = vrcp.f32 %v2317_v53 }
 0xa39   :  { %v3739_v34 = vpop.eup %3738 }
 0xa3a   :  { %v3741_v52 = vpop.eup %3740  ;;  %v2321_v35 = vmul.f32 %v3739_v34, %v3737_v37 }
 0xa3b   :  { %v2320_v44 = vmul.f32 %v3741_v52, %v4916_v22  ;;  %v3743_v45 = vpop.eup %3742  ;;  %v5411_v22 = vld [vmem:[#allocation31_spill] sm:$0xff] }
 0xa3d   :  { %v4958_v42 = vadd.f32 %v2321_v35, %v2320_v44 }
 0xa3f   :  { %3744 = vtanh.f32 %v4958_v42 }
 0xa49   :  { %v3745_v50 = vpop.eup %3744 }
 0xa4a   :  { %v2324_v51 = vmul.f32 %v3745_v50, %v3743_v45 }
 0xa4c   :  { %v2325_v58 = vpack.c.bf16 %v2324_v51, %v2324_v51 }
 0xa4e   :  { %2359 = vmatmul.mubr.bf16.vlgmr.msra.gmra.mrb[80].mxu0 %v2325_v58  ;;  %2400 = vmatmul.mubr.bf16.vlgmr.msra.gmra.mrb[96].mxu1 %v2325_v58 }
 0xa4f   :  { %2438 = vmatpush1.bf16.msra.mxu0 %v4645_v48  ;;  %2479 = vmatpush1.bf16.msra.mxu1 %v4648_v56 }
 0xa50   :  { %2439 = vmatprep.subr.bf16.mxu0 %v4697_v29  ;;  %2480 = vmatprep.subr.bf16.mxu1 %v4700_v46 }
 0xa51   :  { %2469 = vmatprep.mubr.bf16.mxu0 %v5391_v40  ;;  %2510 = vmatprep.mubr.bf16.mxu1 %v5391_v40 }
 0xa53   :  { %2440 = vmatpush1.bf16.msra.mxu0 %v4705_v47  ;;  %2481 = vmatpush1.bf16.msra.mxu1 %v4708_v39 }
 0xa54   :  { %2441 = vmatprep.subr.bf16.mxu0 %v4711_v20  ;;  %2482 = vmatprep.subr.bf16.mxu1 %v4714_v14 }
 0xa57   :  { %2442 = vmatpush1.bf16.msra.mxu0 %v4717_v15  ;;  %2483 = vmatpush1.bf16.msra.mxu1 %v4720_v24 }
 0xa58   :  { %2443 = vmatprep.subr.bf16.mxu0 %v4723_v10  ;;  %2484 = vmatprep.subr.bf16.mxu1 %v4726_v25 }
 0xa5b   :  { %2444 = vmatpush1.bf16.msra.mxu0 %v4729_v57  ;;  %2485 = vmatpush1.bf16.msra.mxu1 %v4732_v26 }
 0xa5c   :  { %2445 = vmatprep.subr.bf16.mxu0 %v4735_v55  ;;  %2486 = vmatprep.subr.bf16.mxu1 %v4738_v43 }
 0xa5f   :  { %2446 = vmatpush1.bf16.msra.mxu0 %v4741_v21  ;;  %2487 = vmatpush1.bf16.msra.mxu1 %v4744_v11 }
 0xa60   :  { %2447 = vmatprep.subr.bf16.mxu0 %v4747_v27  ;;  %2488 = vmatprep.subr.bf16.mxu1 %v4750_v4 }
 0xa63   :  { %2448 = vmatpush1.bf16.msra.mxu0 %v4753_v5  ;;  %2489 = vmatpush1.bf16.msra.mxu1 %v4756_v18 }
 0xa64   :  { %2449 = vmatprep.subr.bf16.mxu0 %v4801_v1  ;;  %2490 = vmatprep.subr.bf16.mxu1 %v4804_v2 }
 0xa67   :  { %2450 = vmatpush1.bf16.msra.mxu0 %v4807_v6  ;;  %2491 = vmatpush1.bf16.msra.mxu1 %v4810_v3 }
 0xa68   :  { %2451 = vmatprep.subr.bf16.mxu0 %v4813_v9  ;;  %2492 = vmatprep.subr.bf16.mxu1 %v4816_v19 }
 0xa6b   :  { %2452 = vmatpush1.bf16.msra.mxu0 %v4819_v16  ;;  %2493 = vmatpush1.bf16.msra.mxu1 %v4822_v17 }
 0xa6c   :  { %2548 = vmatprep.subr.bf16.mxu0 %v4681_v7  ;;  %2589 = vmatprep.subr.bf16.mxu1 %v4684_v8 }
 0xb21   :  { %v2360_v48 = vpop.f32.mrb[80].mxu0  ;;  %v2401_v56 = vpop.f32.mrb[96].mxu1 }
 0xb22   :  { %v2408_v49 = vadd.f32 %v2360_v48, %v5411_v22  ;;  %v2410_v61 = vadd.f32 %v2401_v56, %v5412_v59  ;;  %v2362_v62 = vpop.f32.mrb[81].mxu0  ;;  %v2403_v12 = vpop.f32.mrb[97].mxu1  ;;  %v5003_v56 = vld [vmem:[#allocation7] ss:$16 sps:$4 sm:$0xff]   ;;  %v5006_v22 = vld [vmem:[#allocation7 + $0x8] ss:$16 sps:$4 sm:$0xff]  }
 0xb23   :  { %v2409_v33 = vadd.f32 %v2362_v62, %v5413_v13  ;;  %v2411_v41 = vadd.f32 %v2403_v12, %v5414_v38  ;;  %v2364_v54 = vpop.f32.mrb[82].mxu0  ;;  %v2405_v60 = vpop.f32.mrb[98].mxu1 }
 0xb24   :  { %v3389_v0 = vmul.f32 -1.442695, %v2408_v49  ;;  %v2365_v63 = vpop.f32.mrb[83].mxu0  ;;  %v2406_v28 = vpop.f32.mrb[99].mxu1 }
 0xb25   :  { %v3390_v7 = vmul.f32 -1.442695, %v2409_v33  ;;  %v3391_v8 = vmul.f32 -1.442695, %v2411_v41 }
 0xb26   :  { %3746 = vpow2.f32 %v3389_v0 }
 0xb27   :  { %3748 = vpow2.f32 %v3390_v7 }
 0xb28   :  { %3750 = vpow2.f32 %v3391_v8 }
 0xb29   :  { %3752 = vtanh.f32 %v2410_v61 }
 0xb30   :  { %v3747_v23 = vpop.eup %3746 }
 0xb31   :  { %v3749_v30 = vpop.eup %3748  ;;  %v2415_v31 = vadd.f32 1.0, %v3747_v23  ;;  %v5055_v23 = vld [vmem:[#allocation7 + $0x24] ss:$16 sps:$4 sm:$0xff]  }
 0xb32   :  { %v2421_v36 = vadd.f32 1.0, %v3749_v30  ;;  %v3751_v32 = vpop.eup %3750  ;;  %v5058_v30 = vld [vmem:[#allocation7 + $0x2c] ss:$16 sps:$4 sm:$0xff]  }
 0xb33   :  { %3754 = vrcp.f32 %v2415_v31  ;;  %v3753_v37 = vpop.eup %3752  ;;  %v2428_v53 = vadd.f32 1.0, %v3751_v32  ;;  %v5063_v31 = vld [vmem:[#allocation7 + $0x20] ss:$16 sps:$4 sm:$0xff]   ;;  %v5069_v32 = vld [vmem:[#allocation7 + $0x44] ss:$16 sps:$4 sm:$0xff]  }
 0xb34   :  { %3756 = vrcp.f32 %v2421_v36  ;;  %v5066_v36 = vld [vmem:[#allocation7 + $0x28] ss:$16 sps:$4 sm:$0xff]  }
 0xb35   :  { %3758 = vrcp.f32 %v2428_v53  ;;  %v5084_v53 = vld [vmem:[#allocation7 + $0x6c] ss:$16 sps:$4 sm:$0xff]  }
 0xb3d   :  { %v3755_v34 = vpop.eup %3754 }
 0xb3e   :  { %v3757_v52 = vpop.eup %3756  ;;  %v2432_v35 = vmul.f32 %v3755_v34, %v3753_v37  ;;  %v5072_v37 = vld [vmem:[#allocation7 + $0x4c] ss:$16 sps:$4 sm:$0xff]   ;;  %v5075_v34 = vld [vmem:[#allocation7 + $0x40] ss:$16 sps:$4 sm:$0xff]  }
 0xb3f   :  { %v2431_v44 = vmul.f32 %v3757_v52, %v4958_v42  ;;  %v3759_v50 = vpop.eup %3758  ;;  %v5078_v52 = vld [vmem:[#allocation7 + $0x48] ss:$16 sps:$4 sm:$0xff]  }
 0xb41   :  { %v5000_v45 = vadd.f32 %v2432_v35, %v2431_v44  ;;  %v5081_v35 = vld [vmem:[#allocation7 + $0x64] ss:$16 sps:$4 sm:$0xff]   ;;  %v5087_v44 = vld [vmem:[#allocation7 + $0x60] ss:$16 sps:$4 sm:$0xff]  }
 0xb43   :  { %3760 = vtanh.f32 %v5000_v45 }
 0xb4d   :  { %v3761_v51 = vpop.eup %3760 }
 0xb4e   :  { %v2435_v58 = vmul.f32 %v3761_v51, %v3759_v50  ;;  %v5093_v50 = vld [vmem:[#allocation7 + $0x84] ss:$16 sps:$4 sm:$0xff]   ;;  %v5096_v51 = vld [vmem:[#allocation7 + $0x8c] ss:$16 sps:$4 sm:$0xff]  }
 0xb50   :  { %v2436_v48 = vpack.c.bf16 %v2435_v58, %v2435_v58  ;;  %v5099_v58 = vld [vmem:[#allocation7 + $0x80] ss:$16 sps:$4 sm:$0xff]  }
 0xb52   :  { %2470 = vmatmul.mubr.bf16.vlgmr.msra.gmra.mrb[84].mxu0 %v2436_v48  ;;  %2511 = vmatmul.mubr.bf16.vlgmr.msra.gmra.mrb[100].mxu1 %v2436_v48  ;;  %v5102_v48 = vld [vmem:[#allocation7 + $0x88] ss:$16 sps:$4 sm:$0xff]  }
 0xb53   :  { %2549 = vmatpush1.bf16.msra.mxu0 %v5003_v56  ;;  %2590 = vmatpush1.bf16.msra.mxu1 %v5006_v22 }
 0xb54   :  { %2550 = vmatprep.subr.bf16.mxu0 %v4697_v29  ;;  %2591 = vmatprep.subr.bf16.mxu1 %v4700_v46  ;;  %v5039_v29 = vld [vmem:[#allocation7 + $0x4] ss:$16 sps:$4 sm:$0xff]   ;;  %v5042_v46 = vld [vmem:[#allocation7 + $0xc] ss:$16 sps:$4 sm:$0xff]  }
 0xb55   :  { %2580 = vmatprep.mubr.bf16.mxu0 %v5391_v40  ;;  %2621 = vmatprep.mubr.bf16.mxu1 %v5391_v40 }
 0xb57   :  { %2551 = vmatpush1.bf16.msra.mxu0 %v4705_v47  ;;  %2592 = vmatpush1.bf16.msra.mxu1 %v4708_v39 }
 0xb58   :  { %2552 = vmatprep.subr.bf16.mxu0 %v4711_v20  ;;  %2593 = vmatprep.subr.bf16.mxu1 %v4714_v14  ;;  %v5415_v20 = vld [vmem:[#allocation35_spill] sm:$0xff] }
 0xb5b   :  { %2553 = vmatpush1.bf16.msra.mxu0 %v4717_v15  ;;  %2594 = vmatpush1.bf16.msra.mxu1 %v4720_v24  ;;  %v5416_v15 = vld [vmem:[#allocation36_spill] sm:$0xff] }
 0xb5c   :  { %2554 = vmatprep.subr.bf16.mxu0 %v4723_v10  ;;  %2595 = vmatprep.subr.bf16.mxu1 %v4726_v25 }
 0xb5f   :  { %2555 = vmatpush1.bf16.msra.mxu0 %v4729_v57  ;;  %2596 = vmatpush1.bf16.msra.mxu1 %v4732_v26  ;;  %v5417_v57 = vld [vmem:[#allocation37_spill] sm:$0xff] }
 0xb60   :  { %2556 = vmatprep.subr.bf16.mxu0 %v4735_v55  ;;  %2597 = vmatprep.subr.bf16.mxu1 %v4738_v43  ;;  %v5418_v55 = vld [vmem:[#allocation38_spill] sm:$0xff] }
 0xb63   :  { %2557 = vmatpush1.bf16.msra.mxu0 %v4741_v21  ;;  %2598 = vmatpush1.bf16.msra.mxu1 %v4744_v11 }
 0xb64   :  { %2558 = vmatprep.subr.bf16.mxu0 %v4747_v27  ;;  %2599 = vmatprep.subr.bf16.mxu1 %v4750_v4 }
 0xb67   :  { %2559 = vmatpush1.bf16.msra.mxu0 %v4753_v5  ;;  %2600 = vmatpush1.bf16.msra.mxu1 %v4756_v18 }
 0xb68   :  { %2560 = vmatprep.subr.bf16.mxu0 %v4801_v1  ;;  %2601 = vmatprep.subr.bf16.mxu1 %v4804_v2 }
 0xb6b   :  { %2561 = vmatpush1.bf16.msra.mxu0 %v4807_v6  ;;  %2602 = vmatpush1.bf16.msra.mxu1 %v4810_v3 }
 0xb6c   :  { %2562 = vmatprep.subr.bf16.mxu0 %v4813_v9  ;;  %2603 = vmatprep.subr.bf16.mxu1 %v4816_v19 }
 0xb6f   :  { %2563 = vmatpush1.bf16.msra.mxu0 %v4819_v16  ;;  %2604 = vmatpush1.bf16.msra.mxu1 %v4822_v17 }
 0xb70   :  { %2659 = vmatprep.subr.bf16.mxu0 %v5039_v29  ;;  %2700 = vmatprep.subr.bf16.mxu1 %v5042_v46 }
 0xc25   :  { %v2471_v47 = vpop.f32.mrb[84].mxu0  ;;  %v2512_v39 = vpop.f32.mrb[100].mxu1 }
 0xc26   :  { %v2519_v14 = vadd.f32 %v2471_v47, %v5415_v20  ;;  %v2521_v24 = vadd.f32 %v2512_v39, %v5416_v15  ;;  %v2473_v10 = vpop.f32.mrb[85].mxu0  ;;  %v2514_v25 = vpop.f32.mrb[101].mxu1  ;;  %v5105_v47 = vld [vmem:[#allocation7 + $0xa4] ss:$16 sps:$4 sm:$0xff]   ;;  %v5108_v39 = vld [vmem:[#allocation7 + $0xac] ss:$16 sps:$4 sm:$0xff]  }
 0xc27   :  { %v2520_v26 = vadd.f32 %v2473_v10, %v5417_v57  ;;  %v2522_v43 = vadd.f32 %v2514_v25, %v5418_v55  ;;  %v2475_v21 = vpop.f32.mrb[86].mxu0  ;;  %v2516_v11 = vpop.f32.mrb[102].mxu1  ;;  %v5111_v20 = vld [vmem:[#allocation7 + $0xa0] ss:$16 sps:$4 sm:$0xff]   ;;  %v5420_v10 = vld [vmem:[#allocation40_spill] sm:$0xff] }
 0xc28   :  { %v3392_v27 = vmul.f32 -1.442695, %v2519_v14  ;;  %v2476_v4 = vpop.f32.mrb[87].mxu0  ;;  %v2517_v5 = vpop.f32.mrb[103].mxu1  ;;  %v5114_v14 = vld [vmem:[#allocation7 + $0xa8] ss:$16 sps:$4 sm:$0xff]  }
 0xc29   :  { %v3393_v18 = vmul.f32 -1.442695, %v2520_v26  ;;  %v3394_v42 = vmul.f32 -1.442695, %v2522_v43  ;;  %v5421_v57 = vld [vmem:[#allocation41_spill] sm:$0xff]  ;;  %v5422_v26 = vld [vmem:[#allocation42_spill] sm:$0xff] }
 0xc2a   :  { %3762 = vpow2.f32 %v3392_v27 }
 0xc2b   :  { %3764 = vpow2.f32 %v3393_v18 }
 0xc2c   :  { %3766 = vpow2.f32 %v3394_v42 }
 0xc2d   :  { %3768 = vtanh.f32 %v2521_v24  ;;  %v5419_v24 = vld [vmem:[#allocation39_spill] sm:$0xff] }
 0xc34   :  { %v3763_v49 = vpop.eup %3762 }
 0xc35   :  { %v3765_v59 = vpop.eup %3764  ;;  %v2526_v61 = vadd.f32 1.0, %v3763_v49 }
 0xc36   :  { %v2532_v62 = vadd.f32 1.0, %v3765_v59  ;;  %v3767_v12 = vpop.eup %3766 }
 0xc37   :  { %3770 = vrcp.f32 %v2526_v61  ;;  %v3769_v13 = vpop.eup %3768  ;;  %v2539_v54 = vadd.f32 1.0, %v3767_v12 }
 0xc38   :  { %3772 = vrcp.f32 %v2532_v62 }
 0xc39   :  { %3774 = vrcp.f32 %v2539_v54 }
 0xc41   :  { %v3771_v33 = vpop.eup %3770 }
 0xc42   :  { %v3773_v38 = vpop.eup %3772  ;;  %v2543_v41 = vmul.f32 %v3771_v33, %v3769_v13 }
 0xc43   :  { %v2542_v60 = vmul.f32 %v3773_v38, %v5000_v45  ;;  %v3775_v63 = vpop.eup %3774  ;;  %v5090_v45 = vld [vmem:[#allocation7 + $0x68] ss:$16 sps:$4 sm:$0xff]  }
 0xc45   :  { %v5050_v0 = vadd.f32 %v2543_v41, %v2542_v60 }
 0xc47   :  { %3776 = vtanh.f32 %v5050_v0 }
 0xc51   :  { %v3777_v28 = vpop.eup %3776 }
 0xc52   :  { %v2546_v7 = vmul.f32 %v3777_v28, %v3775_v63  ;;  %v5162_v28 = vld [vmem:[#allocation7 + $0xcc] ss:$16 sps:$4 sm:$0xff]  }
 0xc54   :  { %v2547_v8 = vpack.c.bf16 %v2546_v7, %v2546_v7  ;;  %v5165_v7 = vld [vmem:[#allocation7 + $0xc0] ss:$16 sps:$4 sm:$0xff]  }
 0xc56   :  { %2581 = vmatmul.mubr.bf16.vlgmr.msra.gmra.mrb[88].mxu0 %v2547_v8  ;;  %2622 = vmatmul.mubr.bf16.vlgmr.msra.gmra.mrb[104].mxu1 %v2547_v8  ;;  %v5168_v8 = vld [vmem:[#allocation7 + $0xc8] ss:$16 sps:$4 sm:$0xff]  }
 0xc57   :  { %2660 = vmatpush1.bf16.msra.mxu0 %v5003_v56  ;;  %2701 = vmatpush1.bf16.msra.mxu1 %v5006_v22 }
 0xc58   :  { %2661 = vmatprep.subr.bf16.mxu0 %v5055_v23  ;;  %2702 = vmatprep.subr.bf16.mxu1 %v5058_v30 }
 0xc59   :  { %2691 = vmatprep.mubr.bf16.mxu0 %v5391_v40  ;;  %2732 = vmatprep.mubr.bf16.mxu1 %v5391_v40 }
 0xc5b   :  { %2662 = vmatpush1.bf16.msra.mxu0 %v5063_v31  ;;  %2703 = vmatpush1.bf16.msra.mxu1 %v5066_v36 }
 0xc5c   :  { %2663 = vmatprep.subr.bf16.mxu0 %v5069_v32  ;;  %2704 = vmatprep.subr.bf16.mxu1 %v5072_v37 }
 0xc5f   :  { %2664 = vmatpush1.bf16.msra.mxu0 %v5075_v34  ;;  %2705 = vmatpush1.bf16.msra.mxu1 %v5078_v52 }
 0xc60   :  { %2665 = vmatprep.subr.bf16.mxu0 %v5081_v35  ;;  %2706 = vmatprep.subr.bf16.mxu1 %v5084_v53 }
 0xc63   :  { %2666 = vmatpush1.bf16.msra.mxu0 %v5087_v44  ;;  %2707 = vmatpush1.bf16.msra.mxu1 %v5090_v45 }
 0xc64   :  { %2667 = vmatprep.subr.bf16.mxu0 %v5093_v50  ;;  %2708 = vmatprep.subr.bf16.mxu1 %v5096_v51 }
 0xc67   :  { %2668 = vmatpush1.bf16.msra.mxu0 %v5099_v58  ;;  %2709 = vmatpush1.bf16.msra.mxu1 %v5102_v48 }
 0xc68   :  { %2669 = vmatprep.subr.bf16.mxu0 %v5105_v47  ;;  %2710 = vmatprep.subr.bf16.mxu1 %v5108_v39 }
 0xc6b   :  { %2670 = vmatpush1.bf16.msra.mxu0 %v5111_v20  ;;  %2711 = vmatpush1.bf16.msra.mxu1 %v5114_v14 }
 0xc6c   :  { %2671 = vmatprep.subr.bf16.mxu0 %v4801_v1  ;;  %2712 = vmatprep.subr.bf16.mxu1 %v4804_v2 }
 0xc6f   :  { %2672 = vmatpush1.bf16.msra.mxu0 %v4807_v6  ;;  %2713 = vmatpush1.bf16.msra.mxu1 %v4810_v3 }
 0xc70   :  { %2673 = vmatprep.subr.bf16.mxu0 %v4813_v9  ;;  %2714 = vmatprep.subr.bf16.mxu1 %v4816_v19 }
 0xc73   :  { %2674 = vmatpush1.bf16.msra.mxu0 %v4819_v16  ;;  %2715 = vmatpush1.bf16.msra.mxu1 %v4822_v17 }
 0xc74   :  { %2770 = vmatprep.subr.bf16.mxu0 %v5039_v29  ;;  %2811 = vmatprep.subr.bf16.mxu1 %v5042_v46 }
 0xd29   :  { %v2582_v15 = vpop.f32.mrb[88].mxu0  ;;  %v2623_v1 = vpop.f32.mrb[104].mxu1 }
 0xd2a   :  { %v2630_v2 = vadd.f32 %v2582_v15, %v5419_v24  ;;  %v2632_v6 = vadd.f32 %v2623_v1, %v5420_v10  ;;  %v2584_v25 = vpop.f32.mrb[89].mxu0  ;;  %v2625_v3 = vpop.f32.mrb[105].mxu1  ;;  %v5171_v15 = vld [vmem:[#allocation7 + $0xe4] ss:$16 sps:$4 sm:$0xff]   ;;  %v5174_v1 = vld [vmem:[#allocation7 + $0xec] ss:$16 sps:$4 sm:$0xff]  }
 0xd2b   :  { %v2631_v9 = vadd.f32 %v2584_v25, %v5421_v57  ;;  %v2633_v19 = vadd.f32 %v2625_v3, %v5422_v26  ;;  %v2586_v55 = vpop.f32.mrb[90].mxu0  ;;  %v2627_v16 = vpop.f32.mrb[106].mxu1  ;;  %v5177_v24 = vld [vmem:[#allocation7 + $0xe0] ss:$16 sps:$4 sm:$0xff]   ;;  %v5424_v57 = vld [vmem:[#allocation44_spill] sm:$0xff] }
 0xd2c   :  { %v3395_v43 = vmul.f32 -1.442695, %v2630_v2  ;;  %v2587_v17 = vpop.f32.mrb[91].mxu0  ;;  %v2628_v21 = vpop.f32.mrb[107].mxu1  ;;  %v5180_v2 = vld [vmem:[#allocation7 + $0xe8] ss:$16 sps:$4 sm:$0xff]  }
 0xd2d   :  { %v3396_v11 = vmul.f32 -1.442695, %v2631_v9  ;;  %v3397_v27 = vmul.f32 -1.442695, %v2633_v19  ;;  %v5423_v25 = vld [vmem:[#allocation43_spill] sm:$0xff]  ;;  %v5425_v55 = vld [vmem:[#allocation45_spill] sm:$0xff] }
 0xd2e   :  { %3778 = vpow2.f32 %v3395_v43  ;;  %v5426_v43 = vld [vmem:[#allocation46_spill] sm:$0xff] }
 0xd2f   :  { %3780 = vpow2.f32 %v3396_v11 }
 0xd30   :  { %3782 = vpow2.f32 %v3397_v27 }
 0xd31   :  { %3784 = vtanh.f32 %v2632_v6 }
 0xd38   :  { %v3779_v4 = vpop.eup %3778 }
 0xd39   :  { %v3781_v5 = vpop.eup %3780  ;;  %v2637_v18 = vadd.f32 1.0, %v3779_v4 }
 0xd3a   :  { %v2643_v42 = vadd.f32 1.0, %v3781_v5  ;;  %v3783_v49 = vpop.eup %3782 }
 0xd3b   :  { %3786 = vrcp.f32 %v2637_v18  ;;  %v3785_v59 = vpop.eup %3784  ;;  %v2650_v13 = vadd.f32 1.0, %v3783_v49 }
 0xd3c   :  { %3788 = vrcp.f32 %v2643_v42 }
 0xd3d   :  { %3790 = vrcp.f32 %v2650_v13 }
 0xd45   :  { %v3787_v61 = vpop.eup %3786 }
 0xd46   :  { %v3789_v62 = vpop.eup %3788  ;;  %v2654_v12 = vmul.f32 %v3787_v61, %v3785_v59 }
 0xd47   :  { %v2653_v33 = vmul.f32 %v3789_v62, %v5050_v0  ;;  %v3791_v41 = vpop.eup %3790  ;;  %v5159_v0 = vld [vmem:[#allocation7 + $0xc4] ss:$16 sps:$4 sm:$0xff]  }
 0xd49   :  { %v5132_v38 = vadd.f32 %v2654_v12, %v2653_v33 }
 0xd4b   :  { %3792 = vtanh.f32 %v5132_v38 }
 0xd55   :  { %v3793_v54 = vpop.eup %3792 }
 0xd56   :  { %v2657_v60 = vmul.f32 %v3793_v54, %v3791_v41 }
 0xd58   :  { %v2658_v63 = vpack.c.bf16 %v2657_v60, %v2657_v60 }
 0xd5a   :  { %2692 = vmatmul.mubr.bf16.vlgmr.msra.gmra.mrb[92].mxu0 %v2658_v63  ;;  %2733 = vmatmul.mubr.bf16.vlgmr.msra.gmra.mrb[108].mxu1 %v2658_v63 }
 0xd5b   :  { %2771 = vmatpush1.bf16.msra.mxu0 %v5003_v56  ;;  %2812 = vmatpush1.bf16.msra.mxu1 %v5006_v22 }
 0xd5c   :  { %2772 = vmatprep.subr.bf16.mxu0 %v5055_v23  ;;  %2813 = vmatprep.subr.bf16.mxu1 %v5058_v30 }
 0xd5d   :  { %2802 = vmatprep.mubr.bf16.mxu0 %v5391_v40  ;;  %2843 = vmatprep.mubr.bf16.mxu1 %v5391_v40 }
 0xd5f   :  { %2773 = vmatpush1.bf16.msra.mxu0 %v5063_v31  ;;  %2814 = vmatpush1.bf16.msra.mxu1 %v5066_v36 }
 0xd60   :  { %2774 = vmatprep.subr.bf16.mxu0 %v5069_v32  ;;  %2815 = vmatprep.subr.bf16.mxu1 %v5072_v37 }
 0xd63   :  { %2775 = vmatpush1.bf16.msra.mxu0 %v5075_v34  ;;  %2816 = vmatpush1.bf16.msra.mxu1 %v5078_v52 }
 0xd64   :  { %2776 = vmatprep.subr.bf16.mxu0 %v5081_v35  ;;  %2817 = vmatprep.subr.bf16.mxu1 %v5084_v53 }
 0xd67   :  { %2777 = vmatpush1.bf16.msra.mxu0 %v5087_v44  ;;  %2818 = vmatpush1.bf16.msra.mxu1 %v5090_v45 }
 0xd68   :  { %2778 = vmatprep.subr.bf16.mxu0 %v5093_v50  ;;  %2819 = vmatprep.subr.bf16.mxu1 %v5096_v51 }
 0xd6b   :  { %2779 = vmatpush1.bf16.msra.mxu0 %v5099_v58  ;;  %2820 = vmatpush1.bf16.msra.mxu1 %v5102_v48 }
 0xd6c   :  { %2780 = vmatprep.subr.bf16.mxu0 %v5105_v47  ;;  %2821 = vmatprep.subr.bf16.mxu1 %v5108_v39 }
 0xd6f   :  { %2781 = vmatpush1.bf16.msra.mxu0 %v5111_v20  ;;  %2822 = vmatpush1.bf16.msra.mxu1 %v5114_v14 }
 0xd70   :  { %2782 = vmatprep.subr.bf16.mxu0 %v5159_v0  ;;  %2823 = vmatprep.subr.bf16.mxu1 %v5162_v28 }
 0xd73   :  { %2783 = vmatpush1.bf16.msra.mxu0 %v5165_v7  ;;  %2824 = vmatpush1.bf16.msra.mxu1 %v5168_v8 }
 0xd74   :  { %2784 = vmatprep.subr.bf16.mxu0 %v5171_v15  ;;  %2825 = vmatprep.subr.bf16.mxu1 %v5174_v1 }
 0xd77   :  { %2785 = vmatpush1.bf16.msra.mxu0 %v5177_v24  ;;  %2826 = vmatpush1.bf16.msra.mxu1 %v5180_v2 }
 0xd78   :  { %2881 = vmatprep.subr.bf16.mxu0 %v5039_v29  ;;  %2922 = vmatprep.subr.bf16.mxu1 %v5042_v46 }
 0xe2d   :  { %v2693_v10 = vpop.f32.mrb[92].mxu0  ;;  %v2734_v6 = vpop.f32.mrb[108].mxu1 }
 0xe2e   :  { %v2741_v3 = vadd.f32 %v2693_v10, %v5423_v25  ;;  %v2743_v9 = vadd.f32 %v2734_v6, %v5424_v57  ;;  %v2695_v26 = vpop.f32.mrb[93].mxu0  ;;  %v2736_v19 = vpop.f32.mrb[109].mxu1 }
 0xe2f   :  { %v2742_v16 = vadd.f32 %v2695_v26, %v5425_v55  ;;  %v2744_v17 = vadd.f32 %v2736_v19, %v5426_v43  ;;  %v2697_v21 = vpop.f32.mrb[94].mxu0  ;;  %v2738_v11 = vpop.f32.mrb[110].mxu1  ;;  %v5427_v26 = vld [vmem:[#allocation47_spill] sm:$0xff]  ;;  %v5428_v55 = vld [vmem:[#allocation48_spill] sm:$0xff] }
 0xe30   :  { %v3398_v27 = vmul.f32 -1.442695, %v2741_v3  ;;  %v2698_v4 = vpop.f32.mrb[95].mxu0  ;;  %v2739_v5 = vpop.f32.mrb[111].mxu1  ;;  %v5429_v21 = vld [vmem:[#allocation49_spill] sm:$0xff] }
 0xe31   :  { %v3399_v18 = vmul.f32 -1.442695, %v2742_v16  ;;  %v3400_v42 = vmul.f32 -1.442695, %v2744_v17 }
 0xe32   :  { %3794 = vpow2.f32 %v3398_v27  ;;  %v5430_v27 = vld [vmem:[#allocation50_spill] sm:$0xff] }
 0xe33   :  { %3796 = vpow2.f32 %v3399_v18 }
 0xe34   :  { %3798 = vpow2.f32 %v3400_v42 }
 0xe35   :  { %3800 = vtanh.f32 %v2743_v9 }
 0xe3c   :  { %v3795_v49 = vpop.eup %3794 }
 0xe3d   :  { %v3797_v59 = vpop.eup %3796  ;;  %v2748_v61 = vadd.f32 1.0, %v3795_v49 }
 0xe3e   :  { %v2754_v62 = vadd.f32 1.0, %v3797_v59  ;;  %v3799_v12 = vpop.eup %3798 }
 0xe3f   :  { %3802 = vrcp.f32 %v2748_v61  ;;  %v3801_v13 = vpop.eup %3800  ;;  %v2761_v60 = vadd.f32 1.0, %v3799_v12 }
 0xe40   :  { %3804 = vrcp.f32 %v2754_v62 }
 0xe41   :  { %3806 = vrcp.f32 %v2761_v60 }
 0xe49   :  { %v3803_v33 = vpop.eup %3802 }
 0xe4a   :  { %v3805_v41 = vpop.eup %3804  ;;  %v2765_v54 = vmul.f32 %v3803_v33, %v3801_v13 }
 0xe4b   :  { %v2764_v63 = vmul.f32 %v3805_v41, %v5132_v38  ;;  %v3807_v6 = vpop.eup %3806 }
 0xe4d   :  { %v5190_v10 = vadd.f32 %v2765_v54, %v2764_v63 }
 0xe4f   :  { %3808 = vtanh.f32 %v5190_v10 }
 0xe59   :  { %v3809_v25 = vpop.eup %3808 }
 0xe5a   :  { %v2768_v3 = vmul.f32 %v3809_v25, %v3807_v6 }
 0xe5c   :  { %v2769_v57 = vpack.c.bf16 %v2768_v3, %v2768_v3 }
 0xe5e   :  { %2803 = vmatmul.mubr.bf16.vlgmr.msra.gmra.mrb[96].mxu0 %v2769_v57  ;;  %2844 = vmatmul.mubr.bf16.vlgmr.msra.gmra.mrb[112].mxu1 %v2769_v57 }
 0xe5f   :  { %2882 = vmatpush1.bf16.msra.mxu0 %v5003_v56  ;;  %2923 = vmatpush1.bf16.msra.mxu1 %v5006_v22 }
 0xe60   :  { %2883 = vmatprep.subr.bf16.mxu0 %v5055_v23  ;;  %2924 = vmatprep.subr.bf16.mxu1 %v5058_v30 }
 0xe61   :  { %2913 = vmatprep.mubr.bf16.mxu0 %v5391_v40  ;;  %2954 = vmatprep.mubr.bf16.mxu1 %v5391_v40 }
 0xe63   :  { %2884 = vmatpush1.bf16.msra.mxu0 %v5063_v31  ;;  %2925 = vmatpush1.bf16.msra.mxu1 %v5066_v36 }
 0xe64   :  { %2885 = vmatprep.subr.bf16.mxu0 %v5069_v32  ;;  %2926 = vmatprep.subr.bf16.mxu1 %v5072_v37 }
 0xe67   :  { %2886 = vmatpush1.bf16.msra.mxu0 %v5075_v34  ;;  %2927 = vmatpush1.bf16.msra.mxu1 %v5078_v52 }
 0xe68   :  { %2887 = vmatprep.subr.bf16.mxu0 %v5081_v35  ;;  %2928 = vmatprep.subr.bf16.mxu1 %v5084_v53 }
 0xe6b   :  { %2888 = vmatpush1.bf16.msra.mxu0 %v5087_v44  ;;  %2929 = vmatpush1.bf16.msra.mxu1 %v5090_v45 }
 0xe6c   :  { %2889 = vmatprep.subr.bf16.mxu0 %v5093_v50  ;;  %2930 = vmatprep.subr.bf16.mxu1 %v5096_v51 }
 0xe6f   :  { %2890 = vmatpush1.bf16.msra.mxu0 %v5099_v58  ;;  %2931 = vmatpush1.bf16.msra.mxu1 %v5102_v48 }
 0xe70   :  { %2891 = vmatprep.subr.bf16.mxu0 %v5105_v47  ;;  %2932 = vmatprep.subr.bf16.mxu1 %v5108_v39 }
 0xe73   :  { %2892 = vmatpush1.bf16.msra.mxu0 %v5111_v20  ;;  %2933 = vmatpush1.bf16.msra.mxu1 %v5114_v14 }
 0xe74   :  { %2893 = vmatprep.subr.bf16.mxu0 %v5159_v0  ;;  %2934 = vmatprep.subr.bf16.mxu1 %v5162_v28 }
 0xe77   :  { %2894 = vmatpush1.bf16.msra.mxu0 %v5165_v7  ;;  %2935 = vmatpush1.bf16.msra.mxu1 %v5168_v8 }
 0xe78   :  { %2895 = vmatprep.subr.bf16.mxu0 %v5171_v15  ;;  %2936 = vmatprep.subr.bf16.mxu1 %v5174_v1 }
 0xe7b   :  { %2896 = vmatpush1.bf16.msra.mxu0 %v5177_v24  ;;  %2937 = vmatpush1.bf16.msra.mxu1 %v5180_v2 }
 0xe7c   :  { %2992 = vmatprep.subr.bf16.mxu0 %v5039_v29  ;;  %3033 = vmatprep.subr.bf16.mxu1 %v5042_v46 }
 0xf31   :  { %v2804_v38 = vpop.f32.mrb[96].mxu0  ;;  %v2845_v9 = vpop.f32.mrb[112].mxu1 }
 0xf32   :  { %v2852_v19 = vadd.f32 %v2804_v38, %v5427_v26  ;;  %v2854_v16 = vadd.f32 %v2845_v9, %v5428_v55  ;;  %v2806_v43 = vpop.f32.mrb[97].mxu0  ;;  %v2847_v17 = vpop.f32.mrb[113].mxu1 }
 0xf33   :  { %v2853_v11 = vadd.f32 %v2806_v43, %v5429_v21  ;;  %v2855_v4 = vadd.f32 %v2847_v17, %v5430_v27  ;;  %v2808_v5 = vpop.f32.mrb[98].mxu0  ;;  %v2849_v18 = vpop.f32.mrb[114].mxu1  ;;  %v5431_v43 = vld [vmem:[#allocation51_spill] sm:$0xff]  ;;  %v5432_v21 = vld [vmem:[#allocation52_spill] sm:$0xff] }
 0xf34   :  { %v3401_v42 = vmul.f32 -1.442695, %v2852_v19  ;;  %v2809_v49 = vpop.f32.mrb[99].mxu0  ;;  %v2850_v59 = vpop.f32.mrb[115].mxu1  ;;  %v5433_v5 = vld [vmem:[#allocation53_spill] sm:$0xff] }
 0xf35   :  { %v3402_v61 = vmul.f32 -1.442695, %v2853_v11  ;;  %v3403_v62 = vmul.f32 -1.442695, %v2855_v4 }
 0xf36   :  { %3810 = vpow2.f32 %v3401_v42  ;;  %v5434_v42 = vld [vmem:[#allocation54_spill] sm:$0xff] }
 0xf37   :  { %3812 = vpow2.f32 %v3402_v61 }
 0xf38   :  { %3814 = vpow2.f32 %v3403_v62 }
 0xf39   :  { %3816 = vtanh.f32 %v2854_v16 }
 0xf40   :  { %v3811_v12 = vpop.eup %3810 }
 0xf41   :  { %v3813_v13 = vpop.eup %3812  ;;  %v2859_v33 = vadd.f32 1.0, %v3811_v12 }
 0xf42   :  { %v2865_v41 = vadd.f32 1.0, %v3813_v13  ;;  %v3815_v54 = vpop.eup %3814 }
 0xf43   :  { %3818 = vrcp.f32 %v2859_v33  ;;  %v3817_v60 = vpop.eup %3816  ;;  %v2872_v3 = vadd.f32 1.0, %v3815_v54 }
 0xf44   :  { %3820 = vrcp.f32 %v2865_v41 }
 0xf45   :  { %3822 = vrcp.f32 %v2872_v3 }
 0xf4d   :  { %v3819_v63 = vpop.eup %3818 }
 0xf4e   :  { %v3821_v6 = vpop.eup %3820  ;;  %v2876_v25 = vmul.f32 %v3819_v63, %v3817_v60 }
 0xf4f   :  { %v2875_v57 = vmul.f32 %v3821_v6, %v5190_v10  ;;  %v3823_v9 = vpop.eup %3822 }
 0xf51   :  { %v5232_v38 = vadd.f32 %v2876_v25, %v2875_v57 }
 0xf53   :  { %3824 = vtanh.f32 %v5232_v38 }
 0xf5d   :  { %v3825_v26 = vpop.eup %3824 }
 0xf5e   :  { %v2879_v19 = vmul.f32 %v3825_v26, %v3823_v9 }
 0xf60   :  { %v2880_v55 = vpack.c.bf16 %v2879_v19, %v2879_v19 }
 0xf62   :  { %2914 = vmatmul.mubr.bf16.vlgmr.msra.gmra.mrb[100].mxu0 %v2880_v55  ;;  %2955 = vmatmul.mubr.bf16.vlgmr.msra.gmra.mrb[116].mxu1 %v2880_v55 }
 0xf63   :  { %2993 = vmatpush1.bf16.msra.mxu0 %v5003_v56  ;;  %3034 = vmatpush1.bf16.msra.mxu1 %v5006_v22 }
 0xf64   :  { %2994 = vmatprep.subr.bf16.mxu0 %v5055_v23  ;;  %3035 = vmatprep.subr.bf16.mxu1 %v5058_v30 }
 0xf65   :  { %3024 = vmatprep.mubr.bf16.mxu0 %v5391_v40  ;;  %3065 = vmatprep.mubr.bf16.mxu1 %v5391_v40 }
 0xf67   :  { %2995 = vmatpush1.bf16.msra.mxu0 %v5063_v31  ;;  %3036 = vmatpush1.bf16.msra.mxu1 %v5066_v36 }
 0xf68   :  { %2996 = vmatprep.subr.bf16.mxu0 %v5069_v32  ;;  %3037 = vmatprep.subr.bf16.mxu1 %v5072_v37 }
 0xf6b   :  { %2997 = vmatpush1.bf16.msra.mxu0 %v5075_v34  ;;  %3038 = vmatpush1.bf16.msra.mxu1 %v5078_v52 }
 0xf6c   :  { %2998 = vmatprep.subr.bf16.mxu0 %v5081_v35  ;;  %3039 = vmatprep.subr.bf16.mxu1 %v5084_v53 }
 0xf6f   :  { %2999 = vmatpush1.bf16.msra.mxu0 %v5087_v44  ;;  %3040 = vmatpush1.bf16.msra.mxu1 %v5090_v45 }
 0xf70   :  { %3000 = vmatprep.subr.bf16.mxu0 %v5093_v50  ;;  %3041 = vmatprep.subr.bf16.mxu1 %v5096_v51 }
 0xf73   :  { %3001 = vmatpush1.bf16.msra.mxu0 %v5099_v58  ;;  %3042 = vmatpush1.bf16.msra.mxu1 %v5102_v48 }
 0xf74   :  { %3002 = vmatprep.subr.bf16.mxu0 %v5105_v47  ;;  %3043 = vmatprep.subr.bf16.mxu1 %v5108_v39 }
 0xf77   :  { %3003 = vmatpush1.bf16.msra.mxu0 %v5111_v20  ;;  %3044 = vmatpush1.bf16.msra.mxu1 %v5114_v14 }
 0xf78   :  { %3004 = vmatprep.subr.bf16.mxu0 %v5159_v0  ;;  %3045 = vmatprep.subr.bf16.mxu1 %v5162_v28 }
 0xf7b   :  { %3005 = vmatpush1.bf16.msra.mxu0 %v5165_v7  ;;  %3046 = vmatpush1.bf16.msra.mxu1 %v5168_v8 }
 0xf7c   :  { %3006 = vmatprep.subr.bf16.mxu0 %v5171_v15  ;;  %3047 = vmatprep.subr.bf16.mxu1 %v5174_v1 }
 0xf7f   :  { %3007 = vmatpush1.bf16.msra.mxu0 %v5177_v24  ;;  %3048 = vmatpush1.bf16.msra.mxu1 %v5180_v2 }
 0xf80   :  { %3103 = vmatprep.subr.bf16.mxu0 %v5039_v29  ;;  %3144 = vmatprep.subr.bf16.mxu1 %v5042_v46 }
0x1035   :  { %v2915_v10 = vpop.f32.mrb[100].mxu0  ;;  %v2956_v16 = vpop.f32.mrb[116].mxu1 }
0x1036   :  { %v2963_v17 = vadd.f32 %v2915_v10, %v5431_v43  ;;  %v2965_v11 = vadd.f32 %v2956_v16, %v5432_v21  ;;  %v2917_v27 = vpop.f32.mrb[101].mxu0  ;;  %v2958_v4 = vpop.f32.mrb[117].mxu1 }
0x1037   :  { %v2964_v18 = vadd.f32 %v2917_v27, %v5433_v5  ;;  %v2966_v49 = vadd.f32 %v2958_v4, %v5434_v42  ;;  %v2919_v59 = vpop.f32.mrb[102].mxu0  ;;  %v2960_v61 = vpop.f32.mrb[118].mxu1  ;;  %v5439_v5 = vld [vmem:[#allocation59_spill] sm:$0xff]  ;;  %v5440_v42 = vld [vmem:[#allocation60_spill] sm:$0xff] }
0x1038   :  { %v3404_v62 = vmul.f32 -1.442695, %v2963_v17  ;;  %v2920_v12 = vpop.f32.mrb[103].mxu0  ;;  %v2961_v13 = vpop.f32.mrb[119].mxu1 }
0x1039   :  { %v3405_v29 = vmul.f32 -1.442695, %v2964_v18  ;;  %v3406_v46 = vmul.f32 -1.442695, %v2966_v49  ;;  %v5442_v13 = vld [vmem:[#allocation62_spill] sm:$0xff] }
0x103a   :  { %3826 = vpow2.f32 %v3404_v62  ;;  %v5441_v62 = vld [vmem:[#allocation61_spill] sm:$0xff] }
0x103b   :  { %3828 = vpow2.f32 %v3405_v29 }
0x103c   :  { %3830 = vpow2.f32 %v3406_v46 }
0x103d   :  { %3832 = vtanh.f32 %v2965_v11 }
0x1044   :  { %v3827_v33 = vpop.eup %3826 }
0x1045   :  { %v3829_v41 = vpop.eup %3828  ;;  %v2970_v54 = vadd.f32 1.0, %v3827_v33 }
0x1046   :  { %v2976_v60 = vadd.f32 1.0, %v3829_v41  ;;  %v3831_v63 = vpop.eup %3830 }
0x1047   :  { %3834 = vrcp.f32 %v2970_v54  ;;  %v3833_v6 = vpop.eup %3832  ;;  %v2983_v9 = vadd.f32 1.0, %v3831_v63 }
0x1048   :  { %3836 = vrcp.f32 %v2976_v60 }
0x1049   :  { %3838 = vrcp.f32 %v2983_v9 }
0x1051   :  { %v3835_v25 = vpop.eup %3834 }
0x1052   :  { %v3837_v3 = vpop.eup %3836  ;;  %v2987_v57 = vmul.f32 %v3835_v25, %v3833_v6 }
0x1053   :  { %v2986_v26 = vmul.f32 %v3837_v3, %v5232_v38  ;;  %v3839_v55 = vpop.eup %3838 }
0x1055   :  { %v5274_v19 = vadd.f32 %v2987_v57, %v2986_v26 }
0x1057   :  { %3840 = vtanh.f32 %v5274_v19 }
0x1061   :  { %v3841_v10 = vpop.eup %3840 }
0x1062   :  { %v2990_v16 = vmul.f32 %v3841_v10, %v3839_v55 }
0x1064   :  { %v2991_v43 = vpack.c.bf16 %v2990_v16, %v2990_v16 }
0x1066   :  { %3025 = vmatmul.mubr.bf16.vlgmr.msra.gmra.mrb[104].mxu0 %v2991_v43  ;;  %3066 = vmatmul.mubr.bf16.vlgmr.msra.gmra.mrb[120].mxu1 %v2991_v43 }
0x1067   :  { %3104 = vmatpush1.bf16.msra.mxu0 %v5003_v56  ;;  %3145 = vmatpush1.bf16.msra.mxu1 %v5006_v22  ;;  %v5435_v22 = vld [vmem:[#allocation55_spill] sm:$0xff] }
0x1068   :  { %3105 = vmatprep.subr.bf16.mxu0 %v5055_v23  ;;  %3146 = vmatprep.subr.bf16.mxu1 %v5058_v30  ;;  %v5436_v30 = vld [vmem:[#allocation56_spill] sm:$0xff] }
0x1069   :  { %3135 = vmatprep.mubr.bf16.mxu0 %v5391_v40  ;;  %3176 = vmatprep.mubr.bf16.mxu1 %v5391_v40 }
0x106b   :  { %3106 = vmatpush1.bf16.msra.mxu0 %v5063_v31  ;;  %3147 = vmatpush1.bf16.msra.mxu1 %v5066_v36 }
0x106c   :  { %3107 = vmatprep.subr.bf16.mxu0 %v5069_v32  ;;  %3148 = vmatprep.subr.bf16.mxu1 %v5072_v37  ;;  %v5437_v37 = vld [vmem:[#allocation57_spill] sm:$0xff] }
0x106f   :  { %3108 = vmatpush1.bf16.msra.mxu0 %v5075_v34  ;;  %3149 = vmatpush1.bf16.msra.mxu1 %v5078_v52  ;;  %v5438_v52 = vld [vmem:[#allocation58_spill] sm:$0xff] }
0x1070   :  { %3109 = vmatprep.subr.bf16.mxu0 %v5081_v35  ;;  %3150 = vmatprep.subr.bf16.mxu1 %v5084_v53 }
0x1073   :  { %3110 = vmatpush1.bf16.msra.mxu0 %v5087_v44  ;;  %3151 = vmatpush1.bf16.msra.mxu1 %v5090_v45 }
0x1074   :  { %3111 = vmatprep.subr.bf16.mxu0 %v5093_v50  ;;  %3152 = vmatprep.subr.bf16.mxu1 %v5096_v51 }
0x1077   :  { %3112 = vmatpush1.bf16.msra.mxu0 %v5099_v58  ;;  %3153 = vmatpush1.bf16.msra.mxu1 %v5102_v48 }
0x1078   :  { %3113 = vmatprep.subr.bf16.mxu0 %v5105_v47  ;;  %3154 = vmatprep.subr.bf16.mxu1 %v5108_v39 }
0x107b   :  { %3114 = vmatpush1.bf16.msra.mxu0 %v5111_v20  ;;  %3155 = vmatpush1.bf16.msra.mxu1 %v5114_v14 }
0x107c   :  { %3115 = vmatprep.subr.bf16.mxu0 %v5159_v0  ;;  %3156 = vmatprep.subr.bf16.mxu1 %v5162_v28 }
0x107f   :  { %3116 = vmatpush1.bf16.msra.mxu0 %v5165_v7  ;;  %3157 = vmatpush1.bf16.msra.mxu1 %v5168_v8 }
0x1080   :  { %3117 = vmatprep.subr.bf16.mxu0 %v5171_v15  ;;  %3158 = vmatprep.subr.bf16.mxu1 %v5174_v1 }
0x1083   :  { %3118 = vmatpush1.bf16.msra.mxu0 %v5177_v24  ;;  %3159 = vmatpush1.bf16.msra.mxu1 %v5180_v2 }
0x1139   :  { %v3026_v40 = vpop.f32.mrb[104].mxu0  ;;  %v3067_v56 = vpop.f32.mrb[120].mxu1 }
0x113a   :  { %v3074_v23 = vadd.f32 %v3026_v40, %v5435_v22  ;;  %v3076_v31 = vadd.f32 %v3067_v56, %v5436_v30  ;;  %v3028_v36 = vpop.f32.mrb[105].mxu0  ;;  %v3069_v32 = vpop.f32.mrb[121].mxu1 }
0x113b   :  { %v3075_v34 = vadd.f32 %v3028_v36, %v5437_v37  ;;  %v3077_v35 = vadd.f32 %v3069_v32, %v5438_v52  ;;  %v3030_v53 = vpop.f32.mrb[106].mxu0  ;;  %v3071_v44 = vpop.f32.mrb[122].mxu1 }
0x113c   :  { %v3407_v45 = vmul.f32 -1.442695, %v3074_v23  ;;  %v3031_v50 = vpop.f32.mrb[107].mxu0  ;;  %v3072_v51 = vpop.f32.mrb[123].mxu1 }
0x113d   :  { %v3408_v58 = vmul.f32 -1.442695, %v3075_v34  ;;  %v3409_v48 = vmul.f32 -1.442695, %v3077_v35 }
0x113e   :  { %3842 = vpow2.f32 %v3407_v45 }
0x113f   :  { %3844 = vpow2.f32 %v3408_v58 }
0x1140   :  { %3846 = vpow2.f32 %v3409_v48 }
0x1141   :  { %3848 = vtanh.f32 %v3076_v31 }
0x1148   :  { %v3843_v47 = vpop.eup %3842 }
0x1149   :  { %v3845_v39 = vpop.eup %3844  ;;  %v3081_v20 = vadd.f32 1.0, %v3843_v47 }
0x114a   :  { %v3087_v14 = vadd.f32 1.0, %v3845_v39  ;;  %v3847_v0 = vpop.eup %3846 }
0x114b   :  { %3850 = vrcp.f32 %v3081_v20  ;;  %v3849_v28 = vpop.eup %3848  ;;  %v3094_v1 = vadd.f32 1.0, %v3847_v0 }
0x114c   :  { %3852 = vrcp.f32 %v3087_v14 }
0x114d   :  { %3854 = vrcp.f32 %v3094_v1 }
0x1155   :  { %v3851_v7 = vpop.eup %3850 }
0x1156   :  { %v3853_v8 = vpop.eup %3852  ;;  %v3098_v15 = vmul.f32 %v3851_v7, %v3849_v28 }
0x1157   :  { %v3097_v24 = vmul.f32 %v3853_v8, %v5274_v19  ;;  %v3855_v38 = vpop.eup %3854 }
0x1159   :  { %v3099_v2 = vadd.f32 %v3098_v15, %v3097_v24 }
0x115b   :  { %3856 = vtanh.f32 %v3099_v2 }
0x1165   :  { %v3857_v17 = vpop.eup %3856 }
0x1166   :  { %v3101_v21 = vmul.f32 %v3857_v17, %v3855_v38 }
0x1168   :  { %v3102_v11 = vpack.c.bf16 %v3101_v21, %v3101_v21 }
0x116a   :  { %3136 = vmatmul.mubr.bf16.vlgmr.msra.gmra.mrb[108].mxu0 %v3102_v11  ;;  %3177 = vmatmul.mubr.bf16.vlgmr.msra.gmra.mrb[124].mxu1 %v3102_v11 }
0x123d   :  { %v3137_v27 = vpop.f32.mrb[108].mxu0  ;;  %v3178_v4 = vpop.f32.mrb[124].mxu1 }
0x123e   :  { %v3185_v18 = vadd.f32 %v3137_v27, %v5439_v5  ;;  %v3187_v49 = vadd.f32 %v3178_v4, %v5440_v42  ;;  %v3139_v59 = vpop.f32.mrb[109].mxu0  ;;  %v3180_v61 = vpop.f32.mrb[125].mxu1 }
0x123f   :  { %v3186_v12 = vadd.f32 %v3139_v59, %v5441_v62  ;;  %v3188_v29 = vadd.f32 %v3180_v61, %v5442_v13  ;;  %v3141_v46 = vpop.f32.mrb[110].mxu0  ;;  %v3182_v33 = vpop.f32.mrb[126].mxu1 }
0x1240   :  { %v3410_v41 = vmul.f32 -1.442695, %v3185_v18  ;;  %v3142_v54 = vpop.f32.mrb[111].mxu0  ;;  %v3183_v60 = vpop.f32.mrb[127].mxu1 }
0x1241   :  { %v3411_v63 = vmul.f32 -1.442695, %v3186_v12  ;;  %v3412_v6 = vmul.f32 -1.442695, %v3188_v29 }
0x1242   :  { %3858 = vpow2.f32 %v3410_v41 }
0x1243   :  { %3860 = vpow2.f32 %v3411_v63 }
0x1244   :  { %3862 = vpow2.f32 %v3412_v6 }
0x1245   :  { %3864 = vtanh.f32 %v3187_v49 }
0x124c   :  { %v3859_v25 = vpop.eup %3858 }
0x124d   :  { %v3861_v3 = vpop.eup %3860  ;;  %v3192_v57 = vadd.f32 1.0, %v3859_v25 }
0x124e   :  { %v3198_v9 = vadd.f32 1.0, %v3861_v3  ;;  %v3863_v26 = vpop.eup %3862 }
0x124f   :  { %3866 = vrcp.f32 %v3192_v57  ;;  %v3865_v19 = vpop.eup %3864  ;;  %v3205_v43 = vadd.f32 1.0, %v3863_v26 }
0x1250   :  { %3868 = vrcp.f32 %v3198_v9 }
0x1251   :  { %3870 = vrcp.f32 %v3205_v43 }
0x1259   :  { %v3867_v55 = vpop.eup %3866 }
0x125a   :  { %v3869_v10 = vpop.eup %3868  ;;  %v3209_v16 = vmul.f32 %v3867_v55, %v3865_v19 }
0x125b   :  { %v3208_v40 = vmul.f32 %v3869_v10, %v3099_v2  ;;  %v3871_v22 = vpop.eup %3870 }
0x125d   :  { %v3210_v56 = vadd.f32 %v3209_v16, %v3208_v40 }
0x125f   :  { %3872 = vtanh.f32 %v3210_v56 }
0x1269   :  { %v3873_v23 = vpop.eup %3872 }
0x126a   :  { %v3212_v30 = vmul.f32 %v3873_v23, %v3871_v22 }
0x126c   :  { %v3214_v31 = vcombine.high %v3212_v30, %v3212_v30  ;;  %3216 = vst [vmem:[#allocation8] sm:$0xf] %v3212_v30 }
0x126e   :  { %3217 = vst [vmem:[#allocation8 + $0x4] sm:$0xf] %v3214_v31 }
0x126f   :  { %4015 = shalt.err (!%p4012_p0)
}
0x1270   :  { %s4016_s16 = scalar_lea.hbm %s5337_s7, 128 }
0x1271   :  { %p4017_p1 = scmp.ne.s32.totalorder %s5337_s7, %s4016_s16  ;;  %p4020_p2 = scmp.lt.u32.totalorder %s4016_s16, %s5337_s7 }
0x1273   :  { %p4022_p3 = pnand %p4020_p2, %p4017_p1 }
0x1275   :  { %4025 = shalt.err (!%p4022_p3)
}
0x1276   :  { %s4040_s21 = smov 64   ;;  %s4041_s5 = smov 4  }
0x1277   :  { %3229 = dma.vmem_to_hbm [thread:$0]  %s3224_s12, 128, %s5337_s7, [#allocation4], %s4040_s21, %s4040_s21, %s4041_s5  }
0x1278   :  { %4030 = dma.done.wait [#allocation4], 128  }
0x1279   :  { %4031 = vsyncadd [#allocation4], 4294967168 }
0x127a   :  { %3233 = vsyncpa [#allocation3], 1 }
0x127b   :  { %3234 = vsyncpa [#allocation6], 1 }
0x127c   :  { %3235 = vsyncpa [#allocation4], 1 }

</bundles_post_ra>
